<compile_context>
chip_gen: v6e
topology: v6e:2x2x1
jax: 0.10.0
libtpu: 0.0.40
codegen_flags: <defaults>
</compile_context>

<pallas_src>
import jax
import jax.numpy as jnp
from jax.experimental import pallas as pl
from jax.experimental.pallas import tpu as pltpu

_EPS = 1e-5
_LANE = 128

_VMEM = pl.BlockSpec(memory_space=pltpu.MemorySpace.VMEM)
_SMEM = pl.BlockSpec(memory_space=pltpu.MemorySpace.SMEM)


def _bf16(x):
    return x.astype(jnp.bfloat16)


# --------------------------------------------------------------------------
# Fused kernel:
#   relu( attention( bn2( conv2( relu( bn1( conv1(x) ) ) ) ) ) + downsample(x) )
# All tensors are channel-padded to 128 lanes; padded channels stay exactly 0
# through every stage (weights / biases / BN affine are zero-padded).
# --------------------------------------------------------------------------
def residual_block_kernel(xp_ref, w1_ref, b1_ref, g1_ref, beta1_ref,
                          w2_ref, b2_ref, g2_ref, beta2_ref,
                          wq_ref, bq_ref, wk_ref, bk_ref, wv_ref, bv_ref,
                          wd_ref, bd_ref, gamma_ref,
                          o_ref, pad_ref):
    # xp_ref : (N, H+2, W+2, C)  spatially pre-padded, channel-padded input (f32)
    # w*_ref : bf16 weights; conv weights are (9*C, C) tap-major im2col layout
    # b*/g*/beta* : (1, C) f32
    # gamma_ref : (1, 1) f32 in SMEM
    # o_ref  : (N*H*W, C) f32 lane-dense output
    # pad_ref: (N, H+2, W+2, C) f32 VMEM scratch (spatial halo for conv2)
    N, Hp, Wp, C = xp_ref.shape
    H, W = Hp - 2, Wp - 2
    HW = H * W
    M = N * HW

    def im2col(xp):
        # 9 shifted views concatenated along the (128-aligned) lane axis:
        # tap-major, channel-minor -> matches the (9*C, C) weight layout.
        cols = [xp[:, kh:kh + H, kw:kw + W, :].reshape(M, C)
                for kh in range(3) for kw in range(3)]
        return jnp.concatenate(cols, axis=-1)               # (M, 9*C)

    def matmul(a_f32, w_bf16_ref):
        return jnp.dot(_bf16(a_f32), w_bf16_ref[...],
                       preferred_element_type=jnp.float32)

    def batchnorm(y, g_ref, beta_ref):
        # training-mode BN over the batch*spatial axis; one pass (f32 sums).
        inv_m = 1.0 / M
        mean = jnp.sum(y, axis=0, keepdims=True) * inv_m
        ex2 = jnp.sum(y * y, axis=0, keepdims=True) * inv_m
        var = jnp.maximum(ex2 - mean * mean, 0.0)
        return (y - mean) * jax.lax.rsqrt(var + _EPS) * g_ref[...] + beta_ref[...]

    # ---- stage 1: relu(bn1(conv1(x))) ------------------------------------
    conv1 = matmul(im2col(xp_ref[...]), w1_ref) + b1_ref[...]
    out1 = jnp.maximum(batchnorm(conv1, g1_ref, beta1_ref), 0.0)      # (M, C)

    # ---- spatial halo padding for conv2, built in VMEM (no HBM round-trip)
    pad_ref[...] = jnp.zeros_like(pad_ref)
    pad_ref[:, 1:H + 1, 1:W + 1, :] = out1.reshape(N, H, W, C)

    # ---- stage 2: bn2(conv2(out1)) ---------------------------------------
    conv2 = matmul(im2col(pad_ref[...]), w2_ref) + b2_ref[...]
    feat = batchnorm(conv2, g2_ref, beta2_ref)                        # (M, C)

    # ---- self-attention (1x1 convs == per-pixel matmuls) -----------------
    featb = _bf16(feat)
    q = (jnp.dot(featb, wq_ref[...], preferred_element_type=jnp.float32)
         + bq_ref[...]).reshape(N, HW, C)
    k = (jnp.dot(featb, wk_ref[...], preferred_element_type=jnp.float32)
         + bk_ref[...]).reshape(N, HW, C)
    v = (jnp.dot(featb, wv_ref[...], preferred_element_type=jnp.float32)
         + bv_ref[...]).reshape(N, HW, C)

    # TODO(synk): for large H*W, tile the (N, HW, HW) energy with a flash-style
    # online softmax and switch BN to cross-tile partial sums.
    energy = jnp.einsum('nic,njc->nij', _bf16(q), _bf16(k),
                        preferred_element_type=jnp.float32)
    m = jnp.max(energy, axis=-1, keepdims=True)
    e = jnp.exp(energy - m)
    attn = e * pl.reciprocal(jnp.sum(e, axis=-1, keepdims=True), approx=True)
    attn_out = jnp.einsum('nij,njc->nic', _bf16(attn), _bf16(v),
                          preferred_element_type=jnp.float32).reshape(M, C)
    feat = gamma_ref[0, 0] * attn_out + feat

    # ---- residual (1x1 downsample conv) + relu ---------------------------
    x_in = xp_ref[:, 1:H + 1, 1:W + 1, :].reshape(M, C)
    res = matmul(x_in, wd_ref) + bd_ref[...]
    o_ref[...] = jnp.maximum(feat + res, 0.0)


# --------------------------------------------------------------------------
# Wrapper (NCHW in / NCHW out, like the PyTorch module)
# --------------------------------------------------------------------------
def _round_up(n, m):
    return ((n + m - 1) // m) * m


def _pad_lane(a, cp):
    pad = cp - a.shape[-1]
    if pad == 0:
        return a
    cfg = [(0, 0)] * (a.ndim - 1) + [(0, pad)]
    return jnp.pad(a, cfg)


def _prep_conv_w(w, cp):
    # (3, 3, cin, cout) -> bf16 (9*cp, cp), tap-major rows (matches im2col).
    cin, cout = w.shape[2], w.shape[3]
    w = jnp.pad(w, ((0, 0), (0, 0), (0, cp - cin), (0, cp - cout)))
    return w.reshape(9 * cp, cp).astype(jnp.bfloat16)


def _prep_1x1_w(w, cp):
    cin, cout = w.shape
    return jnp.pad(w, ((0, cp - cin), (0, cp - cout))).astype(jnp.bfloat16)


@jax.jit
def residual_block_forward(x_nchw, params):
    x = jnp.transpose(x_nchw, (0, 2, 3, 1)).astype(jnp.float32)   # -> NHWC
    N, H, W, Cin = x.shape
    Cout = params['w1'].shape[-1]
    CP = _round_up(max(Cin, Cout, _LANE), _LANE)
    M = N * H * W

    # spatial halo (for conv1) + channel padding to the 128-lane width
    xp = jnp.pad(x, ((0, 0), (1, 1), (1, 1), (0, CP - Cin)))

    # downsample is Identity when Cin == Cout (module spec); emulate with I/0.
    wd = params.get('wd', jnp.eye(Cin, Cout, dtype=jnp.float32))
    bd = params.get('bd', jnp.zeros((1, Cout), jnp.float32))

    args = (
        xp,
        _prep_conv_w(params['w1'], CP), _pad_lane(params['b1'], CP),
        _pad_lane(params['g1'], CP), _pad_lane(params['beta1'], CP),
        _prep_conv_w(params['w2'], CP), _pad_lane(params['b2'], CP),
        _pad_lane(params['g2'], CP), _pad_lane(params['beta2'], CP),
        _prep_1x1_w(params['wq'], CP), _pad_lane(params['bq'], CP),
        _prep_1x1_w(params['wk'], CP), _pad_lane(params['bk'], CP),
        _prep_1x1_w(params['wv'], CP), _pad_lane(params['bv'], CP),
        _prep_1x1_w(wd, CP), _pad_lane(bd, CP),
        params['gamma'],
    )

    out_flat = pl.pallas_call(
        residual_block_kernel,
        out_shape=jax.ShapeDtypeStruct((M, CP), jnp.float32),
        in_specs=[_VMEM] * 17 + [_SMEM],
        out_specs=_VMEM,
        scratch_shapes=[pltpu.VMEM((N, H + 2, W + 2, CP), jnp.float32)],
    )(*args)

    out = out_flat.reshape(N, H, W, CP)[..., :Cout]
    return jnp.transpose(out, (0, 3, 1, 2))                      # -> NCHW


# --------------------------------------------------------------------------
# Pure-JAX reference (same math, matching bf16 matmul precision)
# --------------------------------------------------------------------------
def ref_forward(x_nchw, p):
    x = jnp.transpose(x_nchw, (0, 2, 3, 1)).astype(jnp.float32)
    N, H, W, Cin = x.shape
    bf = jnp.bfloat16

    def mm(a, w):
        return jnp.dot(a.astype(bf), w.astype(bf),
                       preferred_element_type=jnp.float32)

    def conv3(xin, w, b):
        cin, cout = w.shape[2], w.shape[3]
        xp = jnp.pad(xin, ((0, 0), (1, 1), (1, 1), (0, 0)))
        acc = jnp.zeros((N, H, W, cout), jnp.float32)
        for kh in range(3):
            for kw in range(3):
                patch = xp[:, kh:kh + H, kw:kw + W, :].reshape(-1, cin)
                acc = acc + mm(patch, w[kh, kw]).reshape(N, H, W, cout)
        return acc + b[0]

    def bn(y, g, beta):
        mean = jnp.mean(y, axis=(0, 1, 2), keepdims=True)
        var = jnp.mean((y - mean) ** 2, axis=(0, 1, 2), keepdims=True)
        return (y - mean) * jax.lax.rsqrt(var + _EPS) * g[0] + beta[0]

    out1 = jax.nn.relu(bn(conv3(x, p['w1'], p['b1']), p['g1'], p['beta1']))
    feat = bn(conv3(out1, p['w2'], p['b2']), p['g2'], p['beta2'])
    C = feat.shape[-1]
    f2 = feat.reshape(N, H * W, C)
    flat = feat.reshape(-1, C)
    q = (mm(flat, p['wq']) + p['bq'][0]).reshape(N, H * W, -1)
    k = (mm(flat, p['wk']) + p['bk'][0]).reshape(N, H * W, -1)
    v = (mm(flat, p['wv']) + p['bv'][0]).reshape(N, H * W, -1)
    energy = jnp.einsum('nic,njc->nij', q.astype(bf), k.astype(bf),
                        preferred_element_type=jnp.float32)
    attn = jax.nn.softmax(energy, axis=-1)
    ao = jnp.einsum('nij,njc->nic', attn.astype(bf), v.astype(bf),
                    preferred_element_type=jnp.float32)
    f3 = p['gamma'][0, 0] * ao + f2
    res = (mm(x.reshape(-1, Cin), p['wd']) + p['bd'][0]).reshape(N, H * W, C)
    out = jax.nn.relu(f3 + res).reshape(N, H, W, C)
    return jnp.transpose(out, (0, 3, 1, 2))


# --------------------------------------------------------------------------
def make_params(key, cin, cout):
    ks = jax.random.split(key, 12)
    f = lambda k, shape, s=0.1: s * jax.random.normal(k, shape, jnp.float32)
    return dict(
        w1=f(ks[0], (3, 3, cin, cout)), b1=f(ks[1], (1, cout)),
        g1=jnp.ones((1, cout), jnp.float32), beta1=jnp.zeros((1, cout), jnp.float32),
        w2=f(ks[2], (3, 3, cout, cout)), b2=f(ks[3], (1, cout)),
        g2=jnp.ones((1, cout), jnp.float32), beta2=jnp.zeros((1, cout), jnp.float32),
        wq=f(ks[4], (cout, cout // 8)), bq=f(ks[5], (1, cout // 8)),
        wk=f(ks[6], (cout, cout // 8)), bk=f(ks[7], (1, cout // 8)),
        wv=f(ks[8], (cout, cout)), bv=f(ks[9], (1, cout)),
        # PyTorch inits attention gamma to 0; use 0.5 so the attention path is exercised.
        gamma=jnp.full((1, 1), 0.5, jnp.float32),
        wd=f(ks[10], (cin, cout)), bd=f(ks[11], (1, cout)),
    )


if __name__ == "__main__":
    key = jax.random.PRNGKey(0)
    k_x, k_p = jax.random.split(key)

    N, Cin, Cout, H, W = 2, 4, 16, 8, 8
    x = jax.random.normal(k_x, (N, Cin, H, W), jnp.float32)   # NCHW, like PyTorch
    params = make_params(k_p, Cin, Cout)

    out = jax.block_until_ready(residual_block_forward(x, params))
    ref = jax.block_until_ready(ref_forward(x, params))

    assert out.shape == (N, Cout, H, W)
    assert bool(jnp.all(jnp.isfinite(out)))
    err = float(jnp.max(jnp.abs(out - ref)))
    assert err < 3e-2, f"max abs err = {err}"

    print("KERNEL_OK")
</pallas_src>

<mosaic_0001>
module attributes {stable_mosaic.version = 11 : i64} {
  func.func @residual_block_kernel(%arg0: memref<2x10x10x128xf32, #tpu.memory_space<vmem>>, %arg1: memref<1152x128xbf16, #tpu.memory_space<vmem>>, %arg2: memref<1x128xf32, #tpu.memory_space<vmem>>, %arg3: memref<1x128xf32, #tpu.memory_space<vmem>>, %arg4: memref<1x128xf32, #tpu.memory_space<vmem>>, %arg5: memref<1152x128xbf16, #tpu.memory_space<vmem>>, %arg6: memref<1x128xf32, #tpu.memory_space<vmem>>, %arg7: memref<1x128xf32, #tpu.memory_space<vmem>>, %arg8: memref<1x128xf32, #tpu.memory_space<vmem>>, %arg9: memref<128x128xbf16, #tpu.memory_space<vmem>>, %arg10: memref<1x128xf32, #tpu.memory_space<vmem>>, %arg11: memref<128x128xbf16, #tpu.memory_space<vmem>>, %arg12: memref<1x128xf32, #tpu.memory_space<vmem>>, %arg13: memref<128x128xbf16, #tpu.memory_space<vmem>>, %arg14: memref<1x128xf32, #tpu.memory_space<vmem>>, %arg15: memref<128x128xbf16, #tpu.memory_space<vmem>>, %arg16: memref<1x128xf32, #tpu.memory_space<vmem>>, %arg17: memref<1x1xf32, #tpu.memory_space<smem>>, %arg18: memref<128x128xf32, #tpu.memory_space<vmem>>, %arg19: memref<2x10x10x128xf32, #tpu.memory_space<vmem>>) attributes {dimension_semantics = [], scalar_prefetch = 0 : i64, scratch_operands = 1 : i64, tpu.core_type = #tpu.core_type<tc>} {
    %c0 = arith.constant 0 : index
    %c0_0 = arith.constant 0 : index
    %c0_1 = arith.constant 0 : index
    %c0_2 = arith.constant 0 : index
    %0 = vector.load %arg0[%c0, %c0_0, %c0_1, %c0_2] : memref<2x10x10x128xf32, #tpu.memory_space<vmem>>, vector<2x10x10x128xf32>
    %1 = vector.extract_strided_slice %0 {offsets = [0, 0, 0, 0], sizes = [2, 8, 8, 128], strides = [1, 1, 1, 1]} : vector<2x10x10x128xf32> to vector<2x8x8x128xf32>
    %2 = vector.shape_cast %1 : vector<2x8x8x128xf32> to vector<128x128xf32>
    %3 = vector.extract_strided_slice %0 {offsets = [0, 0, 1, 0], sizes = [2, 8, 8, 128], strides = [1, 1, 1, 1]} : vector<2x10x10x128xf32> to vector<2x8x8x128xf32>
    %4 = vector.shape_cast %3 : vector<2x8x8x128xf32> to vector<128x128xf32>
    %5 = vector.extract_strided_slice %0 {offsets = [0, 0, 2, 0], sizes = [2, 8, 8, 128], strides = [1, 1, 1, 1]} : vector<2x10x10x128xf32> to vector<2x8x8x128xf32>
    %6 = vector.shape_cast %5 : vector<2x8x8x128xf32> to vector<128x128xf32>
    %7 = vector.extract_strided_slice %0 {offsets = [0, 1, 0, 0], sizes = [2, 8, 8, 128], strides = [1, 1, 1, 1]} : vector<2x10x10x128xf32> to vector<2x8x8x128xf32>
    %8 = vector.shape_cast %7 : vector<2x8x8x128xf32> to vector<128x128xf32>
    %9 = vector.extract_strided_slice %0 {offsets = [0, 1, 1, 0], sizes = [2, 8, 8, 128], strides = [1, 1, 1, 1]} : vector<2x10x10x128xf32> to vector<2x8x8x128xf32>
    %10 = vector.shape_cast %9 : vector<2x8x8x128xf32> to vector<128x128xf32>
    %11 = vector.extract_strided_slice %0 {offsets = [0, 1, 2, 0], sizes = [2, 8, 8, 128], strides = [1, 1, 1, 1]} : vector<2x10x10x128xf32> to vector<2x8x8x128xf32>
    %12 = vector.shape_cast %11 : vector<2x8x8x128xf32> to vector<128x128xf32>
    %13 = vector.extract_strided_slice %0 {offsets = [0, 2, 0, 0], sizes = [2, 8, 8, 128], strides = [1, 1, 1, 1]} : vector<2x10x10x128xf32> to vector<2x8x8x128xf32>
    %14 = vector.shape_cast %13 : vector<2x8x8x128xf32> to vector<128x128xf32>
    %15 = vector.extract_strided_slice %0 {offsets = [0, 2, 1, 0], sizes = [2, 8, 8, 128], strides = [1, 1, 1, 1]} : vector<2x10x10x128xf32> to vector<2x8x8x128xf32>
    %16 = vector.shape_cast %15 : vector<2x8x8x128xf32> to vector<128x128xf32>
    %17 = vector.extract_strided_slice %0 {offsets = [0, 2, 2, 0], sizes = [2, 8, 8, 128], strides = [1, 1, 1, 1]} : vector<2x10x10x128xf32> to vector<2x8x8x128xf32>
    %18 = vector.shape_cast %17 : vector<2x8x8x128xf32> to vector<128x128xf32>
    %19 = tpu.concatenate %2, %4, %6, %8, %10, %12, %14, %16, %18 in 1 : vector<128x128xf32>, vector<128x128xf32>, vector<128x128xf32>, vector<128x128xf32>, vector<128x128xf32>, vector<128x128xf32>, vector<128x128xf32>, vector<128x128xf32>, vector<128x128xf32> -> vector<128x1152xf32>
    %20 = arith.truncf %19 : vector<128x1152xf32> to vector<128x1152xbf16>
    %c0_3 = arith.constant 0 : index
    %c0_4 = arith.constant 0 : index
    %21 = vector.load %arg1[%c0_3, %c0_4] : memref<1152x128xbf16, #tpu.memory_space<vmem>>, vector<1152x128xbf16>
    %cst = arith.constant dense<0.000000e+00> : vector<128x128xf32>
    %22 = tpu.matmul %20, %21, %cst {dimension_numbers = #tpu.dot_dimension_numbers<[1], [0], [0], [1], [0, 0, 1, 1], [], []>} : vector<128x1152xbf16>, vector<1152x128xbf16>, vector<128x128xf32> -> vector<128x128xf32>
    %c0_5 = arith.constant 0 : index
    %c0_6 = arith.constant 0 : index
    %23 = vector.load %arg2[%c0_5, %c0_6] : memref<1x128xf32, #tpu.memory_space<vmem>>, vector<1x128xf32>
    %24 = vector.broadcast %23 : vector<1x128xf32> to vector<128x128xf32>
    %25 = arith.addf %22, %24 : vector<128x128xf32>
    %cst_7 = arith.constant dense<0.000000e+00> : vector<128xf32>
    %26 = vector.multi_reduction <add>, %25, %cst_7 [0] : vector<128x128xf32> to vector<128xf32>
    %27 = vector.shape_cast %26 : vector<128xf32> to vector<1x128xf32>
    %cst_8 = arith.constant 7.812500e-03 : f32
    %28 = vector.broadcast %cst_8 : f32 to vector<1x128xf32>
    %29 = arith.mulf %27, %28 : vector<1x128xf32>
    %30 = arith.mulf %25, %25 : vector<128x128xf32>
    %cst_9 = arith.constant dense<0.000000e+00> : vector<128xf32>
    %31 = vector.multi_reduction <add>, %30, %cst_9 [0] : vector<128x128xf32> to vector<128xf32>
    %32 = vector.shape_cast %31 : vector<128xf32> to vector<1x128xf32>
    %cst_10 = arith.constant 7.812500e-03 : f32
    %33 = vector.broadcast %cst_10 : f32 to vector<1x128xf32>
    %34 = arith.mulf %32, %33 : vector<1x128xf32>
    %35 = arith.mulf %29, %29 : vector<1x128xf32>
    %36 = arith.subf %34, %35 : vector<1x128xf32>
    %cst_11 = arith.constant 0.000000e+00 : f32
    %37 = vector.broadcast %cst_11 : f32 to vector<1x128xf32>
    %38 = arith.maximumf %36, %37 : vector<1x128xf32>
    %39 = vector.broadcast %29 : vector<1x128xf32> to vector<128x128xf32>
    %40 = arith.subf %25, %39 : vector<128x128xf32>
    %cst_12 = arith.constant 9.99999974E-6 : f32
    %41 = vector.broadcast %cst_12 : f32 to vector<1x128xf32>
    %42 = arith.addf %38, %41 : vector<1x128xf32>
    %43 = math.rsqrt %42 : vector<1x128xf32>
    %44 = vector.broadcast %43 : vector<1x128xf32> to vector<128x128xf32>
    %45 = arith.mulf %40, %44 : vector<128x128xf32>
    %c0_13 = arith.constant 0 : index
    %c0_14 = arith.constant 0 : index
    %46 = vector.load %arg3[%c0_13, %c0_14] : memref<1x128xf32, #tpu.memory_space<vmem>>, vector<1x128xf32>
    %47 = vector.broadcast %46 : vector<1x128xf32> to vector<128x128xf32>
    %48 = arith.mulf %45, %47 : vector<128x128xf32>
    %c0_15 = arith.constant 0 : index
    %c0_16 = arith.constant 0 : index
    %49 = vector.load %arg4[%c0_15, %c0_16] : memref<1x128xf32, #tpu.memory_space<vmem>>, vector<1x128xf32>
    %50 = vector.broadcast %49 : vector<1x128xf32> to vector<128x128xf32>
    %51 = arith.addf %48, %50 : vector<128x128xf32>
    %cst_17 = arith.constant 0.000000e+00 : f32
    %52 = vector.broadcast %cst_17 : f32 to vector<128x128xf32>
    %53 = arith.maximumf %51, %52 : vector<128x128xf32>
    %cst_18 = arith.constant 0.000000e+00 : f32
    %54 = vector.broadcast %cst_18 : f32 to vector<2x10x10x128xf32>
    %c0_19 = arith.constant 0 : index
    %c0_20 = arith.constant 0 : index
    %c0_21 = arith.constant 0 : index
    %c0_22 = arith.constant 0 : index
    %55 = vector.load %arg19[%c0_19, %c0_20, %c0_21, %c0_22] : memref<2x10x10x128xf32, #tpu.memory_space<vmem>>, vector<2x10x10x128xf32>
    tpu.vector_store %arg19[%c0_19, %c0_20, %c0_21, %c0_22], %54 {strides = array<i32>} : memref<2x10x10x128xf32, #tpu.memory_space<vmem>>, vector<2x10x10x128xf32>,
    %56 = vector.shape_cast %53 : vector<128x128xf32> to vector<2x8x8x128xf32>
    %c0_23 = arith.constant 0 : index
    %c1 = arith.constant 1 : index
    %c1_24 = arith.constant 1 : index
    %c0_25 = arith.constant 0 : index
    %57 = vector.load %arg19[%c0_23, %c1, %c1_24, %c0_25] : memref<2x10x10x128xf32, #tpu.memory_space<vmem>>, vector<2x8x8x128xf32>
    tpu.vector_store %arg19[%c0_23, %c1, %c1_24, %c0_25], %56 {strides = array<i32>} : memref<2x10x10x128xf32, #tpu.memory_space<vmem>>, vector<2x8x8x128xf32>,
    %c0_26 = arith.constant 0 : index
    %c0_27 = arith.constant 0 : index
    %c0_28 = arith.constant 0 : index
    %c0_29 = arith.constant 0 : index
    %58 = vector.load %arg19[%c0_26, %c0_27, %c0_28, %c0_29] : memref<2x10x10x128xf32, #tpu.memory_space<vmem>>, vector<2x10x10x128xf32>
    %59 = vector.extract_strided_slice %58 {offsets = [0, 0, 0, 0], sizes = [2, 8, 8, 128], strides = [1, 1, 1, 1]} : vector<2x10x10x128xf32> to vector<2x8x8x128xf32>
    %60 = vector.shape_cast %59 : vector<2x8x8x128xf32> to vector<128x128xf32>
    %61 = vector.extract_strided_slice %58 {offsets = [0, 0, 1, 0], sizes = [2, 8, 8, 128], strides = [1, 1, 1, 1]} : vector<2x10x10x128xf32> to vector<2x8x8x128xf32>
    %62 = vector.shape_cast %61 : vector<2x8x8x128xf32> to vector<128x128xf32>
    %63 = vector.extract_strided_slice %58 {offsets = [0, 0, 2, 0], sizes = [2, 8, 8, 128], strides = [1, 1, 1, 1]} : vector<2x10x10x128xf32> to vector<2x8x8x128xf32>
    %64 = vector.shape_cast %63 : vector<2x8x8x128xf32> to vector<128x128xf32>
    %65 = vector.extract_strided_slice %58 {offsets = [0, 1, 0, 0], sizes = [2, 8, 8, 128], strides = [1, 1, 1, 1]} : vector<2x10x10x128xf32> to vector<2x8x8x128xf32>
    %66 = vector.shape_cast %65 : vector<2x8x8x128xf32> to vector<128x128xf32>
    %67 = vector.extract_strided_slice %58 {offsets = [0, 1, 1, 0], sizes = [2, 8, 8, 128], strides = [1, 1, 1, 1]} : vector<2x10x10x128xf32> to vector<2x8x8x128xf32>
    %68 = vector.shape_cast %67 : vector<2x8x8x128xf32> to vector<128x128xf32>
    %69 = vector.extract_strided_slice %58 {offsets = [0, 1, 2, 0], sizes = [2, 8, 8, 128], strides = [1, 1, 1, 1]} : vector<2x10x10x128xf32> to vector<2x8x8x128xf32>
    %70 = vector.shape_cast %69 : vector<2x8x8x128xf32> to vector<128x128xf32>
    %71 = vector.extract_strided_slice %58 {offsets = [0, 2, 0, 0], sizes = [2, 8, 8, 128], strides = [1, 1, 1, 1]} : vector<2x10x10x128xf32> to vector<2x8x8x128xf32>
    %72 = vector.shape_cast %71 : vector<2x8x8x128xf32> to vector<128x128xf32>
    %73 = vector.extract_strided_slice %58 {offsets = [0, 2, 1, 0], sizes = [2, 8, 8, 128], strides = [1, 1, 1, 1]} : vector<2x10x10x128xf32> to vector<2x8x8x128xf32>
    %74 = vector.shape_cast %73 : vector<2x8x8x128xf32> to vector<128x128xf32>
    %75 = vector.extract_strided_slice %58 {offsets = [0, 2, 2, 0], sizes = [2, 8, 8, 128], strides = [1, 1, 1, 1]} : vector<2x10x10x128xf32> to vector<2x8x8x128xf32>
    %76 = vector.shape_cast %75 : vector<2x8x8x128xf32> to vector<128x128xf32>
    %77 = tpu.concatenate %60, %62, %64, %66, %68, %70, %72, %74, %76 in 1 : vector<128x128xf32>, vector<128x128xf32>, vector<128x128xf32>, vector<128x128xf32>, vector<128x128xf32>, vector<128x128xf32>, vector<128x128xf32>, vector<128x128xf32>, vector<128x128xf32> -> vector<128x1152xf32>
    %78 = arith.truncf %77 : vector<128x1152xf32> to vector<128x1152xbf16>
    %c0_30 = arith.constant 0 : index
    %c0_31 = arith.constant 0 : index
    %79 = vector.load %arg5[%c0_30, %c0_31] : memref<1152x128xbf16, #tpu.memory_space<vmem>>, vector<1152x128xbf16>
    %cst_32 = arith.constant dense<0.000000e+00> : vector<128x128xf32>
    %80 = tpu.matmul %78, %79, %cst_32 {dimension_numbers = #tpu.dot_dimension_numbers<[1], [0], [0], [1], [0, 0, 1, 1], [], []>} : vector<128x1152xbf16>, vector<1152x128xbf16>, vector<128x128xf32> -> vector<128x128xf32>
    %c0_33 = arith.constant 0 : index
    %c0_34 = arith.constant 0 : index
    %81 = vector.load %arg6[%c0_33, %c0_34] : memref<1x128xf32, #tpu.memory_space<vmem>>, vector<1x128xf32>
    %82 = vector.broadcast %81 : vector<1x128xf32> to vector<128x128xf32>
    %83 = arith.addf %80, %82 : vector<128x128xf32>
    %cst_35 = arith.constant dense<0.000000e+00> : vector<128xf32>
    %84 = vector.multi_reduction <add>, %83, %cst_35 [0] : vector<128x128xf32> to vector<128xf32>
    %85 = vector.shape_cast %84 : vector<128xf32> to vector<1x128xf32>
    %cst_36 = arith.constant 7.812500e-03 : f32
    %86 = vector.broadcast %cst_36 : f32 to vector<1x128xf32>
    %87 = arith.mulf %85, %86 : vector<1x128xf32>
    %88 = arith.mulf %83, %83 : vector<128x128xf32>
    %cst_37 = arith.constant dense<0.000000e+00> : vector<128xf32>
    %89 = vector.multi_reduction <add>, %88, %cst_37 [0] : vector<128x128xf32> to vector<128xf32>
    %90 = vector.shape_cast %89 : vector<128xf32> to vector<1x128xf32>
    %cst_38 = arith.constant 7.812500e-03 : f32
    %91 = vector.broadcast %cst_38 : f32 to vector<1x128xf32>
    %92 = arith.mulf %90, %91 : vector<1x128xf32>
    %93 = arith.mulf %87, %87 : vector<1x128xf32>
    %94 = arith.subf %92, %93 : vector<1x128xf32>
    %cst_39 = arith.constant 0.000000e+00 : f32
    %95 = vector.broadcast %cst_39 : f32 to vector<1x128xf32>
    %96 = arith.maximumf %94, %95 : vector<1x128xf32>
    %97 = vector.broadcast %87 : vector<1x128xf32> to vector<128x128xf32>
    %98 = arith.subf %83, %97 : vector<128x128xf32>
    %cst_40 = arith.constant 9.99999974E-6 : f32
    %99 = vector.broadcast %cst_40 : f32 to vector<1x128xf32>
    %100 = arith.addf %96, %99 : vector<1x128xf32>
    %101 = math.rsqrt %100 : vector<1x128xf32>
    %102 = vector.broadcast %101 : vector<1x128xf32> to vector<128x128xf32>
    %103 = arith.mulf %98, %102 : vector<128x128xf32>
    %c0_41 = arith.constant 0 : index
    %c0_42 = arith.constant 0 : index
    %104 = vector.load %arg7[%c0_41, %c0_42] : memref<1x128xf32, #tpu.memory_space<vmem>>, vector<1x128xf32>
    %105 = vector.broadcast %104 : vector<1x128xf32> to vector<128x128xf32>
    %106 = arith.mulf %103, %105 : vector<128x128xf32>
    %c0_43 = arith.constant 0 : index
    %c0_44 = arith.constant 0 : index
    %107 = vector.load %arg8[%c0_43, %c0_44] : memref<1x128xf32, #tpu.memory_space<vmem>>, vector<1x128xf32>
    %108 = vector.broadcast %107 : vector<1x128xf32> to vector<128x128xf32>
    %109 = arith.addf %106, %108 : vector<128x128xf32>
    %110 = arith.truncf %109 : vector<128x128xf32> to vector<128x128xbf16>
    %c0_45 = arith.constant 0 : index
    %c0_46 = arith.constant 0 : index
    %111 = vector.load %arg9[%c0_45, %c0_46] : memref<128x128xbf16, #tpu.memory_space<vmem>>, vector<128x128xbf16>
    %cst_47 = arith.constant dense<0.000000e+00> : vector<128x128xf32>
    %112 = tpu.matmul %110, %111, %cst_47 {dimension_numbers = #tpu.dot_dimension_numbers<[1], [0], [0], [1], [0, 0, 1, 1], [], []>} : vector<128x128xbf16>, vector<128x128xbf16>, vector<128x128xf32> -> vector<128x128xf32>
    %c0_48 = arith.constant 0 : index
    %c0_49 = arith.constant 0 : index
    %113 = vector.load %arg10[%c0_48, %c0_49] : memref<1x128xf32, #tpu.memory_space<vmem>>, vector<1x128xf32>
    %114 = vector.broadcast %113 : vector<1x128xf32> to vector<128x128xf32>
    %115 = arith.addf %112, %114 : vector<128x128xf32>
    %116 = vector.shape_cast %115 : vector<128x128xf32> to vector<2x64x128xf32>
    %c0_50 = arith.constant 0 : index
    %c0_51 = arith.constant 0 : index
    %117 = vector.load %arg11[%c0_50, %c0_51] : memref<128x128xbf16, #tpu.memory_space<vmem>>, vector<128x128xbf16>
    %cst_52 = arith.constant dense<0.000000e+00> : vector<128x128xf32>
    %118 = tpu.matmul %110, %117, %cst_52 {dimension_numbers = #tpu.dot_dimension_numbers<[1], [0], [0], [1], [0, 0, 1, 1], [], []>} : vector<128x128xbf16>, vector<128x128xbf16>, vector<128x128xf32> -> vector<128x128xf32>
    %c0_53 = arith.constant 0 : index
    %c0_54 = arith.constant 0 : index
    %119 = vector.load %arg12[%c0_53, %c0_54] : memref<1x128xf32, #tpu.memory_space<vmem>>, vector<1x128xf32>
    %120 = vector.broadcast %119 : vector<1x128xf32> to vector<128x128xf32>
    %121 = arith.addf %118, %120 : vector<128x128xf32>
    %122 = vector.shape_cast %121 : vector<128x128xf32> to vector<2x64x128xf32>
    %c0_55 = arith.constant 0 : index
    %c0_56 = arith.constant 0 : index
    %123 = vector.load %arg13[%c0_55, %c0_56] : memref<128x128xbf16, #tpu.memory_space<vmem>>, vector<128x128xbf16>
    %cst_57 = arith.constant dense<0.000000e+00> : vector<128x128xf32>
    %124 = tpu.matmul %110, %123, %cst_57 {dimension_numbers = #tpu.dot_dimension_numbers<[1], [0], [0], [1], [0, 0, 1, 1], [], []>} : vector<128x128xbf16>, vector<128x128xbf16>, vector<128x128xf32> -> vector<128x128xf32>
    %c0_58 = arith.constant 0 : index
    %c0_59 = arith.constant 0 : index
    %125 = vector.load %arg14[%c0_58, %c0_59] : memref<1x128xf32, #tpu.memory_space<vmem>>, vector<1x128xf32>
    %126 = vector.broadcast %125 : vector<1x128xf32> to vector<128x128xf32>
    %127 = arith.addf %124, %126 : vector<128x128xf32>
    %128 = vector.shape_cast %127 : vector<128x128xf32> to vector<2x64x128xf32>
    %129 = arith.truncf %116 : vector<2x64x128xf32> to vector<2x64x128xbf16>
    %130 = arith.truncf %122 : vector<2x64x128xf32> to vector<2x64x128xbf16>
    "tpu.trace_start"() <{level = 10 : i32, message = "nic,njc->nij"}> : () -> ()
    %cst_60 = arith.constant dense<0.000000e+00> : vector<2x64x64xf32>
    %131 = tpu.matmul %129, %130, %cst_60 {dimension_numbers = #tpu.dot_dimension_numbers<[2], [2], [1], [1], [0, 0, 0, 1, 1, 1], [0], [0]>} : vector<2x64x128xbf16>, vector<2x64x128xbf16>, vector<2x64x64xf32> -> vector<2x64x64xf32>
    "tpu.trace_stop"() : () -> ()
    %cst_61 = arith.constant dense<0xFF800000> : vector<2x64xf32>
    %132 = vector.multi_reduction <maximumf>, %131, %cst_61 [2] : vector<2x64x64xf32> to vector<2x64xf32>
    %133 = vector.shape_cast %132 : vector<2x64xf32> to vector<2x64x1xf32>
    %134 = vector.broadcast %133 : vector<2x64x1xf32> to vector<2x64x64xf32>
    %135 = arith.subf %131, %134 : vector<2x64x64xf32>
    %136 = math.exp %135 : vector<2x64x64xf32>
    %cst_62 = arith.constant dense<0.000000e+00> : vector<2x64xf32>
    %137 = vector.multi_reduction <add>, %136, %cst_62 [2] : vector<2x64x64xf32> to vector<2x64xf32>
    %138 = vector.shape_cast %137 : vector<2x64xf32> to vector<2x64x1xf32>
    %139 = tpu.reciprocal %138 {approx = true} : vector<2x64x1xf32> -> vector<2x64x1xf32>
    %140 = vector.broadcast %139 : vector<2x64x1xf32> to vector<2x64x64xf32>
    %141 = arith.mulf %136, %140 : vector<2x64x64xf32>
    %142 = arith.truncf %141 : vector<2x64x64xf32> to vector<2x64x64xbf16>
    %143 = arith.truncf %128 : vector<2x64x128xf32> to vector<2x64x128xbf16>
    "tpu.trace_start"() <{level = 10 : i32, message = "nij,njc->nic"}> : () -> ()
    %cst_63 = arith.constant dense<0.000000e+00> : vector<2x64x128xf32>
    %144 = tpu.matmul %142, %143, %cst_63 {dimension_numbers = #tpu.dot_dimension_numbers<[2], [1], [1], [2], [0, 0, 0, 1, 1, 2], [0], [0]>} : vector<2x64x64xbf16>, vector<2x64x128xbf16>, vector<2x64x128xf32> -> vector<2x64x128xf32>
    "tpu.trace_stop"() : () -> ()
    %145 = vector.shape_cast %144 : vector<2x64x128xf32> to vector<128x128xf32>
    %c0_64 = arith.constant 0 : index
    %c0_65 = arith.constant 0 : index
    %146 = memref.load %arg17[%c0_64, %c0_65] : memref<1x1xf32, #tpu.memory_space<smem>>
    %147 = vector.broadcast %146 : f32 to vector<128x128xf32>
    %148 = arith.mulf %147, %145 : vector<128x128xf32>
    %149 = arith.addf %148, %109 : vector<128x128xf32>
    %c0_66 = arith.constant 0 : index
    %c1_67 = arith.constant 1 : index
    %c1_68 = arith.constant 1 : index
    %c0_69 = arith.constant 0 : index
    %150 = vector.load %arg0[%c0_66, %c1_67, %c1_68, %c0_69] : memref<2x10x10x128xf32, #tpu.memory_space<vmem>>, vector<2x8x8x128xf32>
    %151 = vector.shape_cast %150 : vector<2x8x8x128xf32> to vector<128x128xf32>
    %152 = arith.truncf %151 : vector<128x128xf32> to vector<128x128xbf16>
    %c0_70 = arith.constant 0 : index
    %c0_71 = arith.constant 0 : index
    %153 = vector.load %arg15[%c0_70, %c0_71] : memref<128x128xbf16, #tpu.memory_space<vmem>>, vector<128x128xbf16>
    %cst_72 = arith.constant dense<0.000000e+00> : vector<128x128xf32>
    %154 = tpu.matmul %152, %153, %cst_72 {dimension_numbers = #tpu.dot_dimension_numbers<[1], [0], [0], [1], [0, 0, 1, 1], [], []>} : vector<128x128xbf16>, vector<128x128xbf16>, vector<128x128xf32> -> vector<128x128xf32>
    %c0_73 = arith.constant 0 : index
    %c0_74 = arith.constant 0 : index
    %155 = vector.load %arg16[%c0_73, %c0_74] : memref<1x128xf32, #tpu.memory_space<vmem>>, vector<1x128xf32>
    %156 = vector.broadcast %155 : vector<1x128xf32> to vector<128x128xf32>
    %157 = arith.addf %154, %156 : vector<128x128xf32>
    %158 = arith.addf %149, %157 : vector<128x128xf32>
    %cst_75 = arith.constant 0.000000e+00 : f32
    %159 = vector.broadcast %cst_75 : f32 to vector<128x128xf32>
    %160 = arith.maximumf %158, %159 : vector<128x128xf32>
    %c0_76 = arith.constant 0 : index
    %c0_77 = arith.constant 0 : index
    %161 = vector.load %arg18[%c0_76, %c0_77] : memref<128x128xf32, #tpu.memory_space<vmem>>, vector<128x128xf32>
    tpu.vector_store %arg18[%c0_76, %c0_77], %160 {strides = array<i32>} : memref<128x128xf32, #tpu.memory_space<vmem>>, vector<128x128xf32>,
    return
  }
}

</mosaic_0001>

<bundles_post_ra>
// kernel: residual_block_forward.1
= control target key start
LH: loop header
LB: loop body
LE: loop exit
PB: predicated region body
PF: predicated region fallthrough
CT: control target
= control target key end

     0   :  { %vm133_vm0 = vcmask 1046528   ;;  %vm198_vm1 = vcmask 1045504   ;;  %vm3804_vm2 = vcmask 523264   ;;  %s8551_s1 = inlined_call_operand.vmem [shape: bf16[1152,128], index: 1, kind: input, shape index: {}]   ;;  %s8552_s0 = inlined_call_operand.vmem [shape: f32[2,10,10,128], index: 0, kind: input, shape index: {}]   ;;  %s8553_s2 = inlined_call_operand.vmem [shape: f32[1,128], index: 2, kind: input, shape index: {}]   ;;  %s8554_s5 = inlined_call_operand.vmem [shape: bf16[1152,128], index: 5, kind: input, shape index: {}]   ;;  %s8555_s3 = inlined_call_operand.vmem [shape: f32[1,128], index: 3, kind: input, shape index: {}]   ;;  %s8556_s4 = inlined_call_operand.vmem [shape: f32[1,128], index: 4, kind: input, shape index: {}]   ;;  %s8557_s6 = inlined_call_operand.vmem [shape: f32[1,128], index: 6, kind: input, shape index: {}]   ;;  %s8558_s9 = inlined_call_operand.vmem [shape: bf16[128,128], index: 9, kind: input, shape index: {}]   ;;  %s8559_s11 = inlined_call_operand.vmem [shape: bf16[128,128], index: 11, kind: input, shape index: {}]   ;;  %s8560_s13 = inlined_call_operand.vmem [shape: bf16[128,128], index: 13, kind: input, shape index: {}]   ;;  %s8561_s7 = inlined_call_operand.vmem [shape: f32[1,128], index: 7, kind: input, shape index: {}]   ;;  %s8562_s8 = inlined_call_operand.vmem [shape: f32[1,128], index: 8, kind: input, shape index: {}]   ;;  %s8563_s10 = inlined_call_operand.vmem [shape: f32[1,128], index: 10, kind: input, shape index: {}]   ;;  %s8564_s12 = inlined_call_operand.vmem [shape: f32[1,128], index: 12, kind: input, shape index: {}]   ;;  %s8565_s14 = inlined_call_operand.vmem [shape: f32[1,128], index: 14, kind: input, shape index: {}]   ;;  %s8566_s15 = inlined_call_operand.vmem [shape: bf16[128,128], index: 15, kind: input, shape index: {}]   ;;  %s8567_s16 = inlined_call_operand.vmem [shape: f32[1,128], index: 16, kind: input, shape index: {}]   ;;  %s8568_s17 = inlined_call_operand.<no memory space> [shape: f32[1,1], index: 17, kind: input, shape index: {}]   ;;  %s8569_s18 = inlined_call_operand.vmem [shape: f32[128,128], index: 18, kind: output, shape index: {}]  }
   0x1   :  { %8578 = sst [smem:[#allocation22_spill]] %s8551_s1 }
   0x2   :  { %8579 = sst [smem:[#allocation23_spill]] %s8552_s0 }
   0x3   :  { %8580 = sst [smem:[#allocation24_spill]] %s8553_s2 }
   0x4   :  { %s8581_s29 = sld [smem:[#allocation22_spill]] }
   0x5   :  { %s8582_s23 = sld [smem:[#allocation23_spill]] }
   0xa   :  { %v5553_v0 = vld [vmem:[%s8581_s29 + $0x78] sm:$0xff]   ;;  %v5555_v2 = vld [vmem:[%s8581_s29 + $0x70] sm:$0xff]   ;;  %v5557_v4 = vld [vmem:[%s8581_s29 + $0x68] sm:$0xff]  }
   0xb   :  { %v5554_v1 = vld [vmem:[%s8581_s29 + $0x38] sm:$0xff]   ;;  %5536 = vmatprep.subr.bf16.mxu1 %v5553_v0  ;;  %4640 = vmatprep.subr.bf16.mxu0 %v5553_v0  ;;  %v5556_v3 = vld [vmem:[%s8581_s29 + $0x30] sm:$0xff]   ;;  %v5558_v5 = vld [vmem:[%s8581_s29 + $0x28] sm:$0xff]  }
   0xc   :  { %5544 = vmatpush3.bf16.msra.mxu1 %v5554_v1  ;;  %4641 = vmatpush3.bf16.msra.mxu0 %v5554_v1  ;;  %v5559_v6 = vld [vmem:[%s8581_s29 + $0x60] sm:$0xff]   ;;  %v5561_v8 = vld [vmem:[%s8581_s29 + $0x58] sm:$0xff]   ;;  %v5563_v10 = vld [vmem:[%s8581_s29 + $0x50] sm:$0xff]  }
   0xd   :  { %5537 = vmatprep.subr.bf16.mxu1 %v5555_v2  ;;  %4642 = vmatprep.subr.bf16.mxu0 %v5555_v2  ;;  %v5560_v7 = vld [vmem:[%s8581_s29 + $0x20] sm:$0xff]   ;;  %v5562_v9 = vld [vmem:[%s8581_s29 + $0x18] sm:$0xff]   ;;  %v82_v12 = vld [vmem:[%s8582_s23 + $0xa8] sm:$0x3] }
   0xe   :  { %v5931_v11 = vld [vmem:[%s8582_s23 + $0xa0] sm:$0xff]  ;;  %v5939_v13 = vld [vmem:[%s8582_s23 + $0xb0] sm:$0xff]  ;;  %v84_v14 = vld [vmem:[%s8582_s23 + $0xb8] sm:$0x3]  ;;  %v159_v18 = vrot.slane %v82_v12, 1  ;;  %v224_v27 = vrot.slane %v82_v12, 2 }
   0xf   :  { %v5947_v15 = vld [vmem:[%s8582_s23 + $0xc0] sm:$0xff]  ;;  %v5952_v16 = vld [vmem:[%s8582_s23 + $0xc8] sm:$0x3]  ;;  %v158_v17 = vrot.slane %v5931_v11, 1  ;;  %v161_v19 = vrot.slane %v5939_v13, 1  ;;  %v162_v20 = vrot.slane %v84_v14, 1  ;;  %v330_v61 = vpack.c.bf16 %v5939_v13, %v5931_v11 }
  0x10   :  { %5545 = vmatpush3.bf16.msra.mxu1 %v5556_v3  ;;  %4643 = vmatpush3.bf16.msra.mxu0 %v5556_v3  ;;  %v164_v21 = vrot.slane %v5947_v15, 1  ;;  %v5564_v22 = vld [vmem:[%s8581_s29 + $0x10] sm:$0xff]   ;;  %v5565_v23 = vld [vmem:[%s8581_s29 + $0x48] sm:$0xff]   ;;  %v165_v24 = vrot.slane %v5952_v16, 1  ;;  %v5971_v28 = vld [vmem:[%s8582_s23] sm:$0xff]  ;;  %v223_v35 = vrot.slane %v5931_v11, 2 }
  0x11   :  { %5538 = vmatprep.subr.bf16.mxu1 %v5557_v4  ;;  %4644 = vmatprep.subr.bf16.mxu0 %v5557_v4  ;;  %v160_v25 = vsel %vm133_vm0, %v158_v17, %v159_v18  ;;  %v5966_v26 = vsel %vm133_vm0, %v161_v19, %v162_v20  ;;  %v5976_v29 = vld [vmem:[%s8582_s23 + $0x8] sm:$0x3]  ;;  %v5981_v30 = vld [vmem:[%s8582_s23 + $0x10] sm:$0xff]  ;;  %v5990_v33 = vld [vmem:[%s8582_s23 + $0x18] sm:$0x3]  ;;  %v134_v34 = vrot.slane %v5971_v28, 1 }
  0x12   :  { %v5984_v31 = vsel %vm133_vm0, %v164_v21, %v165_v24  ;;  %v331_v32 = vpack.c.bf16 %v5966_v26, %v160_v25  ;;  %v135_v37 = vrot.slane %v5976_v29, 1  ;;  %v137_v38 = vrot.slane %v5981_v30, 1  ;;  %v5566_v40 = vld [vmem:[%s8581_s29 + $0x8] sm:$0xff]   ;;  %v5567_v43 = vld [vmem:[%s8581_s29 + $0x40] sm:$0xff]   ;;  %v5569_v51 = vld [vmem:[%s8581_s29 + $0xf8] sm:$0xff]  }
  0x13   :  { %v138_v39 = vrot.slane %v5990_v33, 1  ;;  %v227_v41 = vrot.slane %v84_v14, 2  ;;  %v226_v42 = vrot.slane %v5939_v13, 2  ;;  %v5568_v46 = vld [vmem:[%s8581_s29] sm:$0xff]   ;;  %v6022_v49 = vld [vmem:[%s8582_s23 + $0x28] sm:$0x3]  ;;  %v6025_v50 = vsel %vm198_vm1, %v223_v35, %v224_v27 }
  0x14   :  { %5546 = vmatpush3.bf16.msra.mxu1 %v5558_v5  ;;  %4645 = vmatpush3.bf16.msra.mxu0 %v5558_v5  ;;  %v136_v44 = vsel %vm133_vm0, %v134_v34, %v135_v37  ;;  %v6016_v47 = vld [vmem:[%s8582_s23 + $0x20] sm:$0xff]  ;;  %v5571_v53 = vld [vmem:[%s8581_s29 + $0x178] sm:$0xff]   ;;  %v141_v56 = vrot.slane %v6022_v49, 1  ;;  %v6049_v59 = vld [vmem:[%s8582_s23 + $0xd0] sm:$0xff]  ;;  %v303_v62 = vpack.c.bf16 %v5981_v30, %v5971_v28 }
  0x15   :  { %5539 = vmatprep.subr.bf16.mxu1 %v5559_v6  ;;  %4646 = vmatprep.subr.bf16.mxu0 %v5559_v6  ;;  %v6008_v45 = vsel %vm133_vm0, %v137_v38, %v138_v39  ;;  %v6031_v52 = vsel %vm198_vm1, %v226_v42, %v227_v41  ;;  %v140_v55 = vrot.slane %v6016_v47, 1  ;;  %v5570_v57 = vld [vmem:[%s8581_s29 + $0xb8] sm:$0xff]   ;;  %v167_v63 = vrot.slane %v6049_v59, 1  ;;  %v5573_v1 = vld [vmem:[%s8581_s29 + $0xf0] sm:$0xff]   ;;  %v5577_v18 = vld [vmem:[%s8581_s29 + $0xe8] sm:$0xff]  }
  0x16   :  { %1004 = vmatprep.mubr.bf16.mxu1 %v331_v32  ;;  %v304_v48 = vpack.c.bf16 %v6008_v45, %v136_v44  ;;  %v5572_v58 = vld [vmem:[%s8581_s29 + $0x138] sm:$0xff]   ;;  %v232_v2 = vrot.slane %v6049_v59, 2  ;;  %v5575_v3 = vld [vmem:[%s8581_s29 + $0x170] sm:$0xff]   ;;  %v5579_v21 = vld [vmem:[%s8581_s29 + $0x168] sm:$0xff]   ;;  %v306_v54 = vpack.c.bf16 %v6016_v47, %v5981_v30 }
  0x17   :  { %v88_v60 = vld [vmem:[%s8582_s23 + $0xd8] sm:$0x3]  ;;  %v6072_v5 = vld [vmem:[%s8582_s23 + $0x30] sm:$0xff]  ;;  %v5580_v25 = vld [vmem:[%s8581_s29 + $0x128] sm:$0xff]  }
  0x18   :  { %5547 = vmatpush3.bf16.msra.mxu1 %v5560_v7  ;;  %4647 = vmatpush3.bf16.msra.mxu0 %v5560_v7  ;;  %v168_v0 = vrot.slane %v88_v60, 1  ;;  %v6077_v6 = vld [vmem:[%s8582_s23 + $0x38] sm:$0x3]  ;;  %v233_v7 = vrot.slane %v88_v60, 2  ;;  %v143_v11 = vrot.slane %v6072_v5, 1  ;;  %v5576_v14 = vld [vmem:[%s8581_s29 + $0x130] sm:$0xff]   ;;  %v6121_v24 = vpack.c.bf16 %v6072_v5, %v6016_v47 }
  0x19   :  { %5540 = vmatprep.subr.bf16.mxu1 %v5561_v8  ;;  %4648 = vmatprep.subr.bf16.mxu0 %v5561_v8  ;;  %v6080_v8 = vsel %vm133_vm0, %v140_v55, %v141_v56  ;;  %v144_v12 = vrot.slane %v6077_v6, 1  ;;  %v5581_v27 = vld [vmem:[%s8581_s29 + $0xe0] sm:$0xff]   ;;  %v6137_v34 = vld [vmem:[%s8582_s23 + $0xe8] sm:$0x3]  ;;  %v6145_v37 = vld [vmem:[%s8582_s23 + $0xf0] sm:$0xff] }
  0x1a   :  { %972 = vmatprep.mubr.bf16.mxu0 %v304_v48  ;;  %v6067_v4 = vsel %vm133_vm0, %v167_v63, %v168_v0  ;;  %v6095_v17 = vsel %vm198_vm1, %v232_v2, %v233_v7  ;;  %v6132_v32 = vld [vmem:[%s8582_s23 + $0xe0] sm:$0xff]  ;;  %v6150_v38 = vld [vmem:[%s8582_s23 + $0xf8] sm:$0x3]  ;;  %v173_v42 = vrot.slane %v6145_v37, 1  ;;  %v6180_v56 = vld [vmem:[%s8582_s23 + $0x48] sm:$0x3] }
  0x1b   :  { %v6101_v19 = vsel %vm133_vm0, %v143_v11, %v144_v12  ;;  %v5583_v35 = vld [vmem:[%s8581_s29 + $0x160] sm:$0xff]   ;;  %v170_v39 = vrot.slane %v6132_v32, 1  ;;  %v147_v0 = vrot.slane %v6180_v56, 1  ;;  %v5587_v7 = vld [vmem:[%s8581_s29 + $0x158] sm:$0xff]   ;;  %v203_v12 = vrot.slane %v5990_v33, 2  ;;  %v5589_v33 = vld [vmem:[%s8581_s29 + $0xd0] sm:$0xff]  }
  0x1c   :  { %5548 = vmatpush3.bf16.msra.mxu1 %v5562_v9  ;;  %4649 = vmatpush3.bf16.msra.mxu0 %v5562_v9  ;;  %v5574_v9 = vld [vmem:[%s8581_s29 + $0xb0] sm:$0xff]   ;;  %v6105_v20 = vpack.c.bf16 %v6101_v19, %v6080_v8  ;;  %v5582_v41 = vld [vmem:[%s8581_s29 + $0xa0] sm:$0xff]  }
  0x1d   :  { %5541 = vmatprep.subr.bf16.mxu1 %v5563_v10  ;;  %4650 = vmatprep.subr.bf16.mxu0 %v5563_v10  ;;  %v6087_v10 = vpack.c.bf16 %v6067_v4, %v5984_v31  ;;  %v6175_v55 = vld [vmem:[%s8582_s23 + $0x40] sm:$0xff] }
  0x1e   :  { %v146_v63 = vrot.slane %v6175_v55, 1 }
  0x20   :  { %5549 = vmatpush3.bf16.msra.mxu1 %v5564_v22  ;;  %4651 = vmatpush3.bf16.msra.mxu0 %v5564_v22  ;;  %v5578_v22 = vld [vmem:[%s8581_s29 + $0xa8] sm:$0xff]   ;;  %v6217_v11 = vsel %vm133_vm0, %v146_v63, %v147_v0 }
  0x21   :  { %5542 = vmatprep.subr.bf16.mxu1 %v5565_v23  ;;  %4652 = vmatprep.subr.bf16.mxu0 %v5565_v23  ;;  %v6116_v23 = vpack.c.bf16 %v6049_v59, %v5947_v15 }
  0x24   :  { %5550 = vmatpush3.bf16.msra.mxu1 %v5566_v40  ;;  %4653 = vmatpush3.bf16.msra.mxu0 %v5566_v40  ;;  %v171_v40 = vrot.slane %v6137_v34, 1 }
  0x25   :  { %5543 = vmatprep.subr.bf16.mxu1 %v5567_v43  ;;  %4654 = vmatprep.subr.bf16.mxu0 %v5567_v43  ;;  %v174_v43 = vrot.slane %v6150_v38, 1 }
  0x26   :  { %v6162_v44 = vsel %vm133_vm0, %v170_v39, %v171_v40  ;;  %v5591_v39 = vld [vmem:[%s8581_s29 + $0x150] sm:$0xff]   ;;  %v6250_v40 = vld [vmem:[%s8582_s23 + $0x100] sm:$0xff] }
  0x28   :  { %5551 = vmatpush3.bf16.msra.mxu1 %v5568_v46  ;;  %4655 = vmatpush3.bf16.msra.mxu0 %v5568_v46  ;;  %v5584_v46 = vld [vmem:[%s8581_s29 + $0x120] sm:$0xff]  }
  0x29   :  { %4704 = vmatprep.subr.bf16.mxu1 %v5569_v51  ;;  %4768 = vmatprep.subr.bf16.mxu0 %v5571_v53  ;;  %v202_v51 = vrot.slane %v5981_v30, 2  ;;  %v6170_v53 = vsel %vm133_vm0, %v173_v42, %v174_v43  ;;  %v239_v42 = vrot.slane %v6150_v38, 2  ;;  %v6258_v43 = vld [vmem:[%s8582_s23 + $0x108] sm:$0x3] }
  0x2a   :  { %v6191_v60 = vpack.c.bf16 %v6170_v53, %v6162_v44  ;;  %v177_v38 = vrot.slane %v6258_v43, 1 }
  0x2b   :  { %1005 = vmatmul.mubr.bf16.vlgmr.msra.gmra.mxu1 %v330_v61  ;;  %973 = vmatmul.mubr.bf16.vlgmr.msra.gmra.mxu0 %v303_v62  ;;  %v5585_v61 = vld [vmem:[%s8581_s29 + $0xd8] sm:$0xff]   ;;  %v204_v48 = vsel %vm198_vm1, %v202_v51, %v203_v12  ;;  %v5596_v51 = vld [vmem:[%s8581_s29 + $0x108] sm:$0xff]   ;;  %v209_v12 = vrot.slane %v6077_v6, 2  ;;  %v5598_v6 = vld [vmem:[%s8581_s29 + $0x80] sm:$0xff]  }
  0x2c   :  { %4705 = vmatpush3.bf16.msra.mxu1 %v5570_v57  ;;  %4769 = vmatpush3.bf16.msra.mxu0 %v5572_v58  ;;  %v6185_v57 = vld [vmem:[%s8582_s23 + $0x50] sm:$0xff]  ;;  %8583 = vst [vmem:[#allocation4_spill] sm:$0xff] %v6191_v60  ;;  %v6199_v62 = vld [vmem:[%s8582_s23 + $0x58] sm:$0x3]  ;;  %v5593_v58 = vld [vmem:[%s8581_s29 + $0xc8] sm:$0xff]  }
  0x2d   :  { %4706 = vmatprep.subr.bf16.mxu1 %v5573_v1  ;;  %4770 = vmatprep.subr.bf16.mxu0 %v5575_v3  ;;  %v149_v1 = vrot.slane %v6185_v57, 1  ;;  %v150_v2 = vrot.slane %v6199_v62, 1  ;;  %v5586_v3 = vld [vmem:[%s8581_s29 + $0x98] sm:$0xff]  }
  0x2e   :  { %1012 = vmatprep.mubr.bf16.mxu1 %v6087_v10  ;;  %980 = vmatprep.mubr.bf16.mxu0 %v6105_v20 }
  0x30   :  { %4707 = vmatpush3.bf16.msra.mxu1 %v5574_v9  ;;  %4771 = vmatpush3.bf16.msra.mxu0 %v5576_v14  ;;  %v6214_v9 = vpack.c.bf16 %v6145_v37, %v6132_v32  ;;  %v6221_v14 = vsel %vm133_vm0, %v149_v1, %v150_v2  ;;  %v5592_v1 = vld [vmem:[%s8581_s29 + $0x110] sm:$0xff]  }
  0x31   :  { %4708 = vmatprep.subr.bf16.mxu1 %v5577_v18  ;;  %4772 = vmatprep.subr.bf16.mxu0 %v5579_v21  ;;  %v6225_v18 = vpack.c.bf16 %v6185_v57, %v6175_v55  ;;  %v5588_v21 = vld [vmem:[%s8581_s29 + $0x118] sm:$0xff]  }
  0x32   :  { %8584 = vst [vmem:[#allocation5_spill] sm:$0xff] %v6214_v9 }
  0x33   :  { %1013 = vmatmul.mubr.bf16.gmra.mxu1 %v6116_v23  ;;  %981 = vmatmul.mubr.bf16.gmra.mxu0 %v6121_v24 }
  0x34   :  { %4709 = vmatpush3.bf16.msra.mxu1 %v5578_v22  ;;  %4773 = vmatpush3.bf16.msra.mxu0 %v5580_v25  ;;  %v6232_v22 = vpack.c.bf16 %v6221_v14, %v6217_v11  ;;  %v205_v25 = vrot.slane %v6016_v47, 2 }
  0x35   :  { %4710 = vmatprep.subr.bf16.mxu1 %v5581_v27  ;;  %4774 = vmatprep.subr.bf16.mxu0 %v5583_v35  ;;  %v5590_v27 = vld [vmem:[%s8581_s29 + $0x90] sm:$0xff]   ;;  %v238_v35 = vrot.slane %v6145_v37, 2 }
  0x36   :  { %1020 = vmatprep.mubr.bf16.mxu1 %v6191_v60  ;;  %988 = vmatprep.mubr.bf16.mxu0 %v6232_v22  ;;  %v208_v60 = vrot.slane %v6072_v5, 2 }
  0x37   :  { %v6278_v2 = vsel %vm198_vm1, %v238_v35, %v239_v42  ;;  %v6297_v35 = vld [vmem:[%s8582_s23 + $0x60] sm:$0xff]  ;;  %v6311_v42 = vld [vmem:[%s8582_s23 + $0x70] sm:$0xff] }
  0x38   :  { %4711 = vmatpush3.bf16.msra.mxu1 %v5582_v41  ;;  %4775 = vmatpush3.bf16.msra.mxu0 %v5584_v46  ;;  %v206_v41 = vrot.slane %v6022_v49, 2  ;;  %v6263_v46 = vld [vmem:[%s8582_s23 + $0x110] sm:$0xff]  ;;  %v176_v49 = vrot.slane %v6250_v40, 1  ;;  %v6345_v30 = vpack.c.bf16 %v6311_v42, %v6297_v35 }
  0x39   :  { %4712 = vmatprep.subr.bf16.mxu1 %v5585_v61  ;;  %4776 = vmatprep.subr.bf16.mxu0 %v5587_v7  ;;  %v6268_v61 = vld [vmem:[%s8582_s23 + $0x118] sm:$0x3]  ;;  %v179_v63 = vrot.slane %v6263_v46, 1 }
  0x3a   :  { %v180_v0 = vrot.slane %v6268_v61, 1  ;;  %v6282_v7 = vsel %vm133_vm0, %v176_v49, %v177_v38  ;;  %v6316_v49 = vld [vmem:[%s8582_s23 + $0x78] sm:$0x3]  ;;  %v152_v38 = vrot.slane %v6297_v35, 1 }
  0x3b   :  { %1021 = vmatmul.mubr.bf16.gmra.mxu1 %v6214_v9  ;;  %989 = vmatmul.mubr.bf16.gmra.mxu0 %v6225_v18  ;;  %v156_v36 = vrot.slane %v6316_v49, 1 }
  0x3c   :  { %4713 = vmatpush3.bf16.msra.mxu1 %v5586_v3  ;;  %4777 = vmatpush3.bf16.msra.mxu0 %v5588_v21  ;;  %v200_v3 = vrot.slane %v5976_v29, 2  ;;  %v6285_v21 = vsel %vm133_vm0, %v179_v63, %v180_v0  ;;  %v6302_v29 = vld [vmem:[%s8582_s23 + $0x68] sm:$0x3]  ;;  %v155_v0 = vrot.slane %v6311_v42, 1 }
  0x3d   :  { %4714 = vmatprep.subr.bf16.mxu1 %v5589_v33  ;;  %4778 = vmatprep.subr.bf16.mxu0 %v5591_v39  ;;  %v6289_v33 = vpack.c.bf16 %v6263_v46, %v6250_v40  ;;  %v6306_v39 = vpack.c.bf16 %v6285_v21, %v6282_v7  ;;  %v153_v63 = vrot.slane %v6302_v29, 1 }
  0x3e   :  { %v6341_v47 = vsel %vm133_vm0, %v155_v0, %v156_v36  ;;  %v5597_v36 = vld [vmem:[%s8581_s29 + $0xc0] sm:$0xff]  }
  0x3f   :  { %1028 = vmatprep.mubr.bf16.mxu1 %v6306_v39  ;;  %v6332_v9 = vsel %vm133_vm0, %v152_v38, %v153_v63  ;;  %v8585_v38 = vrot.slane %v5971_v28, 2  ;;  %v211_v63 = vrot.slane %v6175_v55, 2  ;;  %v5600_v0 = vld [vmem:[%s8581_s29 + $0x100] sm:$0xff]  }
  0x40   :  { %4715 = vmatpush3.bf16.msra.mxu1 %v5590_v27  ;;  %v5594_v27 = vld [vmem:[%s8581_s29 + $0x88] sm:$0xff]   ;;  %4779 = vmatpush3.bf16.msra.mxu0 %v5592_v1  ;;  %v207_v1 = vsel %vm198_vm1, %v205_v25, %v206_v41  ;;  %v6356_v41 = vpack.c.bf16 %v6341_v47, %v6332_v9 }
  0x41   :  { %4716 = vmatprep.subr.bf16.mxu1 %v5593_v58  ;;  %v5595_v58 = vld [vmem:[%s8581_s29 + $0x148] sm:$0xff]   ;;  %v201_v25 = vsel %vm198_vm1, %v8585_v38, %v200_v3  ;;  %v308_v28 = vpack.c.bf16 %v207_v1, %v204_v48  ;;  %v212_v3 = vrot.slane %v6180_v56, 2  ;;  %v312_v56 = vpack.c.bf16 %v6175_v55, %v6072_v5 }
  0x42   :  { %4780 = vmatprep.subr.bf16.mxu0 %v5595_v58  ;;  %996 = vmatprep.mubr.bf16.mxu0 %v6356_v41  ;;  %v305_v58 = vpack.c.bf16 %v204_v48, %v201_v25  ;;  %v210_v38 = vsel %vm198_vm1, %v208_v60, %v209_v12  ;;  %v5603_v48 = vld [vmem:[%s8581_s29 + $0x1f0] sm:$0xff]   ;;  %v307_v25 = vpack.c.bf16 %v6080_v8, %v6008_v45  ;;  %v214_v5 = vrot.slane %v6185_v57, 2 }
  0x43   :  { %1029 = vmatmul.mubr.bf16.gmra.mxu1 %v6289_v33  ;;  %997 = vmatmul.mubr.bf16.gmra.mxu0 %v6345_v30  ;;  %v215_v55 = vrot.slane %v6199_v62, 2  ;;  %v5604_v60 = vld [vmem:[%s8581_s29 + $0x1b0] sm:$0xff]   ;;  %v217_v12 = vrot.slane %v6297_v35, 2  ;;  %v218_v45 = vrot.slane %v6302_v29, 2  ;;  %v6399_v8 = vpack.c.bf16 %v210_v38, %v207_v1  ;;  %v5606_v62 = vld [vmem:[%s8581_s29 + $0x1a8] sm:$0xff]   ;;  %v5607_v29 = vld [vmem:[%s8581_s29 + $0x1e0] sm:$0xff]  }
  0x44   :  { %4717 = vmatpush3.bf16.msra.mxu1 %v5594_v27  ;;  %4781 = vmatpush3.bf16.msra.mxu0 %v5596_v51  ;;  %v5599_v27 = vld [vmem:[%s8581_s29 + $0x140] sm:$0xff]   ;;  %v5602_v51 = vld [vmem:[%s8581_s29 + $0x1b8] sm:$0xff]  }
  0x45   :  { %1069 = vmatprep.mubr.bf16.mxu1 %v306_v54  ;;  %4718 = vmatprep.subr.bf16.mxu1 %v5597_v36  ;;  %v5601_v54 = vld [vmem:[%s8581_s29 + $0x1f8] sm:$0xff]   ;;  %v213_v36 = vsel %vm198_vm1, %v211_v63, %v212_v3  ;;  %v5605_v63 = vld [vmem:[%s8581_s29 + $0x1e8] sm:$0xff]   ;;  %v6409_v3 = vld [vmem:[%s8582_s23 + $0x80] sm:$0xff]  ;;  %v216_v1 = vsel %vm198_vm1, %v214_v5, %v215_v55 }
  0x46   :  { %4782 = vmatprep.subr.bf16.mxu0 %v5599_v27  ;;  %1166 = vmatprep.mubr.bf16.mxu0 %v308_v28  ;;  %v318_v28 = vpack.c.bf16 %v6297_v35, %v6185_v57  ;;  %v219_v27 = vsel %vm198_vm1, %v217_v12, %v218_v45  ;;  %v220_v57 = vrot.slane %v6311_v42, 2  ;;  %v5610_v35 = vld [vmem:[%s8581_s29 + $0x238] sm:$0xff]   ;;  %v324_v5 = vpack.c.bf16 %v6409_v3, %v6311_v42  ;;  %v5617_v45 = vld [vmem:[%s8581_s29 + $0x220] sm:$0xff]  }
  0x47   :  { %v5611_v55 = vld [vmem:[%s8581_s29 + $0x198] sm:$0xff]   ;;  %v229_v12 = vrot.slane %v5947_v15, 2  ;;  %v319_v42 = vpack.c.bf16 %v6332_v9, %v6221_v14  ;;  %v5616_v9 = vld [vmem:[%s8581_s29 + $0x1c8] sm:$0xff]  }
  0x48   :  { %4719 = vmatpush3.bf16.msra.mxu1 %v5598_v6  ;;  %4783 = vmatpush3.bf16.msra.mxu0 %v5600_v0  ;;  %v314_v6 = vpack.c.bf16 %v213_v36, %v210_v38  ;;  %v78_v0 = vld [vmem:[%s8582_s23 + $0x88] sm:$0x3]  ;;  %v275_v38 = vrot.slane %v6409_v3, 2 }
  0x49   :  { %4832 = vmatprep.subr.bf16.mxu1 %v5601_v54  ;;  %v221_v54 = vrot.slane %v6316_v49, 2  ;;  %5280 = vmatprep.subr.bf16.mxu0 %v5610_v35  ;;  %v5615_v49 = vld [vmem:[%s8581_s29 + $0x228] sm:$0xff]  }
  0x4b   :  { %1070 = vmatmul.mubr.bf16.vlgmr.msra.gmra.mxu1 %v305_v58  ;;  %1167 = vmatmul.mubr.bf16.vlgmr.msra.gmra.mxu0 %v307_v25  ;;  %v313_v58 = vpack.c.bf16 %v6217_v11, %v6101_v19  ;;  %v276_v25 = vrot.slane %v78_v0, 2  ;;  %v5613_v19 = vld [vmem:[%s8581_s29 + $0x230] sm:$0xff]   ;;  %v6437_v11 = vpack.c.bf16 %v216_v1, %v213_v36 }
  0x4c   :  { %4833 = vmatpush3.bf16.msra.mxu1 %v5602_v51  ;;  %1077 = vmatprep.mubr.bf16.mxu1 %v312_v56  ;;  %v5608_v56 = vld [vmem:[%s8581_s29 + $0x1a0] sm:$0xff]   ;;  %v320_v51 = vpack.c.bf16 %v219_v27, %v216_v1  ;;  %v5612_v36 = vld [vmem:[%s8581_s29 + $0x1d0] sm:$0xff]   ;;  %v230_v1 = vrot.slane %v5952_v16, 2 }
  0x4d   :  { %4834 = vmatprep.subr.bf16.mxu1 %v5603_v48  ;;  %1174 = vmatprep.mubr.bf16.mxu0 %v314_v6  ;;  %v5609_v48 = vld [vmem:[%s8581_s29 + $0x1d8] sm:$0xff]   ;;  %v222_v6 = vsel %vm198_vm1, %v220_v57, %v221_v54 }
  0x4e   :  { %5281 = vmatpush3.bf16.msra.mxu0 %v5610_v35  ;;  %v6470_v14 = vpack.c.bf16 %v222_v6, %v219_v27  ;;  %v5619_v57 = vld [vmem:[%s8581_s29 + $0x218] sm:$0xff]   ;;  %v333_v35 = vpack.c.bf16 %v5947_v15, %v5939_v13  ;;  %v231_v27 = vsel %vm198_vm1, %v229_v12, %v230_v1  ;;  %v5622_v15 = vld [vmem:[%s8581_s29 + $0x180] sm:$0xff]  }
  0x4f   :  { %5282 = vmatprep.subr.bf16.mxu0 %v5613_v19  ;;  %v335_v13 = vpack.c.bf16 %v231_v27, %v6031_v52 }
  0x50   :  { %4835 = vmatpush3.bf16.msra.mxu1 %v5604_v60  ;;  %v6449_v60 = vsel %vm198_vm1, %v275_v38, %v276_v25  ;;  %v236_v38 = vrot.slane %v6137_v34, 2  ;;  %v5624_v34 = vld [vmem:[%s8581_s29 + $0x200] sm:$0xff]  }
  0x51   :  { %4836 = vmatprep.subr.bf16.mxu1 %v5605_v63  ;;  %v267_v63 = vrot.slane %v6409_v3, 1 }
  0x52   :  { %5283 = vmatpush3.bf16.msra.mxu0 %v5613_v19  ;;  %v8586_v19 = vpack.c.bf16 %v6031_v52, %v6025_v50  ;;  %v338_v50 = vpack.c.bf16 %v6095_v17, %v231_v27  ;;  %v345_v52 = vpack.c.bf16 %v6250_v40, %v6145_v37  ;;  %v8590_v27 = vld [vmem:[#allocation5_spill] sm:$0xff] }
  0x53   :  { %1078 = vmatmul.mubr.bf16.gmra.mxu1 %v6399_v8  ;;  %1175 = vmatmul.mubr.bf16.gmra.mxu0 %v313_v58  ;;  %v5620_v58 = vld [vmem:[%s8581_s29 + $0x1c0] sm:$0xff]  }
  0x54   :  { %1085 = vmatprep.mubr.bf16.mxu1 %v318_v28  ;;  %4837 = vmatpush3.bf16.msra.mxu1 %v5606_v62  ;;  %v326_v62 = vpack.c.bf16 %v6449_v60, %v222_v6  ;;  %v268_v28 = vrot.slane %v78_v0, 1  ;;  %v5618_v0 = vld [vmem:[%s8581_s29 + $0x188] sm:$0xff]   ;;  %v6524_v6 = vld [vmem:[%s8582_s23 + $0x120] sm:$0xff] }
  0x55   :  { %4838 = vmatprep.subr.bf16.mxu1 %v5607_v29  ;;  %1182 = vmatprep.mubr.bf16.mxu0 %v320_v51  ;;  %v5614_v29 = vld [vmem:[%s8581_s29 + $0x190] sm:$0xff]   ;;  %v235_v51 = vrot.slane %v6132_v32, 2  ;;  %v278_v37 = vrot.slane %v6524_v6, 2 }
  0x56   :  { %5284 = vmatprep.subr.bf16.mxu0 %v5615_v49  ;;  %v6479_v16 = vsel %vm133_vm0, %v267_v63, %v268_v28  ;;  %v270_v28 = vrot.slane %v6524_v6, 1 }
  0x57   :  { %5285 = vmatpush3.bf16.msra.mxu0 %v5615_v49  ;;  %v325_v54 = vpack.c.bf16 %v6479_v16, %v6341_v47  ;;  %v5623_v47 = vld [vmem:[%s8581_s29 + $0x208] sm:$0xff]   ;;  %v237_v25 = vsel %vm198_vm1, %v235_v51, %v236_v38 }
  0x58   :  { %4839 = vmatpush3.bf16.msra.mxu1 %v5608_v56  ;;  %5286 = vmatprep.subr.bf16.mxu0 %v5617_v45  ;;  %v5621_v56 = vld [vmem:[%s8581_s29 + $0x210] sm:$0xff]   ;;  %v341_v49 = vpack.c.bf16 %v237_v25, %v6095_v17  ;;  %v245_v17 = vrot.slane %v6268_v61, 2  ;;  %v344_v12 = vpack.c.bf16 %v6278_v2, %v237_v25  ;;  %v346_v61 = vpack.c.bf16 %v6282_v7, %v6170_v53  ;;  %v80_v7 = vld [vmem:[%s8582_s23 + $0x98] sm:$0x3]  ;;  %s8591_s29 = sld [smem:[#allocation24_spill]] }
  0x59   :  { %4840 = vmatprep.subr.bf16.mxu1 %v5609_v48  ;;  %v339_v48 = vpack.c.bf16 %v6132_v32, %v6049_v59  ;;  %v242_v59 = vrot.slane %v6258_v43, 2  ;;  %v8587_v32 = vpack.c.bf16 %v5984_v31, %v5966_v26  ;;  %v98_v43 = vld [vmem:[%s8582_s23 + $0x128] sm:$0x3]  ;;  %v244_v31 = vrot.slane %v6263_v46, 2  ;;  %v79_v53 = vld [vmem:[%s8582_s23 + $0x90] sm:$0xff] }
  0x5a   :  { %v296_v1 = vrot.slane %v80_v7, 2 }
  0x5b   :  { %1086 = vmatmul.mubr.bf16.gmra.mxu1 %v6437_v11  ;;  %1183 = vmatmul.mubr.bf16.gmra.mxu0 %v319_v42  ;;  %v351_v42 = vpack.c.bf16 %v6524_v6, %v6263_v46  ;;  %v246_v63 = vsel %vm198_vm1, %v244_v31, %v245_v17 }
  0x5c   :  { %1093 = vmatprep.mubr.bf16.mxu1 %v324_v5  ;;  %4841 = vmatpush3.bf16.msra.mxu1 %v5611_v55  ;;  %v241_v5 = vrot.slane %v6250_v40, 2  ;;  %v279_v40 = vrot.slane %v98_v43, 2 }
  0x5d   :  { %4842 = vmatprep.subr.bf16.mxu1 %v5612_v36  ;;  %1190 = vmatprep.mubr.bf16.mxu0 %v326_v62  ;;  %v8588_v36 = vpack.c.bf16 %v6162_v44, %v6067_v4  ;;  %v271_v4 = vrot.slane %v98_v43, 1 }
  0x5e   :  { %5287 = vmatpush3.bf16.msra.mxu0 %v5617_v45  ;;  %v243_v55 = vsel %vm198_vm1, %v241_v5, %v242_v59  ;;  %v280_v45 = vsel %vm198_vm1, %v278_v37, %v279_v40 }
  0x5f   :  { %5288 = vmatprep.subr.bf16.mxu0 %v5619_v57  ;;  %v347_v26 = vpack.c.bf16 %v243_v55, %v6278_v2  ;;  %v353_v62 = vpack.c.bf16 %v280_v45, %v246_v63  ;;  %v350_v44 = vpack.c.bf16 %v246_v63, %v243_v55  ;;  %v272_v2 = vsel %vm133_vm0, %v270_v28, %v271_v4 }
  0x60   :  { %4843 = vmatpush3.bf16.msra.mxu1 %v5614_v29  ;;  %v352_v46 = vpack.c.bf16 %v272_v2, %v6285_v21  ;;  %v295_v29 = vrot.slane %v79_v53, 2  ;;  %v287_v21 = vrot.slane %v79_v53, 1 }
  0x61   :  { %4844 = vmatprep.subr.bf16.mxu1 %v5616_v9 }
  0x62   :  { %5289 = vmatpush3.bf16.msra.mxu0 %v5619_v57 }
  0x63   :  { %1094 = vmatmul.mubr.bf16.gmra.mxu1 %v6470_v14  ;;  %1191 = vmatmul.mubr.bf16.gmra.mxu0 %v325_v54 }
  0x64   :  { %1101 = vmatprep.mubr.bf16.mxu1 %v333_v35  ;;  %4845 = vmatpush3.bf16.msra.mxu1 %v5618_v0 }
  0x65   :  { %4846 = vmatprep.subr.bf16.mxu1 %v5620_v58  ;;  %5290 = vmatprep.subr.bf16.mxu0 %v5621_v56 }
  0x66   :  { %1198 = vmatprep.mubr.bf16.mxu0 %v335_v13  ;;  %5291 = vmatpush3.bf16.msra.mxu0 %v5621_v56 }
  0x67   :  { %5292 = vmatprep.subr.bf16.mxu0 %v5623_v47 }
  0x68   :  { %4847 = vmatpush3.bf16.msra.mxu1 %v5622_v15 }
  0x6a   :  { %5293 = vmatpush3.bf16.msra.mxu0 %v5623_v47 }
  0x6b   :  { %1102 = vmatmul.mubr.bf16.gmra.mxu1 %v8586_v19  ;;  %1199 = vmatmul.mubr.bf16.gmra.mxu0 %v8587_v32 }
  0x6c   :  { %1109 = vmatprep.mubr.bf16.mxu1 %v339_v48  ;;  %5294 = vmatprep.subr.bf16.mxu0 %v5624_v34 }
  0x6d   :  { %1206 = vmatprep.mubr.bf16.mxu0 %v341_v49 }
  0x6e   :  { %5295 = vmatpush3.bf16.msra.mxu0 %v5624_v34 }
  0x73   :  { %1110 = vmatmul.mubr.bf16.gmra.mxu1 %v338_v50  ;;  %1207 = vmatmul.mubr.bf16.gmra.mxu0 %v8588_v36 }
  0x74   :  { %1117 = vmatprep.mubr.bf16.mxu1 %v345_v52  ;;  %1214 = vmatprep.mubr.bf16.mxu0 %v347_v26 }
  0x7b   :  { %1118 = vmatmul.mubr.bf16.gmra.mxu1 %v344_v12  ;;  %1215 = vmatmul.mubr.bf16.gmra.mxu0 %v346_v61 }
  0x7c   :  { %1125 = vmatprep.mubr.bf16.mxu1 %v351_v42  ;;  %1222 = vmatprep.mubr.bf16.mxu0 %v353_v62 }
  0x83   :  { %1126 = vmatmul.mubr.bf16.gmra.mxu1 %v350_v44  ;;  %1223 = vmatmul.mubr.bf16.gmra.mxu0 %v352_v46 }
  0x84   :  { %1263 = vmatprep.mubr.bf16.mxu1 %v6105_v20  ;;  %5296 = vmatprep.mubr.bf16.mxu0 %v6399_v8  ;;  %v297_v20 = vsel %vm198_vm1, %v295_v29, %v296_v1  ;;  %v288_v8 = vrot.slane %v80_v7, 1 }
  0x85   :  { %v329_v9 = vpack.c.bf16 %v297_v20, %v6449_v60 }
  0x8b   :  { %1264 = vmatmul.mubr.bf16.vlgmr.msra.gmra.mxu1 %v6121_v24  ;;  %5297 = vmatmul.mubr.bf16.vlgmr.msra.gmra.mxu0 %v6437_v11  ;;  %v289_v24 = vsel %vm133_vm0, %v287_v21, %v288_v8  ;;  %v99_v11 = vld [vmem:[%s8582_s23 + $0x130] sm:$0xff] }
  0x8c   :  { %1271 = vmatprep.mubr.bf16.mxu1 %v6232_v22  ;;  %5300 = vmatprep.mubr.bf16.mxu0 %v6470_v14  ;;  %v328_v22 = vpack.c.bf16 %v289_v24, %v6479_v16  ;;  %v100_v14 = vld [vmem:[%s8582_s23 + $0x138] sm:$0x3]  ;;  %v8589_v16 = vld [vmem:[#allocation4_spill] sm:$0xff]  ;;  %v290_v35 = vrot.slane %v99_v11, 1  ;;  %v354_v54 = vpack.c.bf16 %v99_v11, %v6524_v6 }
  0x8d   :  { %v299_v60 = vrot.slane %v100_v14, 2 }
  0x93   :  { %1272 = vmatmul.mubr.bf16.gmra.mxu1 %v6225_v18  ;;  %5301 = vmatmul.mubr.bf16.gmra.mxu0 %v329_v9  ;;  %v298_v18 = vrot.slane %v99_v11, 2 }
  0x94   :  { %1279 = vmatprep.mubr.bf16.mxu1 %v6356_v41  ;;  %5304 = vmatprep.mubr.bf16.mxu0 %v338_v50  ;;  %v327_v41 = vpack.c.bf16 %v79_v53, %v6409_v3 }
  0x95   :  { %v300_v0 = vsel %vm198_vm1, %v298_v18, %v299_v60 }
  0x96   :  { %v356_v57 = vpack.c.bf16 %v300_v0, %v280_v45 }
  0x9b   :  { %1280 = vmatmul.mubr.bf16.gmra.mxu1 %v6345_v30  ;;  %5305 = vmatmul.mubr.bf16.gmra.mxu0 %v344_v12  ;;  %v291_v30 = vrot.slane %v100_v14, 1 }
  0x9c   :  { %1287 = vmatprep.mubr.bf16.mxu1 %v328_v22  ;;  %5308 = vmatprep.mubr.bf16.mxu0 %v350_v44 }
  0x9d   :  { %v292_v3 = vsel %vm133_vm0, %v290_v35, %v291_v30 }
  0x9e   :  { %v355_v58 = vpack.c.bf16 %v292_v3, %v272_v2  ;;  %v6608_v2 = vld [vmem:[%s8591_s29] ss:$0 sm:$0xff] }
  0xa3   :  { %1288 = vmatmul.mubr.bf16.gmra.mxu1 %v327_v41  ;;  %5309 = vmatmul.mubr.bf16.gmra.mxu0 %v356_v57 }
  0xa4   :  { %1295 = vmatprep.mubr.bf16.mxu1 %v6087_v10 }
  0xab   :  { %1296 = vmatmul.mubr.bf16.gmra.mxu1 %v6116_v23 }
  0xac   :  { %1303 = vmatprep.mubr.bf16.mxu1 %v8589_v16 }
  0xb3   :  { %1304 = vmatmul.mubr.bf16.gmra.mxu1 %v8590_v27 }
  0xb4   :  { %1311 = vmatprep.mubr.bf16.mxu1 %v6306_v39 }
  0xbb   :  { %1312 = vmatmul.mubr.bf16.gmra.mxu1 %v6289_v33 }
  0xbc   :  { %1319 = vmatprep.mubr.bf16.mxu1 %v355_v58 }
  0xc3   :  { %1320 = vmatmul.mubr.bf16.gmra.mxu1 %v354_v54 }
  0xeb   :  { %v4680_v10 = vpop.f32.mrf.mxu1  ;;  %v4656_v56 = vpop.f32.mrf.mxu0 }
  0xed   :  { %v4681_v23 = vpop.f32.mrf.mxu1  ;;  %v4657_v13 = vpop.f32.mrf.mxu0 }
  0xee   :  { %v6581_v15 = vadd.f32 %v4681_v23, %v4680_v10  ;;  %v4658_v51 = vadd.f32 %v4657_v13, %v4656_v56 }
  0xef   :  { %v6583_v38 = vpop.f32.mrf.mxu1  ;;  %v4659_v47 = vpop.f32.mrf.mxu0 }
  0xf0   :  { %v975_v7 = vadd.f32 %v4658_v51, %v6608_v2 }
  0xf1   :  { %v6585_v39 = vpop.f32.mrf.mxu1  ;;  %v4660_v48 = vpop.f32.mrf.mxu0 }
  0xf2   :  { %v4661_v20 = vadd.f32 %v4660_v48, %v4659_v47 }
  0xf3   :  { %v4686_v25 = vpop.f32.mrf.mxu1  ;;  %v4662_v19 = vpop.f32.mrf.mxu0 }
  0xf4   :  { %v978_v14 = vadd.f32 %v4661_v20, %v6608_v2 }
  0xf5   :  { %v4687_v33 = vpop.f32.mrf.mxu1  ;;  %v4663_v34 = vpop.f32.mrf.mxu0 }
  0xf6   :  { %v6587_v49 = vadd.f32 %v4687_v33, %v4686_v25  ;;  %v4664_v5 = vadd.f32 %v4663_v34, %v4662_v19 }
  0xf7   :  { %v6589_v59 = vpop.f32.mrf.mxu1  ;;  %v4665_v32 = vpop.f32.mrf.mxu0 }
  0xf8   :  { %v983_v57 = vadd.f32 %v4664_v5, %v6608_v2 }
  0xf9   :  { %v6591_v50 = vpop.f32.mrf.mxu1  ;;  %v4666_v52 = vpop.f32.mrf.mxu0 }
  0xfa   :  { %v4667_v3 = vadd.f32 %v4666_v52, %v4665_v32 }
  0xfb   :  { %v4692_v55 = vpop.f32.mrf.mxu1  ;;  %v4668_v6 = vpop.f32.mrf.mxu0 }
  0xfc   :  { %v986_v51 = vadd.f32 %v4667_v3, %v6608_v2  ;;  %v4685_v3 = vadd.f32 %v6585_v39, %v6583_v38 }
  0xfd   :  { %v4693_v43 = vpop.f32.mrf.mxu1  ;;  %v4669_v31 = vpop.f32.mrf.mxu0 }
  0xfe   :  { %v6593_v26 = vadd.f32 %v4693_v43, %v4692_v55  ;;  %v4670_v17 = vadd.f32 %v4669_v31, %v4668_v6  ;;  %v1010_v38 = vadd.f32 %v4685_v3, %v6608_v2 }
  0xff   :  { %v6595_v37 = vpop.f32.mrf.mxu1  ;;  %v4671_v40 = vpop.f32.mrf.mxu0 }
 0x100   :  { %v991_v19 = vadd.f32 %v4670_v17, %v6608_v2 }
 0x101   :  { %v6597_v36 = vpop.f32.mrf.mxu1  ;;  %v4672_v12 = vpop.f32.mrf.mxu0 }
 0x102   :  { %v4673_v32 = vadd.f32 %v4672_v12, %v4671_v40 }
 0x103   :  { %v4698_v42 = vpop.f32.mrf.mxu1  ;;  %v4674_v61 = vpop.f32.mrf.mxu0 }
 0x105   :  { %v4699_v63 = vpop.f32.mrf.mxu1  ;;  %v4675_v28 = vpop.f32.mrf.mxu0 }
 0x106   :  { %v6599_v45 = vadd.f32 %v4699_v63, %v4698_v42  ;;  %v4676_v44 = vadd.f32 %v4675_v28, %v4674_v61  ;;  %v994_v63 = vadd.f32 %v4673_v32, %v6608_v2 }
 0x107   :  { %v6601_v62 = vpop.f32.mrf.mxu1  ;;  %v4677_v46 = vpop.f32.mrf.mxu0 }
 0x109   :  { %v6603_v4 = vpop.f32.mrf.mxu1  ;;  %v4678_v29 = vpop.f32.mrf.mxu0 }
 0x10b   :  { %v4720_v53 = vpop.f32.mrf.mxu1  ;;  %v4784_v8 = vpop.f32.mrf.mxu0 }
 0x10d   :  { %v4721_v1 = vpop.f32.mrf.mxu1  ;;  %v4785_v22 = vpop.f32.mrf.mxu0 }
 0x10e   :  { %v4722_v21 = vadd.f32 %v4721_v1, %v4720_v53  ;;  %v4786_v18 = vadd.f32 %v4785_v22, %v4784_v8  ;;  %v999_v53 = vadd.f32 %v4676_v44, %v6608_v2  ;;  %v4679_v1 = vadd.f32 %v4678_v29, %v4677_v46  ;;  %v5625_v46 = vld [vmem:[%s8554_s5 + $0x78] sm:$0xff]  }
 0x10f   :  { %v4723_v9 = vpop.f32.mrf.mxu1  ;;  %v6612_v41 = vpop.f32.mrf.mxu0  ;;  %4912 = vmatprep.subr.bf16.mxu1 %v5625_v46  ;;  %v5632_v46 = vld [vmem:[%s8554_s5 + $0x20] sm:$0xff]  }
 0x110   :  { %v1072_v24 = vadd.f32 %v4722_v21, %v975_v7 }
 0x111   :  { %v4724_v11 = vpop.f32.mrf.mxu1  ;;  %v6619_v30 = vpop.f32.mrf.mxu0 }
 0x112   :  { %v4725_v60 = vadd.f32 %v4724_v11, %v4723_v9  ;;  %v6615_v16 = vadd.f32 %v4786_v18, %v1072_v24  ;;  %v1002_v11 = vadd.f32 %v4679_v1, %v6608_v2  ;;  %v4691_v1 = vadd.f32 %v6591_v50, %v6589_v59 }
 0x113   :  { %v4726_v0 = vpop.f32.mrf.mxu1  ;;  %v6621_v54 = vpop.f32.mrf.mxu0 }
 0x114   :  { %v6617_v35 = vadd.f32 %v4725_v60, %v978_v14 }
 0x115   :  { %v4727_v27 = vpop.f32.mrf.mxu1  ;;  %v6625_v23 = vpop.f32.mrf.mxu0 }
 0x116   :  { %v4728_v58 = vadd.f32 %v4727_v27, %v4726_v0  ;;  %v1007_v27 = vadd.f32 %v6581_v15, %v6608_v2  ;;  %v5628_v15 = vld [vmem:[%s8554_s5 + $0x30] sm:$0xff]  }
 0x117   :  { %v4729_v10 = vpop.f32.mrf.mxu1  ;;  %v6628_v48 = vpop.f32.mrf.mxu0 }
 0x118   :  { %v6623_v56 = vadd.f32 %v4728_v58, %v983_v57  ;;  %v5626_v57 = vld [vmem:[%s8554_s5 + $0x38] sm:$0xff]  }
 0x119   :  { %v4730_v13 = vpop.f32.mrf.mxu1  ;;  %v6633_v34 = vpop.f32.mrf.mxu0  ;;  %4913 = vmatpush3.bf16.msra.mxu1 %v5626_v57  ;;  %v1018_v57 = vadd.f32 %v4691_v1, %v6608_v2 }
 0x11a   :  { %v4731_v47 = vadd.f32 %v4730_v13, %v4729_v10 }
 0x11b   :  { %v4732_v25 = vpop.f32.mrf.mxu1  ;;  %v6635_v55 = vpop.f32.mrf.mxu0 }
 0x11c   :  { %v6631_v33 = vadd.f32 %v4731_v47, %v986_v51  ;;  %v5627_v47 = vld [vmem:[%s8554_s5 + $0x70] sm:$0xff]  }
 0x11d   :  { %v4733_v5 = vpop.f32.mrf.mxu1  ;;  %v6639_v31 = vpop.f32.mrf.mxu0  ;;  %4914 = vmatprep.subr.bf16.mxu1 %v5627_v47 }
 0x11e   :  { %v4734_v52 = vadd.f32 %v4733_v5, %v4732_v25  ;;  %v5633_v5 = vld [vmem:[%s8554_s5 + $0xf8] sm:$0xff]   ;;  %4915 = vmatpush3.bf16.msra.mxu1 %v5628_v15 }
 0x11f   :  { %v4735_v6 = vpop.f32.mrf.mxu1  ;;  %v6642_v28 = vpop.f32.mrf.mxu0  ;;  %4976 = vmatprep.subr.bf16.mxu0 %v5633_v5  ;;  %v5636_v5 = vld [vmem:[%s8554_s5 + $0x18] sm:$0xff]  }
 0x120   :  { %v6637_v43 = vadd.f32 %v4734_v52, %v991_v19 }
 0x121   :  { %v4736_v42 = vpop.f32.mrf.mxu1  ;;  %v6647_v40 = vpop.f32.mrf.mxu0 }
 0x122   :  { %v4737_v61 = vadd.f32 %v4736_v42, %v4735_v6  ;;  %v5629_v42 = vld [vmem:[%s8554_s5 + $0x68] sm:$0xff]  }
 0x123   :  { %v4738_v17 = vpop.f32.mrf.mxu1  ;;  %v6649_v21 = vpop.f32.mrf.mxu0  ;;  %4916 = vmatprep.subr.bf16.mxu1 %v5629_v42  ;;  %v1023_v42 = vadd.f32 %v6593_v26, %v6608_v2  ;;  %v5644_v26 = vld [vmem:[%s8554_s5 + $0xa0] sm:$0xff]  }
 0x124   :  { %v6645_v7 = vadd.f32 %v4737_v61, %v994_v63  ;;  %v5635_v63 = vld [vmem:[%s8554_s5 + $0xb8] sm:$0xff]  }
 0x125   :  { %v4739_v12 = vpop.f32.mrf.mxu1  ;;  %v6653_v24 = vpop.f32.mrf.mxu0  ;;  %4977 = vmatpush3.bf16.msra.mxu0 %v5635_v63  ;;  %v4697_v63 = vadd.f32 %v6597_v36, %v6595_v37  ;;  %v5645_v36 = vld [vmem:[%s8554_s5 + $0xd8] sm:$0xff]  }
 0x126   :  { %v4740_v20 = vadd.f32 %v4739_v12, %v4738_v17  ;;  %v1015_v12 = vadd.f32 %v6587_v49, %v6608_v2  ;;  %v5631_v49 = vld [vmem:[%s8554_s5 + $0x60] sm:$0xff]  }
 0x127   :  { %v4741_v8 = vpop.f32.mrf.mxu1  ;;  %v6656_v18 = vpop.f32.mrf.mxu0 }
 0x128   :  { %v6651_v9 = vadd.f32 %v4740_v20, %v999_v53  ;;  %v5630_v53 = vld [vmem:[%s8554_s5 + $0x28] sm:$0xff]  }
 0x129   :  { %v4742_v22 = vpop.f32.mrf.mxu1  ;;  %v6663_v29 = vpop.f32.mrf.mxu0  ;;  %4917 = vmatpush3.bf16.msra.mxu1 %v5630_v53  ;;  %v5640_v53 = vld [vmem:[%s8554_s5 + $0x50] sm:$0xff]  }
 0x12a   :  { %v4743_v14 = vadd.f32 %v4742_v22, %v4741_v8  ;;  %v5637_v8 = vld [vmem:[%s8554_s5 + $0xf0] sm:$0xff]   ;;  %4918 = vmatprep.subr.bf16.mxu1 %v5631_v49  ;;  %v1026_v49 = vadd.f32 %v4697_v63, %v6608_v2  ;;  %v5651_v63 = vld [vmem:[%s8554_s5 + $0xc8] sm:$0xff]  }
 0x12b   :  { %v4744_v44 = vpop.f32.mrf.mxu1  ;;  %v6672_v10 = vpop.f32.mrf.mxu0  ;;  %4978 = vmatprep.subr.bf16.mxu0 %v5637_v8 }
 0x12c   :  { %v6658_v60 = vadd.f32 %v4743_v14, %v1002_v11  ;;  %v5638_v14 = vld [vmem:[%s8554_s5 + $0xb0] sm:$0xff]  }
 0x12d   :  { %v4745_v0 = vpop.f32.mrf.mxu1  ;;  %v6679_v25 = vpop.f32.mrf.mxu0  ;;  %4979 = vmatpush3.bf16.msra.mxu0 %v5638_v14  ;;  %4919 = vmatpush3.bf16.msra.mxu1 %v5632_v46  ;;  %v5646_v14 = vld [vmem:[%s8554_s5 + $0x48] sm:$0xff]   ;;  %v5647_v46 = vld [vmem:[%s8554_s5 + $0x98] sm:$0xff]  }
 0x12e   :  { %v4746_v58 = vadd.f32 %v4745_v0, %v4744_v44  ;;  %v5639_v0 = vld [vmem:[%s8554_s5 + $0xe8] sm:$0xff]  }
 0x12f   :  { %v4747_v13 = vpop.f32.mrf.mxu1  ;;  %v6688_v32 = vpop.f32.mrf.mxu0  ;;  %4980 = vmatprep.subr.bf16.mxu0 %v5639_v0 }
 0x130   :  { %v6674_v51 = vadd.f32 %v4746_v58, %v1007_v27 }
 0x131   :  { %v4748_v19 = vpop.f32.mrf.mxu1  ;;  %v6698_v61 = vpop.f32.mrf.mxu0 }
 0x132   :  { %v4749_v39 = vadd.f32 %v4748_v19, %v4747_v13  ;;  %v5641_v13 = vld [vmem:[%s8554_s5 + $0xa8] sm:$0xff]   ;;  %v5634_v19 = vld [vmem:[%s8554_s5 + $0x58] sm:$0xff]  }
 0x133   :  { %v4750_v52 = vpop.f32.mrf.mxu1  ;;  %v6710_v22 = vpop.f32.mrf.mxu0  ;;  %4920 = vmatprep.subr.bf16.mxu1 %v5634_v19  ;;  %4981 = vmatpush3.bf16.msra.mxu0 %v5641_v13  ;;  %v5649_v13 = vld [vmem:[%s8554_s5 + $0xd0] sm:$0xff]  }
 0x134   :  { %v6690_v6 = vadd.f32 %v4749_v39, %v1010_v38  ;;  %v8575_v39 = vmov 0.0   ;;  %4921 = vmatpush3.bf16.msra.mxu1 %v5636_v5  ;;  %v5650_v5 = vld [vmem:[%s8554_s5 + $0x90] sm:$0xff]  }
 0x135   :  { %v4751_v17 = vpop.f32.mrf.mxu1  ;;  %v6720_v59 = vpop.f32.mrf.mxu0  ;;  %1620 = vst [vmem:[#allocation2 + $0x120] sm:$0xff] %v8575_v39  ;;  %1621 = vst [vmem:[#allocation2 + $0x128] sm:$0x3] %v8575_v39  ;;  %4922 = vmatprep.subr.bf16.mxu1 %v5640_v53 }
 0x136   :  { %v4752_v20 = vadd.f32 %v4751_v17, %v4750_v52  ;;  %1584 = vst [vmem:[#allocation2] sm:$0xff] %v8575_v39  ;;  %1585 = vst [vmem:[#allocation2 + $0x8] sm:$0x3] %v8575_v39  ;;  %v5643_v52 = vld [vmem:[%s8554_s5 + $0xe0] sm:$0xff]  }
 0x137   :  { %v4753_v11 = vpop.f32.mrf.mxu1  ;;  %v6729_v3 = vpop.f32.mrf.mxu0  ;;  %1586 = vst [vmem:[#allocation2 + $0x10] sm:$0xff] %v8575_v39  ;;  %1587 = vst [vmem:[#allocation2 + $0x18] sm:$0x3] %v8575_v39  ;;  %4982 = vmatprep.subr.bf16.mxu0 %v5643_v52  ;;  %v1031_v52 = vadd.f32 %v6599_v45, %v6608_v2  ;;  %v5654_v2 = vld [vmem:[%s8554_s5] sm:$0xff]  }
 0x138   :  { %v6715_v44 = vadd.f32 %v4752_v20, %v1015_v12  ;;  %1588 = vst [vmem:[#allocation2 + $0x20] sm:$0xff] %v8575_v39  ;;  %1589 = vst [vmem:[#allocation2 + $0x28] sm:$0x3] %v8575_v39  ;;  %v5642_v12 = vld [vmem:[%s8554_s5 + $0x10] sm:$0xff]   ;;  %4983 = vmatpush3.bf16.msra.mxu0 %v5644_v26 }
 0x139   :  { %v4754_v50 = vpop.f32.mrf.mxu1  ;;  %v6739_v15 = vpop.f32.mrf.mxu0  ;;  %1590 = vst [vmem:[#allocation2 + $0x30] sm:$0xff] %v8575_v39  ;;  %1591 = vst [vmem:[#allocation2 + $0x38] sm:$0x3] %v8575_v39  ;;  %4923 = vmatpush3.bf16.msra.mxu1 %v5642_v12  ;;  %4984 = vmatprep.subr.bf16.mxu0 %v5645_v36  ;;  %v5652_v12 = vld [vmem:[%s8554_s5 + $0x40] sm:$0xff]   ;;  %v5653_v36 = vld [vmem:[%s8554_s5 + $0x88] sm:$0xff]  }
 0x13a   :  { %v4755_v27 = vadd.f32 %v4754_v50, %v4753_v11  ;;  %1592 = vst [vmem:[#allocation2 + $0x40] sm:$0xff] %v8575_v39  ;;  %1593 = vst [vmem:[#allocation2 + $0x48] sm:$0x3] %v8575_v39  ;;  %4924 = vmatprep.subr.bf16.mxu1 %v5646_v14 }
 0x13b   :  { %v4756_v58 = vpop.f32.mrf.mxu1  ;;  %1594 = vst [vmem:[#allocation2 + $0x50] sm:$0xff] %v8575_v39  ;;  %1595 = vst [vmem:[#allocation2 + $0x58] sm:$0x3] %v8575_v39  ;;  %v6794_v1 = vpop.f32.mrf.mxu0 }
 0x13c   :  { %v6734_v47 = vadd.f32 %v4755_v27, %v1018_v57  ;;  %1596 = vst [vmem:[#allocation2 + $0x60] sm:$0xff] %v8575_v39  ;;  %1597 = vst [vmem:[#allocation2 + $0x68] sm:$0x3] %v8575_v39  ;;  %v5648_v27 = vld [vmem:[%s8554_s5 + $0x8] sm:$0xff]   ;;  %4985 = vmatpush3.bf16.msra.mxu0 %v5647_v46 }
 0x13d   :  { %v4757_v38 = vpop.f32.mrf.mxu1  ;;  %1598 = vst [vmem:[#allocation2 + $0x70] sm:$0xff] %v8575_v39  ;;  %1599 = vst [vmem:[#allocation2 + $0x78] sm:$0x3] %v8575_v39  ;;  %v6804_v8 = vpop.f32.mrf.mxu0  ;;  %4925 = vmatpush3.bf16.msra.mxu1 %v5648_v27  ;;  %4986 = vmatprep.subr.bf16.mxu0 %v5649_v13  ;;  %v4789_v27 = vadd.f32 %v6619_v30, %v6612_v41 }
 0x13e   :  { %1600 = vst [vmem:[#allocation2 + $0x80] sm:$0xff] %v8575_v39  ;;  %1601 = vst [vmem:[#allocation2 + $0x88] sm:$0x3] %v8575_v39  ;;  %v4758_v17 = vadd.f32 %v4757_v38, %v4756_v58  ;;  %4926 = vmatprep.subr.bf16.mxu1 %v5652_v12 }
 0x13f   :  { %1603 = vst [vmem:[#allocation2 + $0x98] sm:$0x3] %v8575_v39  ;;  %1605 = vst [vmem:[#allocation2 + $0xa8] sm:$0x3] %v8575_v39  ;;  %v4759_v20 = vpop.f32.mrf.mxu1  ;;  %v6813_v0 = vpop.f32.mrf.mxu0 }
 0x140   :  { %1606 = vst [vmem:[#allocation2 + $0xb0] sm:$0xff] %v8575_v39  ;;  %1607 = vst [vmem:[#allocation2 + $0xb8] sm:$0x3] %v8575_v39  ;;  %v6799_v37 = vadd.f32 %v4758_v17, %v1023_v42  ;;  %4987 = vmatpush3.bf16.msra.mxu0 %v5650_v5 }
 0x141   :  { %1608 = vst [vmem:[#allocation2 + $0xc0] sm:$0xff] %v8575_v39  ;;  %1609 = vst [vmem:[#allocation2 + $0xc8] sm:$0x3] %v8575_v39  ;;  %v4760_v11 = vpop.f32.mrf.mxu1  ;;  %v6823_v19 = vpop.f32.mrf.mxu0  ;;  %4988 = vmatprep.subr.bf16.mxu0 %v5651_v63  ;;  %4927 = vmatpush3.bf16.msra.mxu1 %v5654_v2  ;;  %v1172_v2 = vadd.f32 %v4789_v27, %v6617_v35 }
 0x142   :  { %1610 = vst [vmem:[#allocation2 + $0xd0] sm:$0xff] %v8575_v39  ;;  %1611 = vst [vmem:[#allocation2 + $0xd8] sm:$0x3] %v8575_v39  ;;  %v4761_v50 = vadd.f32 %v4760_v11, %v4759_v20 }
 0x143   :  { %1612 = vst [vmem:[#allocation2 + $0xe0] sm:$0xff] %v8575_v39  ;;  %1613 = vst [vmem:[#allocation2 + $0xe8] sm:$0x3] %v8575_v39  ;;  %v4762_v57 = vpop.f32.mrf.mxu1  ;;  %v6833_v17 = vpop.f32.mrf.mxu0 }
 0x144   :  { %1614 = vst [vmem:[#allocation2 + $0xf0] sm:$0xff] %v8575_v39  ;;  %1615 = vst [vmem:[#allocation2 + $0xf8] sm:$0x3] %v8575_v39  ;;  %v6818_v58 = vadd.f32 %v4761_v50, %v1026_v49  ;;  %v5655_v49 = vld [vmem:[%s8554_s5 + $0xc0] sm:$0xff]   ;;  %4989 = vmatpush3.bf16.msra.mxu0 %v5653_v36 }
 0x145   :  { %1616 = vst [vmem:[#allocation2 + $0x100] sm:$0xff] %v8575_v39  ;;  %1617 = vst [vmem:[#allocation2 + $0x108] sm:$0x3] %v8575_v39  ;;  %v4763_v38 = vpop.f32.mrf.mxu1  ;;  %v6842_v26 = vpop.f32.mrf.mxu0  ;;  %4990 = vmatprep.subr.bf16.mxu0 %v5655_v49 }
 0x146   :  { %1618 = vst [vmem:[#allocation2 + $0x110] sm:$0xff] %v8575_v39  ;;  %1619 = vst [vmem:[#allocation2 + $0x118] sm:$0x3] %v8575_v39  ;;  %v4764_v42 = vadd.f32 %v4763_v38, %v4762_v57  ;;  %v5657_v57 = vld [vmem:[%s8554_s5 + $0x178] sm:$0xff]   ;;  %v5656_v38 = vld [vmem:[%s8554_s5 + $0x80] sm:$0xff]  }
 0x147   :  { %1623 = vst [vmem:[#allocation2 + $0x138] sm:$0x3] %v8575_v39  ;;  %v6835_v53 = vpop.f32.mrf.mxu1  ;;  %v6852_v11 = vpop.f32.mrf.mxu0  ;;  %5040 = vmatprep.subr.bf16.mxu1 %v5657_v57  ;;  %v4792_v39 = vadd.f32 %v6625_v23, %v6621_v54 }
 0x148   :  { %v6840_v20 = vadd.f32 %v4764_v42, %v1031_v52  ;;  %8592 = vst [vmem:[#allocation4_spill] sm:$0xff] %v6852_v11  ;;  %4991 = vmatpush3.bf16.msra.mxu0 %v5656_v38 }
 0x149   :  { %v6844_v45 = vpop.f32.mrf.mxu1  ;;  %v6857_v50 = vpop.f32.mrf.mxu0  ;;  %v1177_v49 = vadd.f32 %v4792_v39, %v6623_v56  ;;  %v4798_v56 = vadd.f32 %v6639_v31, %v6635_v55  ;;  %v4801_v55 = vadd.f32 %v6647_v40, %v6642_v28 }
 0x14a   :  { %8593 = vst [vmem:[#allocation5_spill] sm:$0xff] %v6857_v50 }
 0x14b   :  { %v4848_v14 = vpop.f32.mrf.mxu1  ;;  %v5298_v52 = vpop.f32.mrf.mxu0 }
 0x14d   :  { %v4849_v46 = vpop.f32.mrf.mxu1  ;;  %v1362_v12 = vpop.f32.mrf.mxu0 }
 0x14e   :  { %v4850_v13 = vadd.f32 %v4849_v46, %v4848_v14 }
 0x14f   :  { %v4851_v5 = vpop.f32.mrf.mxu1  ;;  %v5299_v36 = vpop.f32.mrf.mxu0 }
 0x150   :  { %v1266_v42 = vadd.f32 %v4850_v13, %v6615_v16  ;;  %v4795_v16 = vadd.f32 %v6633_v34, %v6628_v48 }
 0x151   :  { %v4852_v63 = vpop.f32.mrf.mxu1  ;;  %v1365_v11 = vpop.f32.mrf.mxu0 }
 0x152   :  { %v4853_v41 = vadd.f32 %v4852_v63, %v4851_v5  ;;  %v6871_v14 = vadd.f32 %v1362_v12, %v1266_v42  ;;  %v1180_v48 = vadd.f32 %v4795_v16, %v6631_v33 }
 0x153   :  { %v4854_v30 = vpop.f32.mrf.mxu1  ;;  %v5302_v27 = vpop.f32.mrf.mxu0 }
 0x154   :  { %v1269_v46 = vadd.f32 %v4853_v41, %v1172_v2  ;;  %v1447_v54 = vmul.f32 %v6871_v14, %v6871_v14 }
 0x155   :  { %v4855_v50 = vpop.f32.mrf.mxu1  ;;  %v1378_v63 = vpop.f32.mrf.mxu0 }
 0x156   :  { %v4856_v57 = vadd.f32 %v4855_v50, %v4854_v30  ;;  %v6876_v13 = vadd.f32 %v1365_v11, %v1269_v46  ;;  %v1185_v30 = vadd.f32 %v4798_v56, %v6637_v43 }
 0x157   :  { %v4857_v35 = vpop.f32.mrf.mxu1  ;;  %v5303_v16 = vpop.f32.mrf.mxu0 }
 0x158   :  { %v1274_v23 = vadd.f32 %v4856_v57, %v1177_v49  ;;  %v1425_v38 = vadd.f32 %v6876_v13, %v6871_v14  ;;  %v1448_v5 = vmul.f32 %v6876_v13, %v6876_v13 }
 0x159   :  { %v4858_v39 = vpop.f32.mrf.mxu1  ;;  %v1381_v56 = vpop.f32.mrf.mxu0 }
 0x15a   :  { %v6887_v34 = vadd.f32 %v5298_v52, %v1274_v23  ;;  %v1463_v11 = vadd.f32 %v1448_v5, %v1447_v54  ;;  %v4859_v50 = vadd.f32 %v4858_v39, %v4857_v35  ;;  %v4804_v23 = vadd.f32 %v6653_v24, %v6649_v21 }
 0x15b   :  { %v4860_v42 = vpop.f32.mrf.mxu1  ;;  %v4807_v21 = vadd.f32 %v6663_v29, %v6656_v18 }
 0x15c   :  { %v1449_v12 = vmul.f32 %v6887_v34, %v6887_v34  ;;  %v1426_v2 = vadd.f32 %v1425_v38, %v6887_v34  ;;  %v1277_v41 = vadd.f32 %v4859_v50, %v1180_v48  ;;  %v1188_v38 = vadd.f32 %v4801_v55, %v6645_v7 }
 0x15d   :  { %v4861_v46 = vpop.f32.mrf.mxu1  ;;  %v1193_v50 = vadd.f32 %v4804_v23, %v6651_v9  ;;  %v4810_v55 = vadd.f32 %v6679_v25, %v6672_v10 }
 0x15e   :  { %v1464_v31 = vadd.f32 %v1463_v11, %v1449_v12  ;;  %v6895_v33 = vadd.f32 %v5299_v36, %v1277_v41  ;;  %v4862_v52 = vadd.f32 %v4861_v46, %v4860_v42 }
 0x15f   :  { %v4863_v49 = vpop.f32.mrf.mxu1  ;;  %v1201_v10 = vadd.f32 %v4810_v55, %v6674_v51  ;;  %v4816_v51 = vadd.f32 %v6720_v59, %v6710_v22  ;;  %v4819_v22 = vadd.f32 %v6739_v15, %v6729_v3 }
 0x160   :  { %v1450_v57 = vmul.f32 %v6895_v33, %v6895_v33  ;;  %v1282_v35 = vadd.f32 %v4862_v52, %v1185_v30  ;;  %v1427_v54 = vadd.f32 %v1426_v2, %v6895_v33  ;;  %v5306_v2 = vpop.f32.mrf.mxu0 }
 0x161   :  { %v4864_v43 = vpop.f32.mrf.mxu1 }
 0x162   :  { %v4865_v5 = vadd.f32 %v4864_v43, %v4863_v49  ;;  %v6903_v28 = vadd.f32 %v1378_v63, %v1282_v35  ;;  %v1465_v40 = vadd.f32 %v1464_v31, %v1450_v57  ;;  %v1196_v31 = vadd.f32 %v4807_v21, %v6658_v60  ;;  %v1394_v57 = vpop.f32.mrf.mxu0  ;;  %v5665_v43 = vld [vmem:[%s8554_s5 + $0x1f8] sm:$0xff]  }
 0x163   :  { %v4866_v36 = vpop.f32.mrf.mxu1  ;;  %v4813_v60 = vadd.f32 %v6698_v61, %v6688_v32  ;;  %5104 = vmatprep.subr.bf16.mxu0 %v5665_v43 }
 0x164   :  { %v1428_v39 = vadd.f32 %v1427_v54, %v6903_v28  ;;  %v1451_v48 = vmul.f32 %v6903_v28, %v6903_v28  ;;  %v1285_v11 = vadd.f32 %v4865_v5, %v1188_v38 }
 0x165   :  { %v4867_v42 = vpop.f32.mrf.mxu1 }
 0x166   :  { %v1466_v24 = vadd.f32 %v1465_v40, %v1451_v48  ;;  %v4868_v7 = vadd.f32 %v4867_v42, %v4866_v36  ;;  %v6911_v12 = vadd.f32 %v1381_v56, %v1285_v11  ;;  %v5307_v36 = vpop.f32.mrf.mxu0 }
 0x167   :  { %v4869_v63 = vpop.f32.mrf.mxu1 }
 0x168   :  { %v1290_v41 = vadd.f32 %v4868_v7, %v1193_v50  ;;  %v1429_v30 = vadd.f32 %v1428_v39, %v6911_v12  ;;  %v1452_v46 = vmul.f32 %v6911_v12, %v6911_v12  ;;  %v1204_v50 = vadd.f32 %v4813_v60, %v6690_v6  ;;  %v1397_v21 = vpop.f32.mrf.mxu0 }
 0x169   :  { %v4870_v9 = vpop.f32.mrf.mxu1 }
 0x16a   :  { %v6919_v52 = vadd.f32 %v5302_v27, %v1290_v41  ;;  %v1467_v18 = vadd.f32 %v1466_v24, %v1452_v46  ;;  %v4871_v29 = vadd.f32 %v4870_v9, %v4869_v63  ;;  %v1209_v41 = vadd.f32 %v4816_v51, %v6715_v44  ;;  %v5310_v44 = vpop.f32.mrf.mxu0 }
 0x16b   :  { %v4872_v49 = vpop.f32.mrf.mxu1 }
 0x16c   :  { %v1453_v35 = vmul.f32 %v6919_v52, %v6919_v52  ;;  %v1430_v54 = vadd.f32 %v1429_v30, %v6919_v52  ;;  %v1293_v23 = vadd.f32 %v4871_v29, %v1196_v31  ;;  %v4822_v29 = vadd.f32 %v6804_v8, %v6794_v1 }
 0x16d   :  { %v4873_v25 = vpop.f32.mrf.mxu1  ;;  %v4825_v1 = vadd.f32 %v6823_v19, %v6813_v0  ;;  %v4767_v0 = vadd.f32 %v6844_v45, %v6835_v53 }
 0x16e   :  { %v1468_v27 = vadd.f32 %v1467_v18, %v1453_v35  ;;  %v6930_v38 = vadd.f32 %v5303_v16, %v1293_v23  ;;  %v4874_v5 = vadd.f32 %v4873_v25, %v4872_v49  ;;  %v1217_v25 = vadd.f32 %v4822_v29, %v6799_v37 }
 0x16f   :  { %v4875_v40 = vpop.f32.mrf.mxu1  ;;  %v4828_v37 = vadd.f32 %v6842_v26, %v6833_v17  ;;  %v1220_v51 = vadd.f32 %v4825_v1, %v6818_v58 }
 0x170   :  { %v1454_v56 = vmul.f32 %v6930_v38, %v6930_v38  ;;  %v1298_v39 = vadd.f32 %v4874_v5, %v1201_v10  ;;  %v1431_v48 = vadd.f32 %v1430_v54, %v6930_v38  ;;  %v4703_v5 = vadd.f32 %v6603_v4, %v6601_v62 }
 0x171   :  { %v4876_v11 = vpop.f32.mrf.mxu1  ;;  %v1225_v26 = vadd.f32 %v4828_v37, %v6840_v20 }
 0x172   :  { %v4877_v32 = vadd.f32 %v4876_v11, %v4875_v40  ;;  %v6938_v61 = vadd.f32 %v1394_v57, %v1298_v39  ;;  %v1469_v16 = vadd.f32 %v1468_v27, %v1454_v56  ;;  %v1212_v57 = vadd.f32 %v4819_v22, %v6734_v47  ;;  %v1410_v27 = vpop.f32.mrf.mxu0 }
 0x173   :  { %v4878_v42 = vpop.f32.mrf.mxu1 }
 0x174   :  { %v1432_v24 = vadd.f32 %v1431_v48, %v6938_v61  ;;  %v1455_v7 = vmul.f32 %v6938_v61, %v6938_v61  ;;  %v1301_v63 = vadd.f32 %v4877_v32, %v1204_v50  ;;  %v5797_v50 = vld [vmem:[%s8591_s29] ss:$0 sm:$0xff] }
 0x175   :  { %v4879_v30 = vpop.f32.mrf.mxu1  ;;  %v1034_v32 = vadd.f32 %v5797_v50, %v4703_v5 }
 0x176   :  { %v1470_v59 = vadd.f32 %v1469_v16, %v1455_v7  ;;  %v4880_v6 = vadd.f32 %v4879_v30, %v4878_v42  ;;  %v6946_v46 = vadd.f32 %v1397_v21, %v1301_v63  ;;  %v8595_v7 = vld [vmem:[#allocation5_spill] sm:$0xff] }
 0x177   :  { %v4881_v55 = vpop.f32.mrf.mxu1  ;;  %v1131_v45 = vadd.f32 %v4767_v0, %v1034_v32 }
 0x178   :  { %v1306_v9 = vadd.f32 %v4880_v6, %v1209_v41  ;;  %v1433_v31 = vadd.f32 %v1432_v24, %v6946_v46  ;;  %v1456_v18 = vmul.f32 %v6946_v46, %v6946_v46  ;;  %v8594_v24 = vld [vmem:[#allocation4_spill] sm:$0xff] }
 0x179   :  { %v4882_v49 = vpop.f32.mrf.mxu1  ;;  %v4831_v63 = vadd.f32 %v8595_v7, %v8594_v24  ;;  %v7047_v7 = vld [vmem:[%s8556_s4] ss:$0 sm:$0xff] }
 0x17a   :  { %v6954_v35 = vadd.f32 %v5306_v2, %v1306_v9  ;;  %v1471_v3 = vadd.f32 %v1470_v59, %v1456_v18  ;;  %v4883_v15 = vadd.f32 %v4882_v49, %v4881_v55 }
 0x17b   :  { %v4884_v54 = vpop.f32.mrf.mxu1  ;;  %v1228_v18 = vadd.f32 %v4831_v63, %v1131_v45 }
 0x17c   :  { %v1457_v23 = vmul.f32 %v6954_v35, %v6954_v35  ;;  %v1434_v43 = vadd.f32 %v1433_v31, %v6954_v35  ;;  %v1309_v10 = vadd.f32 %v4883_v15, %v1212_v57 }
 0x17d   :  { %v4885_v60 = vpop.f32.mrf.mxu1 }
 0x17e   :  { %v1472_v8 = vadd.f32 %v1471_v3, %v1457_v23  ;;  %v6962_v47 = vadd.f32 %v5307_v36, %v1309_v10  ;;  %v4886_v2 = vadd.f32 %v4885_v60, %v4884_v54  ;;  %v5311_v36 = vpop.f32.mrf.mxu0 }
 0x17f   :  { %v4887_v40 = vpop.f32.mrf.mxu1 }
 0x180   :  { %v1458_v56 = vmul.f32 %v6962_v47, %v6962_v47  ;;  %v1314_v39 = vadd.f32 %v4886_v2, %v1217_v25  ;;  %v1435_v48 = vadd.f32 %v1434_v43, %v6962_v47  ;;  %v1413_v58 = vpop.f32.mrf.mxu0 }
 0x181   :  { %v4888_v19 = vpop.f32.mrf.mxu1 }
 0x182   :  { %v6974_v11 = vadd.f32 %v1410_v27, %v1314_v39  ;;  %v1473_v62 = vadd.f32 %v1472_v8, %v1458_v56  ;;  %v4889_v4 = vadd.f32 %v4888_v19, %v4887_v40 }
 0x183   :  { %v4890_v16 = vpop.f32.mrf.mxu1 }
 0x184   :  { %v1436_v42 = vadd.f32 %v1435_v48, %v6974_v11  ;;  %v1459_v17 = vmul.f32 %v6974_v11, %v6974_v11  ;;  %v1317_v53 = vadd.f32 %v4889_v4, %v1220_v51 }
 0x185   :  { %v4891_v21 = vpop.f32.mrf.mxu1 }
 0x186   :  { %v1474_v41 = vadd.f32 %v1473_v62, %v1459_v17  ;;  %v6985_v30 = vadd.f32 %v1413_v58, %v1317_v53  ;;  %v4892_v22 = vadd.f32 %v4891_v21, %v4890_v16 }
 0x187   :  { %v4893_v59 = vpop.f32.mrf.mxu1 }
 0x188   :  { %v1437_v6 = vadd.f32 %v1436_v42, %v6985_v30  ;;  %v1460_v55 = vmul.f32 %v6985_v30, %v6985_v30  ;;  %v1322_v9 = vadd.f32 %v4892_v22, %v1225_v26 }
 0x189   :  { %v4894_v31 = vpop.f32.mrf.mxu1 }
 0x18a   :  { %v1475_v20 = vadd.f32 %v1474_v41, %v1460_v55  ;;  %v6990_v29 = vadd.f32 %v5310_v44, %v1322_v9  ;;  %v4895_v49 = vadd.f32 %v4894_v31, %v4893_v59 }
 0x18c   :  { %v1438_v57 = vadd.f32 %v1437_v6, %v6990_v29  ;;  %v1461_v3 = vmul.f32 %v6990_v29, %v6990_v29  ;;  %v1325_v15 = vadd.f32 %v4895_v49, %v1228_v18 }
 0x18e   :  { %v1476_v54 = vadd.f32 %v1475_v20, %v1461_v3  ;;  %v1422_v23 = vadd.f32 %v5311_v36, %v1325_v15 }
 0x190   :  { %v1439_v43 = vadd.f32 %v1438_v57, %v1422_v23  ;;  %v1462_v10 = vmul.f32 %v1422_v23, %v1422_v23 }
 0x192   :  { %v1440_v25 = vrot.slane %v1439_v43, 4  ;;  %v1477_v60 = vadd.f32 %v1476_v54, %v1462_v10 }
 0x194   :  { %v1441_v27 = vadd.f32 %v1440_v25, %v1439_v43  ;;  %v1478_v1 = vrot.slane %v1477_v60, 4 }
 0x196   :  { %v1442_v8 = vrot.slane %v1441_v27, 2  ;;  %v1479_v2 = vadd.f32 %v1478_v1, %v1477_v60 }
 0x198   :  { %v1443_v5 = vadd.f32 %v1442_v8, %v1441_v27  ;;  %v1480_v44 = vrot.slane %v1479_v2, 2 }
 0x19a   :  { %v1444_v40 = vrot.slane %v1443_v5, 1  ;;  %v1481_v56 = vadd.f32 %v1480_v44, %v1479_v2 }
 0x19c   :  { %v1445_v39 = vadd.f32 %v1444_v40, %v1443_v5  ;;  %v1482_v48 = vrot.slane %v1481_v56, 1 }
 0x19e   :  { %v6995_v37 = vmul.f32 0.0078125, %v1445_v39  ;;  %v1483_v0 = vadd.f32 %v1482_v48, %v1481_v56  ;;  %v1642_v56 = vld [vmem:[#allocation2 + $0x8] sm:$0x3] }
 0x1a0   :  { %v1484_v19 = vmul.f32 0.0078125, %v1483_v0  ;;  %v1485_v36 = vmul.f32 %v6995_v37, %v6995_v37  ;;  %v1503_v51 = vsub.f32 %v1422_v23, %v6995_v37  ;;  %v1488_v62 = vsub.f32 %v6871_v14, %v6995_v37 }
 0x1a1   :  { %v1489_v4 = vsub.f32 %v6876_v13, %v6995_v37  ;;  %v1490_v50 = vsub.f32 %v6887_v34, %v6995_v37  ;;  %v1491_v32 = vsub.f32 %v6895_v33, %v6995_v37  ;;  %v1492_v16 = vsub.f32 %v6903_v28, %v6995_v37 }
 0x1a2   :  { %v1486_v42 = vsub.f32 %v1484_v19, %v1485_v36  ;;  %v1493_v17 = vsub.f32 %v6911_v12, %v6995_v37  ;;  %v1494_v53 = vsub.f32 %v6919_v52, %v6995_v37  ;;  %v1495_v14 = vsub.f32 %v6930_v38, %v6995_v37 }
 0x1a3   :  { %v1496_v13 = vsub.f32 %v6938_v61, %v6995_v37  ;;  %v1497_v34 = vsub.f32 %v6946_v46, %v6995_v37  ;;  %v1498_v33 = vsub.f32 %v6954_v35, %v6995_v37  ;;  %v1499_v28 = vsub.f32 %v6962_v47, %v6995_v37  ;;  %v7035_v46 = vld [vmem:[%s8555_s3] ss:$0 sm:$0xff] }
 0x1a4   :  { %v1487_v26 = vmax.f32 %v1486_v42, 0.0  ;;  %v1500_v12 = vsub.f32 %v6974_v11, %v6995_v37  ;;  %v1501_v52 = vsub.f32 %v6985_v30, %v6995_v37  ;;  %v1502_v38 = vsub.f32 %v6990_v29, %v6995_v37 }
 0x1a5   :  { %v8596_v35 = vmov 0.0  }
 0x1a6   :  { %v1504_v61 = vadd.f32 1e-05, %v1487_v26  ;;  %v7038_v47 = vrot.slane %v8596_v35, 1 }
 0x1a8   :  { %5729 = vrsqrt.f32 %v1504_v61 }
 0x1b5   :  { %v7030_v45 = vpop.eup %5729 }
 0x1b6   :  { %v1521_v11 = vmul.f32 %v7030_v45, %v1503_v51  ;;  %v1506_v58 = vmul.f32 %v7030_v45, %v1488_v62  ;;  %v1507_v21 = vmul.f32 %v7030_v45, %v1489_v4  ;;  %v1508_v24 = vmul.f32 %v7030_v45, %v1490_v50 }
 0x1b7   :  { %v1509_v63 = vmul.f32 %v7030_v45, %v1491_v32  ;;  %v1510_v41 = vmul.f32 %v7030_v45, %v1492_v16  ;;  %v1511_v30 = vmul.f32 %v7030_v45, %v1493_v17  ;;  %v1512_v22 = vmul.f32 %v7030_v45, %v1494_v53 }
 0x1b8   :  { %v1544_v59 = vmul.f32 %v7035_v46, %v1521_v11  ;;  %v1529_v6 = vmul.f32 %v7035_v46, %v1506_v58  ;;  %v1530_v55 = vmul.f32 %v7035_v46, %v1507_v21  ;;  %v1531_v9 = vmul.f32 %v7035_v46, %v1508_v24 }
 0x1b9   :  { %v1532_v31 = vmul.f32 %v7035_v46, %v1509_v63  ;;  %v1533_v18 = vmul.f32 %v7035_v46, %v1510_v41  ;;  %v1534_v20 = vmul.f32 %v7035_v46, %v1511_v30  ;;  %v1513_v49 = vmul.f32 %v7030_v45, %v1495_v14 }
 0x1ba   :  { %v1567_v57 = vadd.f32 %v7047_v7, %v1544_v59  ;;  %v1552_v3 = vadd.f32 %v7047_v7, %v1529_v6  ;;  %v1553_v15 = vadd.f32 %v7047_v7, %v1530_v55  ;;  %v1554_v54 = vadd.f32 %v7047_v7, %v1531_v9 }
 0x1bb   :  { %v1555_v23 = vadd.f32 %v7047_v7, %v1532_v31  ;;  %v1556_v43 = vadd.f32 %v7047_v7, %v1533_v18  ;;  %v1557_v10 = vadd.f32 %v7047_v7, %v1534_v20  ;;  %v1535_v25 = vmul.f32 %v7035_v46, %v1512_v22 }
 0x1bc   :  { %v1583_v60 = vmax.f32 %v1567_v57, 0.0  ;;  %v1568_v27 = vmax.f32 %v1552_v3, 0.0  ;;  %v1569_v1 = vmax.f32 %v1553_v15, 0.0  ;;  %v1570_v8 = vmax.f32 %v1554_v54, 0.0 }
 0x1bd   :  { %v1571_v2 = vmax.f32 %v1555_v23, 0.0  ;;  %v1572_v5 = vmax.f32 %v1556_v43, 0.0  ;;  %v1573_v44 = vmax.f32 %v1557_v10, 0.0  ;;  %v1536_v40 = vmul.f32 %v7035_v46, %v1513_v49  ;;  %v7119_v10 = vld [vmem:[#allocation2] sm:$0xff] }
 0x1be   :  { %1640 = vst [vmem:[#allocation2 + $0x121] sm:$0xff] %v1583_v60  ;;  %1625 = vst [vmem:[#allocation2 + $0x11] sm:$0xff] %v1568_v27  ;;  %v1558_v39 = vadd.f32 %v7047_v7, %v1535_v25  ;;  %v1514_v48 = vmul.f32 %v7030_v45, %v1496_v13  ;;  %v1515_v0 = vmul.f32 %v7030_v45, %v1497_v34  ;;  %v1714_v17 = vrot.slane %v1642_v56, 1  ;;  %v5658_v27 = vld [vmem:[%s8554_s5 + $0x138] sm:$0xff]  }
 0x1bf   :  { %1626 = vst [vmem:[#allocation2 + $0x21] sm:$0xff] %v1569_v1  ;;  %1627 = vst [vmem:[#allocation2 + $0x31] sm:$0xff] %v1570_v8  ;;  %v1516_v19 = vmul.f32 %v7030_v45, %v1498_v33  ;;  %v1559_v36 = vadd.f32 %v7047_v7, %v1536_v40  ;;  %v1517_v51 = vmul.f32 %v7030_v45, %v1499_v28 }
 0x1c0   :  { %1628 = vst [vmem:[#allocation2 + $0x41] sm:$0xff] %v1571_v2  ;;  %1629 = vst [vmem:[#allocation2 + $0x51] sm:$0xff] %v1572_v5  ;;  %v1518_v62 = vmul.f32 %v7030_v45, %v1500_v12  ;;  %v7078_v4 = vmul.f32 %v7030_v45, %v1501_v52  ;;  %v1574_v50 = vmax.f32 %v1558_v39, 0.0  ;;  %v1537_v32 = vmul.f32 %v7035_v46, %v1514_v48  ;;  %v5667_v39 = vld [vmem:[%s8554_s5 + $0x1b8] sm:$0xff]  }
 0x1c1   :  { %1630 = vst [vmem:[#allocation2 + $0x61] sm:$0xff] %v1573_v44  ;;  %v1538_v16 = vmul.f32 %v7035_v46, %v1515_v0  ;;  %v1539_v42 = vmul.f32 %v7035_v46, %v1516_v19  ;;  %v1575_v53 = vmax.f32 %v1559_v36, 0.0  ;;  %v1540_v14 = vmul.f32 %v7035_v46, %v1517_v51  ;;  %v5659_v51 = vld [vmem:[%s8554_s5 + $0x170] sm:$0xff]  }
 0x1c2   :  { %v1541_v13 = vmul.f32 %v7035_v46, %v1518_v62  ;;  %1631 = vst [vmem:[#allocation2 + $0x71] sm:$0xff] %v1574_v50  ;;  %v1560_v34 = vadd.f32 %v7047_v7, %v1537_v32  ;;  %v7092_v26 = vmul.f32 %v7030_v45, %v1502_v38  ;;  %v7095_v12 = vrot.slane %v8596_v35, 2  ;;  %v5669_v62 = vld [vmem:[%s8554_s5 + $0x1f0] sm:$0xff]  }
 0x1c3   :  { %v1561_v33 = vadd.f32 %v7047_v7, %v1538_v16  ;;  %v1562_v28 = vadd.f32 %v7047_v7, %v1539_v42  ;;  %v1778_v52 = vrot.slane %v1642_v56, 2  ;;  %1632 = vst [vmem:[#allocation2 + $0x81] sm:$0xff] %v1575_v53  ;;  %v1563_v61 = vadd.f32 %v7047_v7, %v1540_v14  ;;  %v5670_v53 = vld [vmem:[%s8554_s5 + $0x1b0] sm:$0xff]  }
 0x1c4   :  { %v1564_v11 = vadd.f32 %v7047_v7, %v1541_v13  ;;  %v1576_v58 = vmax.f32 %v1560_v34, 0.0  ;;  %v1715_v29 = vsel %vm133_vm0, %v7038_v47, %v1714_v17  ;;  %v5660_v17 = vld [vmem:[%s8554_s5 + $0x130] sm:$0xff]  }
 0x1c5   :  { %v1577_v21 = vmax.f32 %v1561_v33, 0.0  ;;  %v1578_v24 = vmax.f32 %v1562_v28, 0.0  ;;  %v1643_v63 = vld [vmem:[#allocation2 + $0x10] sm:$0xff]  ;;  %v1644_v30 = vld [vmem:[#allocation2 + $0x18] sm:$0x3]  ;;  %v1579_v37 = vmax.f32 %v1563_v61, 0.0  ;;  %v1779_v31 = vsel %vm198_vm1, %v7095_v12, %v1778_v52 }
 0x1c6   :  { %v7099_v41 = vld [vmem:[#allocation2 + $0x20] sm:$0xff]  ;;  %v1580_v38 = vmax.f32 %v1564_v11, 0.0  ;;  %v1780_v45 = vrot.slane %v1643_v63, 2  ;;  %v1716_v22 = vrot.slane %v1643_v63, 1  ;;  %v1717_v59 = vrot.slane %v1644_v30, 1  ;;  %v7104_v6 = vld [vmem:[#allocation2 + $0x30] sm:$0xff] }
 0x1c7   :  { %v1884_v35 = vpack.c.bf16 %v7099_v41, %v1643_v63  ;;  %v7106_v55 = vld [vmem:[#allocation2 + $0x40] sm:$0xff]  ;;  %1633 = vst [vmem:[#allocation2 + $0xb1] sm:$0xff] %v1576_v58  ;;  %1634 = vst [vmem:[#allocation2 + $0xc1] sm:$0xff] %v1577_v21  ;;  %v1781_v9 = vrot.slane %v1644_v30, 2  ;;  %v1646_v18 = vld [vmem:[#allocation2 + $0x28] sm:$0x3]  ;;  %v1881_v25 = vpack.c.bf16 %v1643_v63, %v7119_v10  ;;  %v7200_v30 = vpack.c.bf16 %v7104_v6, %v7099_v41 }
 0x1c8   :  { %1635 = vst [vmem:[#allocation2 + $0xd1] sm:$0xff] %v1578_v24  ;;  %v1648_v20 = vld [vmem:[#allocation2 + $0x38] sm:$0x3]  ;;  %v1719_v49 = vrot.slane %v7099_v41, 1  ;;  %1636 = vst [vmem:[#allocation2 + $0xe1] sm:$0xff] %v1579_v37  ;;  %v7112_v57 = vsel %vm133_vm0, %v1716_v22, %v1717_v59  ;;  %v1720_v3 = vrot.slane %v1646_v18, 1  ;;  %v1890_v60 = vpack.c.bf16 %v7106_v55, %v7104_v6 }
 0x1c9   :  { %1637 = vst [vmem:[#allocation2 + $0xf1] sm:$0xff] %v1580_v38  ;;  %2647 = vmatprep.mubr.bf16.mxu0 %v1884_v35  ;;  %v1722_v15 = vrot.slane %v7104_v6, 1  ;;  %v1723_v54 = vrot.slane %v1648_v20, 1  ;;  %v1882_v23 = vpack.c.bf16 %v7112_v57, %v1715_v29  ;;  %v7117_v43 = vsel %vm198_vm1, %v1780_v45, %v1781_v9  ;;  %v7127_v1 = vld [vmem:[#allocation2 + $0x48] sm:$0x3]  ;;  %v7137_v40 = vld [vmem:[#allocation2 + $0x50] sm:$0xff] }
 0x1ca   :  { %v1883_v8 = vpack.c.bf16 %v7117_v43, %v1779_v31  ;;  %v7131_v2 = vsel %vm133_vm0, %v1719_v49, %v1720_v3  ;;  %v1783_v44 = vrot.slane %v7099_v41, 2  ;;  %v7139_v56 = vld [vmem:[#allocation2 + $0x58] sm:$0x3]  ;;  %v1784_v0 = vrot.slane %v1646_v18, 2  ;;  %v7172_v34 = vld [vmem:[#allocation2 + $0x60] sm:$0xff]  ;;  %v5661_v33 = vld [vmem:[%s8554_s5 + $0x168] sm:$0xff]  }
 0x1cb   :  { %v7134_v5 = vsel %vm133_vm0, %v1722_v15, %v1723_v54  ;;  %2550 = vmatprep.mubr.bf16.mxu1 %v1882_v23  ;;  %v1786_v19 = vrot.slane %v7104_v6, 2  ;;  %v1787_v36 = vrot.slane %v1648_v20, 2  ;;  %v1725_v50 = vrot.slane %v7106_v55, 1  ;;  %v5671_v28 = vld [vmem:[%s8554_s5 + $0x1e8] sm:$0xff]   ;;  %v7186_v11 = vld [vmem:[#allocation2 + $0x70] sm:$0xff]  ;;  %v5663_v59 = vld [vmem:[%s8554_s5 + $0x160] sm:$0xff]  }
 0x1cc   :  { %v7146_v48 = vpack.c.bf16 %v7134_v5, %v7131_v2  ;;  %2648 = vmatmul.mubr.bf16.vlgmr.msra.gmra.mxu0 %v1883_v8  ;;  %2551 = vmatmul.mubr.bf16.vlgmr.msra.gmra.mxu1 %v1881_v25  ;;  %v1726_v32 = vrot.slane %v7127_v1, 1  ;;  %v1728_v16 = vrot.slane %v7137_v40, 1  ;;  %v1729_v42 = vrot.slane %v7139_v56, 1  ;;  %v7188_v58 = vld [vmem:[#allocation2 + $0x68] sm:$0x3]  ;;  %v5675_v6 = vld [vmem:[%s8554_s5 + $0x1e0] sm:$0xff]  }
 0x1cd   :  { %2655 = vmatprep.mubr.bf16.mxu0 %v1890_v60  ;;  %5041 = vmatpush3.bf16.msra.mxu1 %v5658_v27  ;;  %v7167_v14 = vsel %vm198_vm1, %v1783_v44, %v1784_v0  ;;  %v7170_v13 = vsel %vm198_vm1, %v1786_v19, %v1787_v36  ;;  %v7190_v21 = vld [vmem:[#allocation2 + $0x78] sm:$0x3]  ;;  %v1542_v24 = vmul.f32 %v7035_v46, %v7078_v4  ;;  %v1789_v37 = vrot.slane %v7106_v55, 2  ;;  %v5662_v38 = vld [vmem:[%s8554_s5 + $0x128] sm:$0xff]   ;;  %v5664_v49 = vld [vmem:[%s8554_s5 + $0x120] sm:$0xff]  }
 0x1ce   :  { %2558 = vmatprep.mubr.bf16.mxu1 %v7146_v48  ;;  %5105 = vmatpush3.bf16.msra.mxu0 %v5667_v39  ;;  %v7181_v52 = vsel %vm133_vm0, %v1725_v50, %v1726_v32  ;;  %v7184_v61 = vsel %vm133_vm0, %v1728_v16, %v1729_v42  ;;  %v7196_v63 = vpack.c.bf16 %v7170_v13, %v7167_v14  ;;  %v5673_v4 = vld [vmem:[%s8554_s5 + $0x1a8] sm:$0xff]   ;;  %v1790_v41 = vrot.slane %v7127_v1, 2  ;;  %v5676_v3 = vld [vmem:[%s8554_s5 + $0x1a0] sm:$0xff]   ;;  %v5666_v25 = vld [vmem:[%s8554_s5 + $0x158] sm:$0xff]  }
 0x1cf   :  { %5042 = vmatprep.subr.bf16.mxu1 %v5659_v51  ;;  %5106 = vmatprep.subr.bf16.mxu0 %v5669_v62  ;;  %v1896_v29 = vpack.c.bf16 %v7172_v34, %v7137_v40  ;;  %v7213_v45 = vpack.c.bf16 %v7184_v61, %v7181_v52  ;;  %v1792_v35 = vrot.slane %v7137_v40, 2  ;;  %v1793_v22 = vrot.slane %v7139_v56, 2  ;;  %v7243_v23 = vld [vmem:[#allocation2 + $0x80] sm:$0xff]  ;;  %v5677_v27 = vld [vmem:[%s8554_s5 + $0x1d8] sm:$0xff]   ;;  %v7262_v56 = vld [vmem:[#allocation2 + $0xb0] sm:$0xff] }
 0x1d0   :  { %v1731_v9 = vrot.slane %v7172_v34, 1  ;;  %v1732_v31 = vrot.slane %v7188_v58, 1  ;;  %v1734_v18 = vrot.slane %v7186_v11, 1  ;;  %v1735_v20 = vrot.slane %v7190_v21, 1  ;;  %v7264_v39 = vld [vmem:[#allocation2 + $0xa8] sm:$0x3] }
 0x1d1   :  { %5043 = vmatpush3.bf16.msra.mxu1 %v5660_v17  ;;  %v7238_v15 = vsel %vm198_vm1, %v1789_v37, %v1790_v41  ;;  %v7241_v54 = vsel %vm198_vm1, %v1792_v35, %v1793_v22  ;;  %v1565_v60 = vadd.f32 %v7047_v7, %v1542_v24  ;;  %v7260_v44 = vpack.c.bf16 %v7137_v40, %v7106_v55  ;;  %v7266_v0 = vld [vmem:[#allocation2 + $0xb8] sm:$0x3]  ;;  %v5672_v42 = vld [vmem:[%s8554_s5 + $0x150] sm:$0xff]   ;;  %v7321_v41 = vld [vmem:[#allocation2 + $0xc0] sm:$0xff] }
 0x1d2   :  { %5107 = vmatpush3.bf16.msra.mxu0 %v5670_v53  ;;  %5044 = vmatprep.subr.bf16.mxu1 %v5661_v33  ;;  %v7253_v1 = vsel %vm133_vm0, %v1731_v9, %v1732_v31  ;;  %v7256_v8 = vsel %vm133_vm0, %v1734_v18, %v1735_v20  ;;  %v1543_v19 = vmul.f32 %v7035_v46, %v7092_v26  ;;  %v1795_v62 = vrot.slane %v7172_v34, 2  ;;  %v5668_v40 = vld [vmem:[%s8554_s5 + $0x118] sm:$0xff]  }
 0x1d3   :  { %5108 = vmatprep.subr.bf16.mxu0 %v5671_v28  ;;  %v7272_v36 = vpack.c.bf16 %v7241_v54, %v7238_v15  ;;  %v1902_v51 = vpack.c.bf16 %v7243_v23, %v7186_v11  ;;  %v1796_v55 = vrot.slane %v7188_v58, 2  ;;  %v5679_v46 = vld [vmem:[%s8554_s5 + $0x198] sm:$0xff]   ;;  %v7286_v26 = vpack.c.bf16 %v7256_v8, %v7253_v1  ;;  %v5681_v28 = vld [vmem:[%s8554_s5 + $0x1d0] sm:$0xff]  }
 0x1d4   :  { %2656 = vmatmul.mubr.bf16.gmra.mxu0 %v7196_v63  ;;  %2559 = vmatmul.mubr.bf16.gmra.mxu1 %v7200_v30  ;;  %v1798_v50 = vrot.slane %v7186_v11, 2  ;;  %v1799_v32 = vrot.slane %v7190_v21, 2  ;;  %v1581_v16 = vmax.f32 %v1565_v60, 0.0  ;;  %v1738_v17 = vrot.slane %v7264_v39, 1  ;;  %v5674_v58 = vld [vmem:[%s8554_s5 + $0x110] sm:$0xff]  }
 0x1d5   :  { %2663 = vmatprep.mubr.bf16.mxu0 %v1896_v29  ;;  %2566 = vmatprep.mubr.bf16.mxu1 %v7213_v45  ;;  %v1740_v53 = vrot.slane %v7262_v56, 1  ;;  %v1741_v33 = vrot.slane %v7266_v0, 1  ;;  %v5682_v21 = vld [vmem:[%s8554_s5 + $0x190] sm:$0xff]   ;;  %v7309_v24 = vsel %vm198_vm1, %v1795_v62, %v1796_v55  ;;  %v1566_v37 = vadd.f32 %v7047_v7, %v1543_v19  ;;  %v7330_v7 = vld [vmem:[#allocation2 + $0xc8] sm:$0x3]  ;;  %v5686_v55 = vld [vmem:[%s8554_s5 + $0x100] sm:$0xff]  }
 0x1d6   :  { %5045 = vmatpush3.bf16.msra.mxu1 %v5662_v38  ;;  %5109 = vmatpush3.bf16.msra.mxu0 %v5673_v4  ;;  %1638 = vst [vmem:[#allocation2 + $0x101] sm:$0xff] %v1581_v16  ;;  %v7312_v29 = vsel %vm198_vm1, %v1798_v50, %v1799_v32  ;;  %v5678_v38 = vld [vmem:[%s8554_s5 + $0x148] sm:$0xff]   ;;  %v1739_v35 = vsel %vm133_vm0, %v7038_v47, %v1738_v17  ;;  %v1802_v20 = vrot.slane %v7264_v39, 2  ;;  %v5687_v39 = vld [vmem:[%s8554_s5 + $0x1c0] sm:$0xff]   ;;  %v1743_v19 = vrot.slane %v7321_v41, 1  ;;  %v7380_v16 = vld [vmem:[%s8554_s5 + $0x238] sm:$0xff]  }
 0x1d7   :  { %5046 = vmatprep.subr.bf16.mxu1 %v5663_v59  ;;  %5110 = vmatprep.subr.bf16.mxu0 %v5675_v6  ;;  %v5683_v4 = vld [vmem:[%s8554_s5 + $0x1c8] sm:$0xff]   ;;  %v7326_v22 = vsel %vm133_vm0, %v1740_v53, %v1741_v33  ;;  %v7328_v59 = vld [vmem:[#allocation2 + $0xd0] sm:$0xff]  ;;  %v7332_v6 = vld [vmem:[#allocation2 + $0xd8] sm:$0x3]  ;;  %v1582_v9 = vmax.f32 %v1566_v37, 0.0  ;;  %v7336_v31 = vpack.c.bf16 %v7312_v29, %v7309_v24  ;;  %v7340_v18 = vpack.c.bf16 %v7186_v11, %v7172_v34 }
 0x1d8   :  { %v1909_v60 = vpack.c.bf16 %v7326_v22, %v1739_v35  ;;  %v1804_v34 = vrot.slane %v7262_v56, 2  ;;  %v1805_v11 = vrot.slane %v7266_v0, 2  ;;  %v1746_v0 = vrot.slane %v7328_v59, 1  ;;  %v1669_v32 = vld [vmem:[#allocation2 + $0xe0] sm:$0xff]  ;;  %v1671_v53 = vld [vmem:[#allocation2 + $0xf0] sm:$0xff] }
 0x1d9   :  { %1639 = vst [vmem:[#allocation2 + $0x111] sm:$0xff] %v1582_v9  ;;  %v1747_v62 = vrot.slane %v7332_v6, 1  ;;  %v1670_v33 = vld [vmem:[#allocation2 + $0xe8] sm:$0x3]  ;;  %v1917_v37 = vpack.c.bf16 %v1669_v32, %v7328_v59  ;;  %v1808_v35 = vrot.slane %v7330_v7, 2  ;;  %v1810_v9 = vrot.slane %v7328_v59, 2 }
 0x1da   :  { %5047 = vmatpush3.bf16.msra.mxu1 %v5664_v49  ;;  %5111 = vmatpush3.bf16.msra.mxu0 %v5676_v3  ;;  %v5680_v49 = vld [vmem:[%s8554_s5 + $0x108] sm:$0xff]   ;;  %v7375_v50 = vsel %vm198_vm1, %v1804_v34, %v1805_v11 }
 0x1db   :  { %5048 = vmatprep.subr.bf16.mxu1 %v5666_v25  ;;  %5112 = vmatprep.subr.bf16.mxu0 %v5677_v27  ;;  %v5685_v3 = vld [vmem:[%s8554_s5 + $0x188] sm:$0xff]   ;;  %v1911_v25 = vpack.c.bf16 %v7321_v41, %v7262_v56  ;;  %v5684_v27 = vld [vmem:[%s8554_s5 + $0x140] sm:$0xff]   ;;  %v7386_v17 = vsel %vm133_vm0, %v1746_v0, %v1747_v62  ;;  %v7420_v0 = vpack.c.bf16 %v7328_v59, %v7321_v41  ;;  %v1813_v62 = vrot.slane %v1669_v32, 2 }
 0x1dc   :  { %2664 = vmatmul.mubr.bf16.gmra.mxu0 %v7272_v36  ;;  %2567 = vmatmul.mubr.bf16.gmra.mxu1 %v7260_v44 }
 0x1dd   :  { %2671 = vmatprep.mubr.bf16.mxu0 %v1902_v51  ;;  %2574 = vmatprep.mubr.bf16.mxu1 %v7286_v26  ;;  %v1744_v51 = vrot.slane %v7330_v7, 1  ;;  %v1673_v34 = vld [vmem:[#allocation2 + $0x100] sm:$0xff] }
 0x1de   :  { %5049 = vmatpush3.bf16.msra.mxu1 %v5668_v40  ;;  %5113 = vmatpush3.bf16.msra.mxu0 %v5679_v46  ;;  %v5688_v40 = vld [vmem:[%s8554_s5 + $0x180] sm:$0xff]   ;;  %v1803_v46 = vsel %vm198_vm1, %v7095_v12, %v1802_v20  ;;  %v1811_v20 = vrot.slane %v7332_v6, 2 }
 0x1df   :  { %5050 = vmatprep.subr.bf16.mxu1 %v5672_v42  ;;  %5114 = vmatprep.subr.bf16.mxu0 %v5681_v28  ;;  %v7383_v42 = vsel %vm133_vm0, %v1743_v19, %v1744_v51  ;;  %v1672_v28 = vld [vmem:[#allocation2 + $0xf8] sm:$0x3] }
 0x1e0   :  { %v7406_v7 = vsel %vm198_vm1, %v1810_v9, %v1811_v20  ;;  %v1676_v19 = vld [vmem:[#allocation2 + $0x118] sm:$0x3] }
 0x1e1   :  { %v1759_v9 = vrot.slane %v1676_v19, 1 }
 0x1e2   :  { %5051 = vmatpush3.bf16.msra.mxu1 %v5674_v58  ;;  %5115 = vmatpush3.bf16.msra.mxu0 %v5682_v21  ;;  %v1910_v58 = vpack.c.bf16 %v7375_v50, %v1803_v46  ;;  %v1908_v21 = vpack.c.bf16 %v7262_v56, %v7119_v10  ;;  %v1749_v56 = vrot.slane %v1669_v32, 1 }
 0x1e3   :  { %5052 = vmatprep.subr.bf16.mxu1 %v5678_v38  ;;  %5116 = vmatprep.subr.bf16.mxu0 %v5683_v4  ;;  %v1807_v38 = vrot.slane %v7321_v41, 2  ;;  %v7395_v4 = vpack.c.bf16 %v7386_v17, %v7383_v42 }
 0x1e4   :  { %2672 = vmatmul.mubr.bf16.gmra.mxu0 %v7336_v31  ;;  %2575 = vmatmul.mubr.bf16.gmra.mxu1 %v7340_v18 }
 0x1e5   :  { %2679 = vmatprep.mubr.bf16.mxu0 %v1911_v25  ;;  %2582 = vmatprep.mubr.bf16.mxu1 %v1909_v60  ;;  %v1753_v25 = vrot.slane %v1672_v28, 1  ;;  %v7403_v60 = vsel %vm198_vm1, %v1807_v38, %v1808_v35 }
 0x1e6   :  { %5053 = vmatpush3.bf16.msra.mxu1 %v5680_v49  ;;  %5117 = vmatpush3.bf16.msra.mxu0 %v5685_v3  ;;  %v1750_v49 = vrot.slane %v1670_v33, 1  ;;  %v1752_v3 = vrot.slane %v1671_v53, 1  ;;  %v7416_v51 = vpack.c.bf16 %v7406_v7, %v7403_v60 }
 0x1e7   :  { %5054 = vmatprep.subr.bf16.mxu1 %v5684_v27  ;;  %5118 = vmatprep.subr.bf16.mxu0 %v5687_v39  ;;  %v1675_v27 = vld [vmem:[#allocation2 + $0x110] sm:$0xff]  ;;  %v1674_v39 = vld [vmem:[#allocation2 + $0x108] sm:$0x3] }
 0x1e8   :  { %v7409_v6 = vsel %vm133_vm0, %v1749_v56, %v1750_v49  ;;  %v7412_v11 = vsel %vm133_vm0, %v1752_v3, %v1753_v25  ;;  %v1756_v38 = vrot.slane %v1674_v39, 1  ;;  %v1758_v35 = vrot.slane %v1675_v27, 1 }
 0x1e9   :  { %v7424_v46 = vpack.c.bf16 %v7412_v11, %v7409_v6  ;;  %v7447_v49 = vpack.c.bf16 %v1671_v53, %v1669_v32  ;;  %v1819_v3 = vrot.slane %v1673_v34, 2  ;;  %v1820_v25 = vrot.slane %v1674_v39, 2 }
 0x1ea   :  { %5055 = vmatpush3.bf16.msra.mxu1 %v5686_v55  ;;  %5119 = vmatpush3.bf16.msra.mxu0 %v5688_v40  ;;  %v1814_v55 = vrot.slane %v1670_v33, 2  ;;  %v1923_v40 = vpack.c.bf16 %v1673_v34, %v1671_v53  ;;  %v7435_v33 = vld [vmem:[#allocation2 + $0x120] sm:$0xff]  ;;  %v7441_v20 = vsel %vm133_vm0, %v1758_v35, %v1759_v9  ;;  %v5694_v9 = vld [vmem:[%s8554_s5 + $0x210] sm:$0xff]  }
 0x1eb   :  { %5312 = vmatprep.subr.bf16.mxu1 %v7380_v16  ;;  %v7458_v32 = vsel %vm198_vm1, %v1819_v3, %v1820_v25  ;;  %v1913_v3 = vpack.c.bf16 %v7403_v60, %v7375_v50  ;;  %v1680_v50 = vld [vmem:[#allocation2 + $0x138] sm:$0x3]  ;;  %v1678_v60 = vld [vmem:[#allocation2 + $0x128] sm:$0x3] }
 0x1ec   :  { %2680 = vmatmul.mubr.bf16.gmra.mxu0 %v1910_v58  ;;  %2583 = vmatmul.mubr.bf16.gmra.mxu1 %v1908_v21  ;;  %v1816_v58 = vrot.slane %v1671_v53, 2  ;;  %v1817_v21 = vrot.slane %v1672_v28, 2  ;;  %v7430_v41 = vsel %vm198_vm1, %v1813_v62, %v1814_v55  ;;  %v1929_v62 = vpack.c.bf16 %v7435_v33, %v1675_v27 }
 0x1ed   :  { %2687 = vmatprep.mubr.bf16.mxu0 %v1917_v37  ;;  %2590 = vmatprep.mubr.bf16.mxu1 %v7395_v4  ;;  %v1755_v37 = vrot.slane %v1673_v34, 1 }
 0x1ee   :  { %v7433_v59 = vsel %vm198_vm1, %v1816_v58, %v1817_v21  ;;  %v1823_v58 = vrot.slane %v1676_v19, 2  ;;  %v7467_v21 = vpack.c.bf16 %v1675_v27, %v1673_v34  ;;  %v1886_v19 = vpack.c.bf16 %v7167_v14, %v7117_v43  ;;  %v5690_v34 = vld [vmem:[%s8554_s5 + $0x230] sm:$0xff]   ;;  %v7487_v43 = vld [vmem:[#allocation2 + $0x98] sm:$0x3] }
 0x1ef   :  { %v7438_v28 = vsel %vm133_vm0, %v1755_v37, %v1756_v38  ;;  %v7445_v56 = vpack.c.bf16 %v7433_v59, %v7430_v41  ;;  %v1885_v37 = vpack.c.bf16 %v7131_v2, %v7112_v57  ;;  %v1892_v38 = vpack.c.bf16 %v7238_v15, %v7170_v13  ;;  %v5691_v57 = vld [vmem:[%s8554_s5 + $0x228] sm:$0xff]  }
 0x1f0   :  { %v7452_v55 = vpack.c.bf16 %v7441_v20, %v7438_v28  ;;  %v1658_v2 = vld [vmem:[#allocation2 + $0x88] sm:$0x3]  ;;  %v1898_v14 = vpack.c.bf16 %v7309_v24, %v7241_v54  ;;  %v1866_v13 = vrot.slane %v7487_v43, 1  ;;  %v1925_v25 = vpack.c.bf16 %v7458_v32, %v7433_v59 }
 0x1f1   :  { %v1846_v15 = vrot.slane %v1658_v2, 1 }
 0x1f4   :  { %2688 = vmatmul.mubr.bf16.gmra.mxu0 %v7416_v51  ;;  %2591 = vmatmul.mubr.bf16.gmra.mxu1 %v7420_v0 }
 0x1f5   :  { %2695 = vmatprep.mubr.bf16.mxu0 %v1923_v40  ;;  %2598 = vmatprep.mubr.bf16.mxu1 %v7424_v46  ;;  %v1822_v40 = vrot.slane %v1675_v27, 2  ;;  %v1897_v27 = vpack.c.bf16 %v7253_v1, %v7184_v61  ;;  %v5695_v61 = vld [vmem:[%s8554_s5 + $0x208] sm:$0xff]  }
 0x1f7   :  { %v7461_v53 = vsel %vm198_vm1, %v1822_v40, %v1823_v58  ;;  %v1932_v40 = vpack.c.bf16 %v7119_v10, %v7435_v33  ;;  %v7570_v58 = vld [vmem:[%s8557_s6] ss:$0 sm:$0xff] }
 0x1f8   :  { %v7465_v39 = vpack.c.bf16 %v7461_v53, %v7458_v32 }
 0x1fc   :  { %2696 = vmatmul.mubr.bf16.gmra.mxu0 %v7445_v56  ;;  %2599 = vmatmul.mubr.bf16.gmra.mxu1 %v7447_v49 }
 0x1fd   :  { %2703 = vmatprep.mubr.bf16.mxu0 %v1929_v62  ;;  %2606 = vmatprep.mubr.bf16.mxu1 %v7452_v55  ;;  %v1869_v62 = vrot.slane %v1680_v50, 1 }
 0x204   :  { %2704 = vmatmul.mubr.bf16.gmra.mxu0 %v7465_v39  ;;  %2607 = vmatmul.mubr.bf16.gmra.mxu1 %v7467_v21 }
 0x205   :  { %2841 = vmatprep.mubr.bf16.mxu0 %v7146_v48  ;;  %2744 = vmatprep.mubr.bf16.mxu1 %v1886_v19  ;;  %v1891_v48 = vpack.c.bf16 %v7181_v52, %v7134_v5  ;;  %v1854_v5 = vrot.slane %v1658_v2, 2  ;;  %v5693_v52 = vld [vmem:[%s8554_s5 + $0x218] sm:$0xff]  }
 0x20c   :  { %2842 = vmatmul.mubr.bf16.vlgmr.msra.gmra.mxu0 %v7200_v30  ;;  %2745 = vmatmul.mubr.bf16.vlgmr.msra.gmra.mxu1 %v1885_v37  ;;  %v5692_v30 = vld [vmem:[%s8554_s5 + $0x220] sm:$0xff]  }
 0x20d   :  { %2849 = vmatprep.mubr.bf16.mxu0 %v7213_v45  ;;  %2752 = vmatprep.mubr.bf16.mxu1 %v1892_v38  ;;  %v1845_v45 = vrot.slane %v7243_v23, 1 }
 0x20e   :  { %5313 = vmatpush3.bf16.msra.mxu1 %v7380_v16  ;;  %v1853_v16 = vrot.slane %v7243_v23, 2 }
 0x20f   :  { %5314 = vmatprep.subr.bf16.mxu1 %v5690_v34  ;;  %v1847_v54 = vsel %vm133_vm0, %v1845_v45, %v1846_v15 }
 0x210   :  { %v7508_v24 = vsel %vm198_vm1, %v1853_v16, %v1854_v5  ;;  %v1903_v1 = vpack.c.bf16 %v1847_v54, %v7256_v8  ;;  %v1912_v8 = vpack.c.bf16 %v7383_v42, %v7326_v22  ;;  %v1848_v22 = vrot.slane %v7435_v33, 1 }
 0x211   :  { %v1904_v35 = vpack.c.bf16 %v7508_v24, %v7312_v29  ;;  %v1905_v29 = vpack.c.bf16 %v7119_v10, %v7243_v23  ;;  %v1919_v23 = vpack.c.bf16 %v7430_v41, %v7406_v7  ;;  %v1849_v42 = vrot.slane %v1678_v60, 1 }
 0x212   :  { %5315 = vmatpush3.bf16.msra.mxu1 %v5690_v34  ;;  %v1856_v7 = vrot.slane %v7435_v33, 2  ;;  %v1924_v41 = vpack.c.bf16 %v7438_v28, %v7412_v11 }
 0x213   :  { %5316 = vmatprep.subr.bf16.mxu1 %v5691_v57 }
 0x214   :  { %2850 = vmatmul.mubr.bf16.gmra.mxu0 %v7260_v44  ;;  %2753 = vmatmul.mubr.bf16.gmra.mxu1 %v1891_v48  ;;  %v1867_v44 = vsel %vm133_vm0, %v7038_v47, %v1866_v13 }
 0x215   :  { %2857 = vmatprep.mubr.bf16.mxu0 %v7286_v26  ;;  %2760 = vmatprep.mubr.bf16.mxu1 %v1898_v14  ;;  %v1906_v26 = vpack.c.bf16 %v1867_v44, %v1847_v54 }
 0x216   :  { %5317 = vmatpush3.bf16.msra.mxu1 %v5691_v57 }
 0x217   :  { %5318 = vmatprep.subr.bf16.mxu1 %v5692_v30 }
 0x21a   :  { %5319 = vmatpush3.bf16.msra.mxu1 %v5692_v30 }
 0x21b   :  { %5320 = vmatprep.subr.bf16.mxu1 %v5693_v52 }
 0x21c   :  { %2858 = vmatmul.mubr.bf16.gmra.mxu0 %v7340_v18  ;;  %2761 = vmatmul.mubr.bf16.gmra.mxu1 %v1897_v27  ;;  %v5696_v18 = vld [vmem:[%s8554_s5 + $0x200] sm:$0xff]  }
 0x21d   :  { %2865 = vmatprep.mubr.bf16.mxu0 %v1906_v26  ;;  %2768 = vmatprep.mubr.bf16.mxu1 %v1904_v35 }
 0x21e   :  { %5321 = vmatpush3.bf16.msra.mxu1 %v5693_v52 }
 0x21f   :  { %5322 = vmatprep.subr.bf16.mxu1 %v5694_v9 }
 0x222   :  { %5323 = vmatpush3.bf16.msra.mxu1 %v5694_v9 }
 0x223   :  { %5324 = vmatprep.subr.bf16.mxu1 %v5695_v61 }
 0x224   :  { %2866 = vmatmul.mubr.bf16.gmra.mxu0 %v1905_v29  ;;  %2769 = vmatmul.mubr.bf16.gmra.mxu1 %v1903_v1 }
 0x225   :  { %2873 = vmatprep.mubr.bf16.mxu0 %v7395_v4  ;;  %2776 = vmatprep.mubr.bf16.mxu1 %v1913_v3  ;;  %v1918_v4 = vpack.c.bf16 %v7409_v6, %v7386_v17  ;;  %v1870_v17 = vsel %vm133_vm0, %v7038_v47, %v1869_v62  ;;  %v1874_v47 = vrot.slane %v7487_v43, 2 }
 0x226   :  { %5325 = vmatpush3.bf16.msra.mxu1 %v5695_v61 }
 0x227   :  { %5326 = vmatprep.subr.bf16.mxu1 %v5696_v18  ;;  %v1875_v11 = vsel %vm198_vm1, %v7095_v12, %v1874_v47 }
 0x228   :  { %v1907_v28 = vpack.c.bf16 %v1875_v11, %v7508_v24 }
 0x22a   :  { %5327 = vmatpush3.bf16.msra.mxu1 %v5696_v18 }
 0x22c   :  { %2874 = vmatmul.mubr.bf16.gmra.mxu0 %v7420_v0  ;;  %2777 = vmatmul.mubr.bf16.gmra.mxu1 %v1912_v8  ;;  %v1857_v0 = vrot.slane %v1678_v60, 2 }
 0x22d   :  { %2881 = vmatprep.mubr.bf16.mxu0 %v7424_v46  ;;  %2784 = vmatprep.mubr.bf16.mxu1 %v1919_v23  ;;  %v1850_v46 = vsel %vm133_vm0, %v1848_v22, %v1849_v42 }
 0x22e   :  { %v1858_v6 = vsel %vm198_vm1, %v1856_v7, %v1857_v0  ;;  %v1933_v59 = vpack.c.bf16 %v1870_v17, %v1850_v46 }
 0x234   :  { %2882 = vmatmul.mubr.bf16.gmra.mxu0 %v7447_v49  ;;  %2785 = vmatmul.mubr.bf16.gmra.mxu1 %v1918_v4  ;;  %v1931_v49 = vpack.c.bf16 %v1858_v6, %v7461_v53 }
 0x235   :  { %2889 = vmatprep.mubr.bf16.mxu0 %v7452_v55  ;;  %2792 = vmatprep.mubr.bf16.mxu1 %v1925_v25  ;;  %v1930_v55 = vpack.c.bf16 %v1850_v46, %v7441_v20  ;;  %v1877_v20 = vrot.slane %v1680_v50, 2 }
 0x237   :  { %v1878_v10 = vsel %vm198_vm1, %v7095_v12, %v1877_v20 }
 0x23c   :  { %2890 = vmatmul.mubr.bf16.gmra.mxu0 %v7467_v21  ;;  %2793 = vmatmul.mubr.bf16.gmra.mxu1 %v1924_v41 }
 0x23d   :  { %2897 = vmatprep.mubr.bf16.mxu0 %v1933_v59  ;;  %2800 = vmatprep.mubr.bf16.mxu1 %v1931_v49 }
 0x244   :  { %2898 = vmatmul.mubr.bf16.gmra.mxu0 %v1932_v40  ;;  %2801 = vmatmul.mubr.bf16.gmra.mxu1 %v1930_v55 }
 0x245   :  { %5328 = vmatprep.mubr.bf16.mxu1 %v7196_v63  ;;  %v1934_v63 = vpack.c.bf16 %v1878_v10, %v1858_v6 }
 0x24c   :  { %5329 = vmatmul.mubr.bf16.vlgmr.msra.gmra.mxu1 %v7272_v36 }
 0x24d   :  { %5332 = vmatprep.mubr.bf16.mxu1 %v7336_v31 }
 0x254   :  { %5333 = vmatmul.mubr.bf16.gmra.mxu1 %v1907_v28 }
 0x255   :  { %5336 = vmatprep.mubr.bf16.mxu1 %v7416_v51 }
 0x25c   :  { %5337 = vmatmul.mubr.bf16.gmra.mxu1 %v7445_v56 }
 0x25d   :  { %5340 = vmatprep.mubr.bf16.mxu1 %v7465_v39 }
 0x264   :  { %5341 = vmatmul.mubr.bf16.gmra.mxu1 %v1934_v63 }
 0x28c   :  { %v4992_v36 = vpop.f32.mrf.mxu0  ;;  %v4928_v31 = vpop.f32.mrf.mxu1 }
 0x28e   :  { %v4993_v33 = vpop.f32.mrf.mxu0  ;;  %v4929_v32 = vpop.f32.mrf.mxu1 }
 0x28f   :  { %v4994_v51 = vadd.f32 %v4993_v33, %v4992_v36  ;;  %v4930_v53 = vadd.f32 %v4929_v32, %v4928_v31 }
 0x290   :  { %v4995_v21 = vpop.f32.mrf.mxu0  ;;  %v4931_v56 = vpop.f32.mrf.mxu1 }
 0x291   :  { %v2553_v39 = vadd.f32 %v4930_v53, %v7570_v58 }
 0x292   :  { %v4996_v19 = vpop.f32.mrf.mxu0  ;;  %v4932_v37 = vpop.f32.mrf.mxu1 }
 0x293   :  { %v4933_v12 = vadd.f32 %v4932_v37, %v4931_v56  ;;  %v7573_v38 = vadd.f32 %v4994_v51, %v2553_v39  ;;  %v4997_v43 = vadd.f32 %v4996_v19, %v4995_v21 }
 0x294   :  { %v4998_v34 = vpop.f32.mrf.mxu0  ;;  %v4934_v57 = vpop.f32.mrf.mxu1 }
 0x295   :  { %v2556_v2 = vadd.f32 %v4933_v12, %v7570_v58 }
 0x296   :  { %v4999_v48 = vpop.f32.mrf.mxu0  ;;  %v4935_v14 = vpop.f32.mrf.mxu1 }
 0x297   :  { %v5000_v13 = vadd.f32 %v4999_v48, %v4998_v34  ;;  %v4936_v30 = vadd.f32 %v4935_v14, %v4934_v57  ;;  %v7576_v45 = vadd.f32 %v4997_v43, %v2556_v2 }
 0x298   :  { %v5001_v15 = vpop.f32.mrf.mxu0  ;;  %v4937_v16 = vpop.f32.mrf.mxu1 }
 0x299   :  { %v2561_v5 = vadd.f32 %v4936_v30, %v7570_v58 }
 0x29a   :  { %v5002_v52 = vpop.f32.mrf.mxu0  ;;  %v4938_v54 = vpop.f32.mrf.mxu1 }
 0x29b   :  { %v4939_v44 = vadd.f32 %v4938_v54, %v4937_v16  ;;  %v7579_v24 = vadd.f32 %v5000_v13, %v2561_v5  ;;  %v5003_v35 = vadd.f32 %v5002_v52, %v5001_v15 }
 0x29c   :  { %v5004_v27 = vpop.f32.mrf.mxu0  ;;  %v4940_v26 = vpop.f32.mrf.mxu1 }
 0x29d   :  { %v2564_v9 = vadd.f32 %v4939_v44, %v7570_v58 }
 0x29e   :  { %v5005_v61 = vpop.f32.mrf.mxu0  ;;  %v4941_v1 = vpop.f32.mrf.mxu1 }
 0x29f   :  { %v5006_v29 = vadd.f32 %v5005_v61, %v5004_v27  ;;  %v4942_v3 = vadd.f32 %v4941_v1, %v4940_v26  ;;  %v7582_v18 = vadd.f32 %v5003_v35, %v2564_v9 }
 0x2a0   :  { %v5007_v8 = vpop.f32.mrf.mxu0  ;;  %v4943_v23 = vpop.f32.mrf.mxu1 }
 0x2a1   :  { %v2569_v50 = vadd.f32 %v4942_v3, %v7570_v58 }
 0x2a2   :  { %v5008_v60 = vpop.f32.mrf.mxu0  ;;  %v4944_v4 = vpop.f32.mrf.mxu1 }
 0x2a3   :  { %v5009_v25 = vadd.f32 %v5008_v60, %v5007_v8  ;;  %v4945_v62 = vadd.f32 %v4944_v4, %v4943_v23  ;;  %v7585_v22 = vadd.f32 %v5006_v29, %v2569_v50 }
 0x2a4   :  { %v5010_v42 = vpop.f32.mrf.mxu0  ;;  %v4946_v7 = vpop.f32.mrf.mxu1 }
 0x2a5   :  { %v2572_v0 = vadd.f32 %v4945_v62, %v7570_v58 }
 0x2a6   :  { %v5011_v46 = vpop.f32.mrf.mxu0  ;;  %v4947_v17 = vpop.f32.mrf.mxu1 }
 0x2a7   :  { %v5012_v6 = vadd.f32 %v5011_v46, %v5010_v42  ;;  %v4948_v41 = vadd.f32 %v4947_v17, %v4946_v7  ;;  %v7588_v59 = vadd.f32 %v5009_v25, %v2572_v0 }
 0x2a8   :  { %v5013_v49 = vpop.f32.mrf.mxu0  ;;  %v4949_v55 = vpop.f32.mrf.mxu1 }
 0x2a9   :  { %v2577_v40 = vadd.f32 %v4948_v41, %v7570_v58 }
 0x2aa   :  { %v5014_v47 = vpop.f32.mrf.mxu0  ;;  %v4950_v11 = vpop.f32.mrf.mxu1 }
 0x2ab   :  { %v5015_v28 = vadd.f32 %v5014_v47, %v5013_v49  ;;  %v4951_v20 = vadd.f32 %v4950_v11, %v4949_v55  ;;  %v7591_v10 = vadd.f32 %v5012_v6, %v2577_v40 }
 0x2ac   :  { %v5016_v63 = vpop.f32.mrf.mxu0  ;;  %v4952_v36 = vpop.f32.mrf.mxu1 }
 0x2ad   :  { %v2580_v31 = vadd.f32 %v4951_v20, %v7570_v58 }
 0x2ae   :  { %v5017_v33 = vpop.f32.mrf.mxu0  ;;  %v4953_v32 = vpop.f32.mrf.mxu1 }
 0x2af   :  { %v5018_v51 = vadd.f32 %v5017_v33, %v5016_v63  ;;  %v4954_v53 = vadd.f32 %v4953_v32, %v4952_v36  ;;  %v7594_v21 = vadd.f32 %v5015_v28, %v2580_v31 }
 0x2b0   :  { %v5019_v56 = vpop.f32.mrf.mxu0  ;;  %v4955_v39 = vpop.f32.mrf.mxu1 }
 0x2b1   :  { %v2585_v19 = vadd.f32 %v4954_v53, %v7570_v58 }
 0x2b2   :  { %v5020_v37 = vpop.f32.mrf.mxu0  ;;  %v4956_v12 = vpop.f32.mrf.mxu1 }
 0x2b3   :  { %v5021_v34 = vadd.f32 %v5020_v37, %v5019_v56  ;;  %v4957_v57 = vadd.f32 %v4956_v12, %v4955_v39  ;;  %v7597_v43 = vadd.f32 %v5018_v51, %v2585_v19 }
 0x2b4   :  { %v5022_v2 = vpop.f32.mrf.mxu0  ;;  %v4958_v48 = vpop.f32.mrf.mxu1 }
 0x2b5   :  { %v2588_v14 = vadd.f32 %v4957_v57, %v7570_v58 }
 0x2b6   :  { %v5023_v13 = vpop.f32.mrf.mxu0  ;;  %v4959_v30 = vpop.f32.mrf.mxu1 }
 0x2b7   :  { %v5024_v15 = vadd.f32 %v5023_v13, %v5022_v2  ;;  %v4960_v16 = vadd.f32 %v4959_v30, %v4958_v48  ;;  %v7600_v5 = vadd.f32 %v5021_v34, %v2588_v14 }
 0x2b8   :  { %v5025_v52 = vpop.f32.mrf.mxu0  ;;  %v4961_v54 = vpop.f32.mrf.mxu1 }
 0x2b9   :  { %v2593_v44 = vadd.f32 %v4960_v16, %v7570_v58 }
 0x2ba   :  { %v5026_v27 = vpop.f32.mrf.mxu0  ;;  %v4962_v26 = vpop.f32.mrf.mxu1 }
 0x2bb   :  { %v5027_v35 = vadd.f32 %v5026_v27, %v5025_v52  ;;  %v4963_v9 = vadd.f32 %v4962_v26, %v4961_v54  ;;  %v7603_v61 = vadd.f32 %v5024_v15, %v2593_v44  ;;  %v5698_v44 = vld [vmem:[%s8559_s11 + $0x38] sm:$0xff]  }
 0x2bc   :  { %v5028_v1 = vpop.f32.mrf.mxu0  ;;  %v4964_v29 = vpop.f32.mrf.mxu1  ;;  %5376 = vmatprep.subr.bf16.mxu1 %v5698_v44 }
 0x2bd   :  { %8597 = vst [vmem:[#allocation4_spill] sm:$0xff] %v7603_v61  ;;  %v2596_v3 = vadd.f32 %v4963_v9, %v7570_v58  ;;  %v5700_v9 = vld [vmem:[%s8559_s11 + $0x30] sm:$0xff]   ;;  %5377 = vmatpush3.bf16.msra.mxu1 %v5698_v44 }
 0x2be   :  { %v5029_v8 = vpop.f32.mrf.mxu0  ;;  %v4965_v23 = vpop.f32.mrf.mxu1  ;;  %5378 = vmatprep.subr.bf16.mxu1 %v5700_v9 }
 0x2bf   :  { %v5030_v50 = vadd.f32 %v5029_v8, %v5028_v1  ;;  %v4966_v60 = vadd.f32 %v4965_v23, %v4964_v29  ;;  %v7606_v4 = vadd.f32 %v5027_v35, %v2596_v3  ;;  %v5699_v35 = vld [vmem:[%s8558_s9 + $0x30] sm:$0xff]   ;;  %v5701_v3 = vld [vmem:[%s8558_s9 + $0x28] sm:$0xff]  }
 0x2c0   :  { %v5031_v25 = vpop.f32.mrf.mxu0  ;;  %v4967_v62 = vpop.f32.mrf.mxu1  ;;  %v5702_v8 = vld [vmem:[%s8559_s11 + $0x28] sm:$0xff]  }
 0x2c1   :  { %8598 = vst [vmem:[#allocation5_spill] sm:$0xff] %v7606_v4  ;;  %v2601_v42 = vadd.f32 %v4966_v60, %v7570_v58  ;;  %5379 = vmatpush3.bf16.msra.mxu1 %v5700_v9 }
 0x2c2   :  { %v5032_v7 = vpop.f32.mrf.mxu0  ;;  %v4968_v0 = vpop.f32.mrf.mxu1  ;;  %5380 = vmatprep.subr.bf16.mxu1 %v5702_v8 }
 0x2c3   :  { %v5033_v46 = vadd.f32 %v5032_v7, %v5031_v25  ;;  %v4969_v17 = vadd.f32 %v4968_v0, %v4967_v62  ;;  %v7609_v6 = vadd.f32 %v5030_v50, %v2601_v42  ;;  %v5703_v62 = vld [vmem:[%s8558_s9 + $0x20] sm:$0xff]  }
 0x2c4   :  { %v5034_v41 = vpop.f32.mrf.mxu0  ;;  %v4970_v49 = vpop.f32.mrf.mxu1  ;;  %v5704_v42 = vld [vmem:[%s8559_s11 + $0x20] sm:$0xff]  }
 0x2c5   :  { %8599 = vst [vmem:[#allocation6_spill] sm:$0xff] %v7609_v6  ;;  %v2604_v55 = vadd.f32 %v4969_v17, %v7570_v58  ;;  %5381 = vmatpush3.bf16.msra.mxu1 %v5702_v8 }
 0x2c6   :  { %v5035_v40 = vpop.f32.mrf.mxu0  ;;  %v4971_v47 = vpop.f32.mrf.mxu1  ;;  %5382 = vmatprep.subr.bf16.mxu1 %v5704_v42 }
 0x2c7   :  { %v4972_v11 = vadd.f32 %v4971_v47, %v4970_v49  ;;  %v7612_v28 = vadd.f32 %v5033_v46, %v2604_v55  ;;  %v5036_v36 = vadd.f32 %v5035_v40, %v5034_v41  ;;  %v5705_v41 = vld [vmem:[%s8558_s9 + $0x18] sm:$0xff]  }
 0x2c8   :  { %v7614_v20 = vpop.f32.mrf.mxu0  ;;  %v4973_v63 = vpop.f32.mrf.mxu1  ;;  %v5706_v49 = vld [vmem:[%s8559_s11 + $0x18] sm:$0xff]  }
 0x2c9   :  { %8600 = vst [vmem:[#allocation7_spill] sm:$0xff] %v7612_v28  ;;  %v2609_v31 = vadd.f32 %v4972_v11, %v7570_v58  ;;  %5383 = vmatpush3.bf16.msra.mxu1 %v5704_v42 }
 0x2ca   :  { %v7617_v33 = vpop.f32.mrf.mxu0  ;;  %v4974_v32 = vpop.f32.mrf.mxu1  ;;  %5384 = vmatprep.subr.bf16.mxu1 %v5706_v49 }
 0x2cb   :  { %v7619_v51 = vadd.f32 %v4974_v32, %v4973_v63  ;;  %v7621_v53 = vadd.f32 %v5036_v36, %v2609_v31  ;;  %v5707_v63 = vld [vmem:[%s8558_s9 + $0x10] sm:$0xff]  }
 0x2cc   :  { %v7623_v56 = vpop.f32.mrf.mxu0  ;;  %v5056_v39 = vpop.f32.mrf.mxu1  ;;  %v5708_v36 = vld [vmem:[%s8559_s11 + $0x10] sm:$0xff]  }
 0x2cd   :  { %8601 = vst [vmem:[#allocation8_spill] sm:$0xff] %v7621_v53  ;;  %5385 = vmatpush3.bf16.msra.mxu1 %v5706_v49  ;;  %v7753_v49 = vld [vmem:[%s8560_s13 + $0x38] sm:$0xff]  }
 0x2ce   :  { %v7625_v19 = vpop.f32.mrf.mxu0  ;;  %v5057_v37 = vpop.f32.mrf.mxu1  ;;  %5386 = vmatprep.subr.bf16.mxu1 %v5708_v36  ;;  %8603 = vst [vmem:[#allocation10_spill] sm:$0xff] %v7753_v49 }
 0x2cf   :  { %v5058_v12 = vadd.f32 %v5057_v37, %v5056_v39  ;;  %v5709_v39 = vld [vmem:[%s8558_s9 + $0x8] sm:$0xff]  }
 0x2d0   :  { %v7627_v34 = vpop.f32.mrf.mxu0  ;;  %v7629_v57 = vpop.f32.mrf.mxu1 }
 0x2d1   :  { %v7632_v2 = vadd.f32 %v5058_v12, %v7573_v38  ;;  %v5697_v38 = vld [vmem:[%s8558_s9 + $0x38] sm:$0xff]   ;;  %5387 = vmatpush3.bf16.msra.mxu1 %v5708_v36 }
 0x2d2   :  { %v7634_v48 = vpop.f32.mrf.mxu0  ;;  %v7636_v14 = vpop.f32.mrf.mxu1  ;;  %5344 = vmatprep.subr.bf16.mxu0 %v5697_v38 }
 0x2d3   :  { %5345 = vmatpush3.bf16.msra.mxu0 %v5697_v38  ;;  %v5710_v38 = vld [vmem:[%s8559_s11 + $0x8] sm:$0xff]  }
 0x2d4   :  { %v7638_v13 = vpop.f32.mrf.mxu0  ;;  %v7640_v30 = vpop.f32.mrf.mxu1  ;;  %5346 = vmatprep.subr.bf16.mxu0 %v5699_v35  ;;  %5388 = vmatprep.subr.bf16.mxu1 %v5710_v38 }
 0x2d5   :  { %5389 = vmatpush3.bf16.msra.mxu1 %v5710_v38 }
 0x2d6   :  { %v7642_v15 = vpop.f32.mrf.mxu0  ;;  %v7644_v16 = vpop.f32.mrf.mxu1 }
 0x2d7   :  { %5347 = vmatpush3.bf16.msra.mxu0 %v5699_v35 }
 0x2d8   :  { %v7646_v52 = vpop.f32.mrf.mxu0  ;;  %v7648_v54 = vpop.f32.mrf.mxu1  ;;  %5348 = vmatprep.subr.bf16.mxu0 %v5701_v3 }
 0x2da   :  { %v7656_v27 = vpop.f32.mrf.mxu0  ;;  %v7658_v26 = vpop.f32.mrf.mxu1 }
 0x2db   :  { %5349 = vmatpush3.bf16.msra.mxu0 %v5701_v3  ;;  %v5711_v3 = vld [vmem:[%s8558_s9] sm:$0xff]  }
 0x2dc   :  { %v7666_v1 = vpop.f32.mrf.mxu0  ;;  %v7668_v29 = vpop.f32.mrf.mxu1  ;;  %5350 = vmatprep.subr.bf16.mxu0 %v5703_v62 }
 0x2de   :  { %v7676_v23 = vpop.f32.mrf.mxu0  ;;  %v7678_v50 = vpop.f32.mrf.mxu1 }
 0x2df   :  { %5351 = vmatpush3.bf16.msra.mxu0 %v5703_v62  ;;  %v5712_v62 = vld [vmem:[%s8559_s11] sm:$0xff]  }
 0x2e0   :  { %v7680_v60 = vpop.f32.mrf.mxu0  ;;  %v7682_v25 = vpop.f32.mrf.mxu1  ;;  %5352 = vmatprep.subr.bf16.mxu0 %v5705_v41  ;;  %5390 = vmatprep.subr.bf16.mxu1 %v5712_v62 }
 0x2e1   :  { %5391 = vmatpush3.bf16.msra.mxu1 %v5712_v62 }
 0x2e2   :  { %v7690_v7 = vpop.f32.mrf.mxu0  ;;  %v7692_v0 = vpop.f32.mrf.mxu1 }
 0x2e3   :  { %5353 = vmatpush3.bf16.msra.mxu0 %v5705_v41 }
 0x2e4   :  { %v7694_v46 = vpop.f32.mrf.mxu0  ;;  %v7696_v17 = vpop.f32.mrf.mxu1  ;;  %5354 = vmatprep.subr.bf16.mxu0 %v5707_v63 }
 0x2e6   :  { %v7704_v55 = vpop.f32.mrf.mxu0  ;;  %v7706_v40 = vpop.f32.mrf.mxu1 }
 0x2e7   :  { %5355 = vmatpush3.bf16.msra.mxu0 %v5707_v63 }
 0x2e8   :  { %v7708_v47 = vpop.f32.mrf.mxu0  ;;  %v7710_v11 = vpop.f32.mrf.mxu1  ;;  %5356 = vmatprep.subr.bf16.mxu0 %v5709_v39 }
 0x2ea   :  { %v7718_v31 = vpop.f32.mrf.mxu0  ;;  %v7720_v32 = vpop.f32.mrf.mxu1 }
 0x2eb   :  { %5357 = vmatpush3.bf16.msra.mxu0 %v5709_v39 }
 0x2ec   :  { %v7725_v37 = vpop.f32.mrf.mxu0  ;;  %v7727_v12 = vpop.f32.mrf.mxu1  ;;  %5358 = vmatprep.subr.bf16.mxu0 %v5711_v3 }
 0x2ee   :  { %v7732_v44 = vpop.f32.mrf.mxu0  ;;  %v7734_v35 = vpop.f32.mrf.mxu1 }
 0x2ef   :  { %5359 = vmatpush3.bf16.msra.mxu0 %v5711_v3 }
 0x2f0   :  { %v7736_v9 = vpop.f32.mrf.mxu1  ;;  %v7741_v8 = vpop.f32.mrf.mxu0  ;;  %5408 = vmatprep.subr.bf16.mxu0 %v7753_v49 }
 0x2f1   :  { %8602 = vst [vmem:[#allocation9_spill] sm:$0xff] %v7741_v8 }
 0x2f2   :  { %v7746_v42 = vpop.f32.mrf.mxu1  ;;  %v7755_v63 = vpop.f32.mrf.mxu0 }
 0x2f3   :  { %8604 = vst [vmem:[#allocation11_spill] sm:$0xff] %v7755_v63 }
 0x2f4   :  { %v7748_v41 = vpop.f32.mrf.mxu1  ;;  %v7762_v39 = vpop.f32.mrf.mxu0 }
 0x2f5   :  { %8605 = vst [vmem:[#allocation12_spill] sm:$0xff] %v7762_v39 }
 0x2f6   :  { %v7757_v36 = vpop.f32.mrf.mxu1  ;;  %v7768_v6 = vpop.f32.mrf.mxu0 }
 0x2f7   :  { %8607 = vst [vmem:[#allocation14_spill] sm:$0xff] %v7768_v6  ;;  %v5064_v6 = vadd.f32 %v7644_v16, %v7640_v30  ;;  %v5125_v16 = vadd.f32 %v7634_v48, %v7627_v34 }
 0x2f8   :  { %v7759_v53 = vpop.f32.mrf.mxu1  ;;  %v7774_v8 = vpop.f32.mrf.mxu0 }
 0x2fa   :  { %v7764_v38 = vpop.f32.mrf.mxu1  ;;  %v7780_v62 = vpop.f32.mrf.mxu0 }
 0x2fb   :  { %8612 = vst [vmem:[#allocation19_spill] sm:$0xff] %v7780_v62 }
 0x2fc   :  { %v7766_v28 = vpop.f32.mrf.mxu1 }
 0x2fd   :  { %8606 = vst [vmem:[#allocation13_spill] sm:$0xff] %v7766_v28  ;;  %v5061_v28 = vadd.f32 %v7636_v14, %v7629_v57  ;;  %v2755_v57 = vadd.f32 %v5064_v6, %v7579_v24  ;;  %v5076_v24 = vadd.f32 %v7706_v40, %v7696_v17  ;;  %v5140_v40 = vadd.f32 %v7704_v55, %v7694_v46 }
 0x2fe   :  { %v7770_v4 = vpop.f32.mrf.mxu1 }
 0x2ff   :  { %8608 = vst [vmem:[#allocation15_spill] sm:$0xff] %v7770_v4  ;;  %v7790_v4 = vpop.f32.mrf.mxu0 }
 0x300   :  { %v7772_v63 = vpop.f32.mrf.mxu1 }
 0x301   :  { %8609 = vst [vmem:[#allocation16_spill] sm:$0xff] %v7772_v63  ;;  %v7802_v14 = vpop.f32.mrf.mxu0 }
 0x302   :  { %v7776_v3 = vpop.f32.mrf.mxu1 }
 0x303   :  { %8610 = vst [vmem:[#allocation17_spill] sm:$0xff] %v7776_v3  ;;  %v5067_v3 = vadd.f32 %v7658_v26, %v7648_v54  ;;  %v5128_v54 = vadd.f32 %v7642_v15, %v7638_v13  ;;  %v7831_v13 = vadd.f32 %v7619_v51, %v7570_v58 }
 0x304   :  { %v7778_v61 = vpop.f32.mrf.mxu1 }
 0x305   :  { %8611 = vst [vmem:[#allocation18_spill] sm:$0xff] %v7778_v61  ;;  %v5070_v61 = vadd.f32 %v7678_v50, %v7668_v29  ;;  %v2758_v26 = vadd.f32 %v5067_v3, %v7582_v18 }
 0x306   :  { %v7782_v49 = vpop.f32.mrf.mxu1 }
 0x307   :  { %8613 = vst [vmem:[#allocation20_spill] sm:$0xff] %v7782_v49  ;;  %v2750_v49 = vadd.f32 %v5061_v28, %v7576_v45  ;;  %v2763_v50 = vadd.f32 %v5070_v61, %v7585_v22  ;;  %v5073_v45 = vadd.f32 %v7692_v0, %v7682_v25  ;;  %v5131_v28 = vadd.f32 %v7656_v27, %v7646_v52 }
 0x308   :  { %v7784_v39 = vpop.f32.mrf.mxu1  ;;  %v5134_v22 = vadd.f32 %v7676_v23, %v7666_v1  ;;  %v5079_v61 = vadd.f32 %v7720_v32, %v7710_v11  ;;  %v5143_v11 = vadd.f32 %v7718_v31, %v7708_v47 }
 0x309   :  { %8614 = vst [vmem:[#allocation21_spill] sm:$0xff] %v7784_v39  ;;  %v5122_v39 = vadd.f32 %v7625_v19, %v7623_v56  ;;  %v7817_v56 = vpop.f32.mrf.mxu0  ;;  %v2852_v19 = vadd.f32 %v5128_v54, %v2755_v57  ;;  %v2847_v18 = vadd.f32 %v5125_v16, %v2750_v49  ;;  %v2855_v52 = vadd.f32 %v5131_v28, %v2758_v26 }
 0x30a   :  { %v7792_v63 = vpop.f32.mrf.mxu1  ;;  %v2766_v25 = vadd.f32 %v5073_v45, %v7588_v59  ;;  %v2860_v23 = vadd.f32 %v5134_v22, %v2763_v50  ;;  %v2774_v32 = vadd.f32 %v5079_v61, %v7594_v21  ;;  %v8615_v45 = vld [vmem:[#allocation4_spill] sm:$0xff] }
 0x30b   :  { %v2844_v29 = vadd.f32 %v5122_v39, %v7632_v2  ;;  %v7823_v2 = vadd.f32 %v7617_v33, %v7614_v20  ;;  %v2771_v20 = vadd.f32 %v5076_v24, %v7591_v10  ;;  %v5082_v33 = vadd.f32 %v7734_v35, %v7727_v12  ;;  %v7841_v0 = vpop.f32.mrf.mxu0 }
 0x30c   :  { %v5330_v62 = vpop.f32.mrf.mxu1  ;;  %v5137_v10 = vadd.f32 %v7690_v7, %v7680_v60  ;;  %v5085_v60 = vadd.f32 %v7746_v42, %v7736_v9  ;;  %v5088_v7 = vadd.f32 %v7757_v36, %v7748_v41  ;;  %v5091_v9 = vadd.f32 %v7764_v38, %v7759_v53 }
 0x30d   :  { %v7833_v15 = vadd.f32 %v5330_v62, %v2852_v19  ;;  %v2779_v62 = vadd.f32 %v5082_v33, %v7597_v43  ;;  %v2868_v46 = vadd.f32 %v5140_v40, %v2771_v20  ;;  %v7868_v21 = vpop.f32.mrf.mxu0  ;;  %v5146_v43 = vadd.f32 %v7732_v44, %v7725_v37  ;;  %v8616_v37 = vld [vmem:[#allocation13_spill] sm:$0xff]  ;;  %v8617_v44 = vld [vmem:[#allocation15_spill] sm:$0xff]  ;;  %v8621_v20 = vld [vmem:[#allocation14_spill] sm:$0xff] }
 0x30e   :  { %v2940_v30 = vpop.f32.mrf.mxu1  ;;  %v2871_v41 = vadd.f32 %v5143_v11, %v2774_v32  ;;  %v2782_v50 = vadd.f32 %v5085_v60, %v7600_v5  ;;  %v2787_v24 = vadd.f32 %v5088_v7, %v8615_v45  ;;  %v8620_v5 = vld [vmem:[#allocation12_spill] sm:$0xff]  ;;  %v8627_v60 = vld [vmem:[#allocation18_spill] sm:$0xff] }
 0x30f   :  { %v7819_v34 = vadd.f32 %v2940_v30, %v2844_v29  ;;  %v3027_v35 = vmul.f32 %v7833_v15, %v7833_v15  ;;  %v2863_v30 = vadd.f32 %v5137_v10, %v2766_v25  ;;  %v2876_v38 = vadd.f32 %v5146_v43, %v2779_v62  ;;  %v5163_v28 = vpop.f32.mrf.mxu0  ;;  %v8628_v7 = vld [vmem:[#allocation20_spill] sm:$0xff] }
 0x310   :  { %v5331_v6 = vpop.f32.mrf.mxu1  ;;  %v5152_v33 = vadd.f32 %v8621_v20, %v8620_v5  ;;  %v5164_v5 = vadd.f32 %v5163_v28, %v7868_v21 }
 0x311   :  { %v3025_v58 = vmul.f32 %v7819_v34, %v7819_v34  ;;  %v7845_v51 = vadd.f32 %v5331_v6, %v2855_v52  ;;  %v5094_v6 = vadd.f32 %v8617_v44, %v8616_v37  ;;  %v8619_v52 = vld [vmem:[#allocation11_spill] sm:$0xff] }
 0x312   :  { %v2943_v48 = vpop.f32.mrf.mxu1 }
 0x313   :  { %v7835_v27 = vadd.f32 %v2943_v48, %v2847_v18  ;;  %v3028_v47 = vmul.f32 %v7845_v51, %v7845_v51  ;;  %v8618_v48 = vld [vmem:[#allocation9_spill] sm:$0xff] }
 0x314   :  { %v5334_v1 = vpop.f32.mrf.mxu1  ;;  %v5149_v25 = vadd.f32 %v8619_v52, %v8618_v48 }
 0x315   :  { %v3003_v17 = vadd.f32 %v7835_v27, %v7819_v34  ;;  %v3026_v59 = vmul.f32 %v7835_v27, %v7835_v27  ;;  %v7877_v42 = vadd.f32 %v5334_v1, %v2868_v46  ;;  %v8622_v1 = vld [vmem:[#allocation19_spill] sm:$0xff]  ;;  %v5100_v46 = vadd.f32 %v8628_v7, %v8627_v60 }
 0x316   :  { %v2956_v12 = vpop.f32.mrf.mxu1  ;;  %v2879_v43 = vadd.f32 %v5149_v25, %v2782_v50  ;;  %v5161_v25 = vadd.f32 %v7841_v0, %v7817_v56 }
 0x317   :  { %v3004_v49 = vadd.f32 %v3003_v17, %v7833_v15  ;;  %v3041_v39 = vadd.f32 %v3026_v59, %v3025_v58  ;;  %v7861_v3 = vadd.f32 %v2956_v12, %v2860_v23  ;;  %v5155_v23 = vadd.f32 %v8622_v1, %v7774_v8  ;;  %v8623_v58 = vld [vmem:[#allocation5_spill] sm:$0xff]  ;;  %v8624_v12 = vld [vmem:[#allocation6_spill] sm:$0xff] }
 0x318   :  { %v5335_v55 = vpop.f32.mrf.mxu1  ;;  %v2790_v17 = vadd.f32 %v5091_v9, %v8623_v58  ;;  %v3031_v10 = vmul.f32 %v7877_v42, %v7877_v42  ;;  %v2884_v8 = vadd.f32 %v5152_v33, %v2787_v24  ;;  %v5158_v9 = vadd.f32 %v7802_v14, %v7790_v4 }
 0x319   :  { %v3042_v31 = vadd.f32 %v3041_v39, %v3027_v35  ;;  %v3005_v57 = vadd.f32 %v3004_v49, %v7845_v51  ;;  %v3029_v54 = vmul.f32 %v7861_v3, %v7861_v3  ;;  %v7888_v18 = vadd.f32 %v5335_v55, %v2871_v41  ;;  %v8625_v49 = vld [vmem:[#allocation16_spill] sm:$0xff]  ;;  %v8626_v39 = vld [vmem:[#allocation17_spill] sm:$0xff] }
 0x31a   :  { %v2959_v36 = vpop.f32.mrf.mxu1  ;;  %v2795_v35 = vadd.f32 %v5094_v6, %v8624_v12  ;;  %v5097_v62 = vadd.f32 %v8626_v39, %v8625_v49  ;;  %v8629_v41 = vld [vmem:[#allocation21_spill] sm:$0xff]  ;;  %v8630_v6 = vld [vmem:[#allocation7_spill] sm:$0xff]  ;;  %v2709_v4 = vadd.f32 %v7823_v2, %v7831_v13 }
 0x31b   :  { %v3006_v16 = vadd.f32 %v3005_v57, %v7861_v3  ;;  %v3043_v26 = vadd.f32 %v3042_v31, %v3028_v47  ;;  %v7882_v29 = vadd.f32 %v2959_v36, %v2863_v30  ;;  %v5165_v47 = vpop.f32.mrf.mxu0  ;;  %v3032_v31 = vmul.f32 %v7888_v18, %v7888_v18 }
 0x31c   :  { %v5338_v53 = vpop.f32.mrf.mxu1  ;;  %v5103_v36 = vadd.f32 %v7792_v63, %v8629_v41  ;;  %v2798_v50 = vadd.f32 %v5097_v62, %v8630_v6  ;;  %v2892_v14 = vadd.f32 %v5158_v9, %v2795_v35 }
 0x31d   :  { %v3044_v19 = vadd.f32 %v3043_v26, %v3029_v54  ;;  %v3007_v22 = vadd.f32 %v3006_v16, %v7882_v29  ;;  %v3030_v61 = vmul.f32 %v7882_v29, %v7882_v29  ;;  %v7917_v16 = vadd.f32 %v5338_v53, %v2884_v8  ;;  %v5166_v53 = vpop.f32.mrf.mxu0 }
 0x31e   :  { %v2972_v59 = vpop.f32.mrf.mxu1  ;;  %v2887_v54 = vadd.f32 %v5155_v23, %v2790_v17  ;;  %v2806_v20 = vadd.f32 %v5103_v36, %v2709_v4  ;;  %v5167_v58 = vadd.f32 %v5166_v53, %v5165_v47  ;;  %v2895_v0 = vadd.f32 %v5161_v25, %v2798_v50 }
 0x31f   :  { %v3008_v40 = vadd.f32 %v3007_v22, %v7877_v42  ;;  %v3045_v11 = vadd.f32 %v3044_v19, %v3030_v61  ;;  %v7903_v32 = vadd.f32 %v2972_v59, %v2876_v38  ;;  %v8631_v38 = vld [vmem:[#allocation8_spill] sm:$0xff]  ;;  %v3035_v2 = vmul.f32 %v7917_v16, %v7917_v16 }
 0x320   :  { %v5339_v55 = vpop.f32.mrf.mxu1  ;;  %v2803_v19 = vadd.f32 %v5100_v46, %v8631_v38  ;;  %v2903_v28 = vadd.f32 %v5167_v58, %v2806_v20 }
 0x321   :  { %v3046_v57 = vadd.f32 %v3045_v11, %v3031_v10  ;;  %v3009_v30 = vadd.f32 %v3008_v40, %v7888_v18  ;;  %v3033_v24 = vmul.f32 %v7903_v32, %v7903_v32  ;;  %v7928_v61 = vadd.f32 %v5339_v55, %v2887_v54 }
 0x322   :  { %v2975_v26 = vpop.f32.mrf.mxu1  ;;  %v2900_v17 = vadd.f32 %v5164_v5, %v2803_v19 }
 0x323   :  { %v3010_v45 = vadd.f32 %v3009_v30, %v7903_v32  ;;  %v3047_v37 = vadd.f32 %v3046_v57, %v3032_v31  ;;  %v7922_v44 = vadd.f32 %v2975_v26, %v2879_v43  ;;  %v3036_v10 = vmul.f32 %v7928_v61, %v7928_v61 }
 0x324   :  { %v5342_v63 = vpop.f32.mrf.mxu1 }
 0x325   :  { %v3048_v22 = vadd.f32 %v3047_v37, %v3033_v24  ;;  %v3011_v48 = vadd.f32 %v3010_v45, %v7922_v44  ;;  %v3034_v52 = vmul.f32 %v7922_v44, %v7922_v44  ;;  %v7944_v21 = vadd.f32 %v5342_v63, %v2900_v17 }
 0x326   :  { %v2988_v33 = vpop.f32.mrf.mxu1 }
 0x327   :  { %v3012_v13 = vadd.f32 %v3011_v48, %v7917_v16  ;;  %v3049_v1 = vadd.f32 %v3048_v22, %v3034_v52  ;;  %v7939_v23 = vadd.f32 %v2988_v33, %v2892_v14  ;;  %v3039_v8 = vmul.f32 %v7944_v21, %v7944_v21 }
 0x328   :  { %v5343_v59 = vpop.f32.mrf.mxu1 }
 0x329   :  { %v3050_v40 = vadd.f32 %v3049_v1, %v3035_v2  ;;  %v3013_v56 = vadd.f32 %v3012_v13, %v7928_v61  ;;  %v3037_v35 = vmul.f32 %v7939_v23, %v7939_v23  ;;  %v7949_v60 = vadd.f32 %v5343_v59, %v2903_v28 }
 0x32a   :  { %v2991_v11 = vpop.f32.mrf.mxu1 }
 0x32b   :  { %v3014_v12 = vadd.f32 %v3013_v56, %v7939_v23  ;;  %v3051_v49 = vadd.f32 %v3050_v40, %v3036_v10  ;;  %v2992_v39 = vadd.f32 %v2991_v11, %v2895_v0  ;;  %v3040_v31 = vmul.f32 %v7949_v60, %v7949_v60 }
 0x32d   :  { %v3052_v62 = vadd.f32 %v3051_v49, %v3037_v35  ;;  %v3015_v7 = vadd.f32 %v3014_v12, %v2992_v39  ;;  %v3038_v46 = vmul.f32 %v2992_v39, %v2992_v39 }
 0x32f   :  { %v3016_v55 = vadd.f32 %v3015_v7, %v7944_v21  ;;  %v3053_v47 = vadd.f32 %v3052_v62, %v3038_v46 }
 0x331   :  { %v3017_v57 = vadd.f32 %v3016_v55, %v7949_v60  ;;  %v3054_v30 = vadd.f32 %v3053_v47, %v3039_v8 }
 0x333   :  { %v3018_v43 = vrot.slane %v3017_v57, 4  ;;  %v3055_v9 = vadd.f32 %v3054_v30, %v3040_v31 }
 0x335   :  { %v3019_v41 = vadd.f32 %v3018_v43, %v3017_v57  ;;  %v3056_v36 = vrot.slane %v3055_v9, 4 }
 0x337   :  { %v3020_v54 = vrot.slane %v3019_v41, 2  ;;  %v3057_v26 = vadd.f32 %v3056_v36, %v3055_v9 }
 0x339   :  { %v3021_v45 = vadd.f32 %v3020_v54, %v3019_v41  ;;  %v3058_v24 = vrot.slane %v3057_v26, 2  ;;  %v5714_v54 = vld [vmem:[%s8560_s13 + $0x30] sm:$0xff]  }
 0x33b   :  { %v3022_v37 = vrot.slane %v3021_v45, 1  ;;  %v3059_v6 = vadd.f32 %v3058_v24, %v3057_v26 }
 0x33d   :  { %v3023_v50 = vadd.f32 %v3022_v37, %v3021_v45  ;;  %v3060_v38 = vrot.slane %v3059_v6, 1  ;;  %v8632_v37 = vld [vmem:[#allocation10_spill] sm:$0xff] }
 0x33f   :  { %v7957_v19 = vmul.f32 0.0078125, %v3023_v50  ;;  %v3061_v4 = vadd.f32 %v3060_v38, %v3059_v6 }
 0x341   :  { %v3062_v63 = vmul.f32 0.0078125, %v3061_v4  ;;  %v3063_v14 = vmul.f32 %v7957_v19, %v7957_v19  ;;  %v3079_v53 = vsub.f32 %v2992_v39, %v7957_v19  ;;  %v3066_v22 = vsub.f32 %v7819_v34, %v7957_v19 }
 0x342   :  { %v3067_v48 = vsub.f32 %v7835_v27, %v7957_v19  ;;  %v3068_v52 = vsub.f32 %v7833_v15, %v7957_v19  ;;  %v3069_v25 = vsub.f32 %v7845_v51, %v7957_v19  ;;  %v3070_v5 = vsub.f32 %v7861_v3, %v7957_v19 }
 0x343   :  { %v3064_v20 = vsub.f32 %v3062_v63, %v3063_v14  ;;  %v3071_v33 = vsub.f32 %v7882_v29, %v7957_v19  ;;  %v3072_v2 = vsub.f32 %v7877_v42, %v7957_v19  ;;  %v3073_v34 = vsub.f32 %v7888_v18, %v7957_v19 }
 0x344   :  { %v3074_v27 = vsub.f32 %v7903_v32, %v7957_v19  ;;  %v3075_v15 = vsub.f32 %v7922_v44, %v7957_v19  ;;  %v3076_v51 = vsub.f32 %v7917_v16, %v7957_v19  ;;  %v3077_v3 = vsub.f32 %v7928_v61, %v7957_v19  ;;  %v7995_v16 = vld [vmem:[%s8561_s7] ss:$0 sm:$0xff] }
 0x345   :  { %v3065_v13 = vmax.f32 %v3064_v20, 0.0  ;;  %v3078_v29 = vsub.f32 %v7939_v23, %v7957_v19  ;;  %v3080_v42 = vsub.f32 %v7944_v21, %v7957_v19  ;;  %v3081_v18 = vsub.f32 %v7949_v60, %v7957_v19  ;;  %v8000_v23 = vld [vmem:[%s8562_s8] ss:$0 sm:$0xff]  ;;  %v5715_v19 = vld [vmem:[%s8560_s13 + $0x28] sm:$0xff]  }
 0x347   :  { %v3082_v32 = vadd.f32 1e-05, %v3065_v13 }
 0x349   :  { %5731 = vrsqrt.f32 %v3082_v32 }
 0x356   :  { %v5732_v1 = vpop.eup %5731 }
 0x357   :  { %v3097_v44 = vmul.f32 %v5732_v1, %v3079_v53  ;;  %v3084_v61 = vmul.f32 %v5732_v1, %v3066_v22  ;;  %v3085_v58 = vmul.f32 %v5732_v1, %v3067_v48  ;;  %v3086_v17 = vmul.f32 %v5732_v1, %v3068_v52 }
 0x358   :  { %v3087_v59 = vmul.f32 %v5732_v1, %v3069_v25  ;;  %v3088_v10 = vmul.f32 %v5732_v1, %v3070_v5  ;;  %v3089_v40 = vmul.f32 %v5732_v1, %v3071_v33  ;;  %v3090_v56 = vmul.f32 %v5732_v1, %v3072_v2  ;;  %v5716_v25 = vld [vmem:[%s8560_s13 + $0x20] sm:$0xff]  }
 0x359   :  { %v3107_v0 = vmul.f32 %v7995_v16, %v3084_v61  ;;  %v3108_v21 = vmul.f32 %v7995_v16, %v3085_v58  ;;  %v3109_v28 = vmul.f32 %v7995_v16, %v3086_v17  ;;  %v3091_v11 = vmul.f32 %v5732_v1, %v3073_v34  ;;  %v5717_v34 = vld [vmem:[%s8560_s13 + $0x18] sm:$0xff]  }
 0x35a   :  { %v3110_v12 = vmul.f32 %v7995_v16, %v3087_v59  ;;  %v3111_v35 = vmul.f32 %v7995_v16, %v3088_v10  ;;  %v3112_v49 = vmul.f32 %v7995_v16, %v3089_v40  ;;  %v3113_v47 = vmul.f32 %v7995_v16, %v3090_v56  ;;  %v8126_v40 = vld [vmem:[%s8563_s10] ss:$0 sm:$0xff] }
 0x35b   :  { %v8009_v39 = vadd.f32 %v8000_v23, %v3107_v0  ;;  %v8012_v62 = vadd.f32 %v8000_v23, %v3108_v21  ;;  %v8015_v60 = vadd.f32 %v8000_v23, %v3109_v28  ;;  %v3092_v31 = vmul.f32 %v5732_v1, %v3074_v27 }
 0x35c   :  { %v8018_v7 = vadd.f32 %v8000_v23, %v3110_v12  ;;  %v8021_v46 = vadd.f32 %v8000_v23, %v3111_v35  ;;  %v8024_v8 = vadd.f32 %v8000_v23, %v3112_v49  ;;  %v3093_v57 = vmul.f32 %v5732_v1, %v3075_v15 }
 0x35d   :  { %v8028_v55 = vpack.c.bf16 %v8012_v62, %v8009_v39  ;;  %v3114_v43 = vmul.f32 %v7995_v16, %v3091_v11  ;;  %v3094_v9 = vmul.f32 %v5732_v1, %v3076_v51  ;;  %v3095_v41 = vmul.f32 %v5732_v1, %v3077_v3 }
 0x35e   :  { %v8033_v30 = vpack.c.bf16 %v8018_v7, %v8015_v60  ;;  %v8040_v36 = vpack.c.bf16 %v8024_v8, %v8021_v46  ;;  %v3115_v26 = vmul.f32 %v7995_v16, %v3092_v31  ;;  %v3116_v45 = vmul.f32 %v7995_v16, %v3093_v57 }
 0x35f   :  { %5360 = vmatprep.mubr.bf16.mxu0 %v8028_v55  ;;  %5392 = vmatprep.mubr.bf16.mxu1 %v8028_v55  ;;  %v3096_v24 = vmul.f32 %v5732_v1, %v3078_v29  ;;  %v8053_v6 = vadd.f32 %v8000_v23, %v3113_v47  ;;  %v8056_v50 = vadd.f32 %v8000_v23, %v3114_v43  ;;  %v8137_v47 = vld [vmem:[%s8564_s12] ss:$0 sm:$0xff] }
 0x360   :  { %5361 = vmatmul.mubr.bf16.vlgmr.msra.gmra.mxu0 %v8033_v30  ;;  %5393 = vmatmul.mubr.bf16.vlgmr.msra.gmra.mxu1 %v8033_v30  ;;  %v3098_v38 = vmul.f32 %v5732_v1, %v3080_v42  ;;  %v8062_v4 = vadd.f32 %v8000_v23, %v3115_v26  ;;  %v8065_v63 = vadd.f32 %v8000_v23, %v3116_v45  ;;  %v5718_v42 = vld [vmem:[%s8560_s13 + $0x10] sm:$0xff]  }
 0x361   :  { %5364 = vmatprep.mubr.bf16.mxu0 %v8040_v36  ;;  %5396 = vmatprep.mubr.bf16.mxu1 %v8040_v36  ;;  %v3099_v14 = vmul.f32 %v5732_v1, %v3081_v18  ;;  %v3149_v53 = vpack.c.bf16 %v8056_v50, %v8053_v6  ;;  %v3117_v22 = vmul.f32 %v7995_v16, %v3094_v9  ;;  %v5719_v1 = vld [vmem:[%s8560_s13 + $0x8] sm:$0xff]  }
 0x362   :  { %5409 = vmatpush3.bf16.msra.mxu0 %v8632_v37  ;;  %v3118_v48 = vmul.f32 %v7995_v16, %v3095_v41  ;;  %v3150_v52 = vpack.c.bf16 %v8065_v63, %v8062_v4  ;;  %v3119_v5 = vmul.f32 %v7995_v16, %v3096_v24  ;;  %v3120_v20 = vmul.f32 %v7995_v16, %v3097_v44  ;;  %v5720_v44 = vld [vmem:[%s8560_s13] sm:$0xff]  }
 0x363   :  { %5410 = vmatprep.subr.bf16.mxu0 %v5714_v54  ;;  %v8079_v33 = vadd.f32 %v8000_v23, %v3117_v22  ;;  %v3121_v3 = vmul.f32 %v7995_v16, %v3098_v38  ;;  %v3122_v13 = vmul.f32 %v7995_v16, %v3099_v14 }
 0x364   :  { %v8082_v2 = vadd.f32 %v8000_v23, %v3118_v48  ;;  %v8088_v27 = vadd.f32 %v8000_v23, %v3119_v5  ;;  %v8091_v15 = vadd.f32 %v8000_v23, %v3120_v20 }
 0x365   :  { %v8103_v18 = vadd.f32 %v8000_v23, %v3121_v3  ;;  %v8106_v32 = vadd.f32 %v8000_v23, %v3122_v13 }
 0x366   :  { %5411 = vmatpush3.bf16.msra.mxu0 %v5714_v54  ;;  %v3151_v51 = vpack.c.bf16 %v8082_v2, %v8079_v33  ;;  %v3152_v29 = vpack.c.bf16 %v8091_v15, %v8088_v27 }
 0x367   :  { %5412 = vmatprep.subr.bf16.mxu0 %v5715_v19  ;;  %v3153_v16 = vpack.c.bf16 %v8106_v32, %v8103_v18 }
 0x368   :  { %5365 = vmatmul.mubr.bf16.gmra.mxu0 %v3149_v53  ;;  %5397 = vmatmul.mubr.bf16.gmra.mxu1 %v3149_v53 }
 0x369   :  { %5368 = vmatprep.mubr.bf16.mxu0 %v3150_v52  ;;  %5400 = vmatprep.mubr.bf16.mxu1 %v3150_v52 }
 0x36a   :  { %5413 = vmatpush3.bf16.msra.mxu0 %v5715_v19 }
 0x36b   :  { %5414 = vmatprep.subr.bf16.mxu0 %v5716_v25 }
 0x36e   :  { %5415 = vmatpush3.bf16.msra.mxu0 %v5716_v25 }
 0x36f   :  { %5416 = vmatprep.subr.bf16.mxu0 %v5717_v34 }
 0x370   :  { %5369 = vmatmul.mubr.bf16.gmra.mxu0 %v3151_v51  ;;  %5401 = vmatmul.mubr.bf16.gmra.mxu1 %v3151_v51 }
 0x371   :  { %5372 = vmatprep.mubr.bf16.mxu0 %v3152_v29  ;;  %5404 = vmatprep.mubr.bf16.mxu1 %v3152_v29 }
 0x372   :  { %5417 = vmatpush3.bf16.msra.mxu0 %v5717_v34 }
 0x373   :  { %5418 = vmatprep.subr.bf16.mxu0 %v5718_v42 }
 0x376   :  { %5419 = vmatpush3.bf16.msra.mxu0 %v5718_v42 }
 0x377   :  { %5420 = vmatprep.subr.bf16.mxu0 %v5719_v1 }
 0x378   :  { %5373 = vmatmul.mubr.bf16.gmra.mxu0 %v3153_v16  ;;  %5405 = vmatmul.mubr.bf16.gmra.mxu1 %v3153_v16 }
 0x379   :  { %5424 = vmatprep.mubr.bf16.mxu0 %v8028_v55 }
 0x37a   :  { %5421 = vmatpush3.bf16.msra.mxu0 %v5719_v1 }
 0x37b   :  { %5422 = vmatprep.subr.bf16.mxu0 %v5720_v44 }
 0x37e   :  { %5423 = vmatpush3.bf16.msra.mxu0 %v5720_v44 }
 0x381   :  { %5425 = vmatmul.mubr.bf16.vlgmr.msra.gmra.mxu0 %v8033_v30 }
 0x382   :  { %5428 = vmatprep.mubr.bf16.mxu0 %v8040_v36 }
 0x389   :  { %5429 = vmatmul.mubr.bf16.gmra.mxu0 %v3149_v53 }
 0x38a   :  { %5432 = vmatprep.mubr.bf16.mxu0 %v3150_v52 }
 0x391   :  { %5433 = vmatmul.mubr.bf16.gmra.mxu0 %v3151_v51 }
 0x392   :  { %5436 = vmatprep.mubr.bf16.mxu0 %v3152_v29 }
 0x399   :  { %5437 = vmatmul.mubr.bf16.gmra.mxu0 %v3153_v16 }
 0x420   :  { %v8119_v61 = vpop.f32.mrf.mxu0  ;;  %v5394_v58 = vpop.f32.mrf.mxu1 }
 0x421   :  { %v3436_v25 = vadd.f32 %v5394_v58, %v8137_v47 }
 0x422   :  { %v3259_v17 = vpop.f32.mrf.mxu0  ;;  %v3427_v23 = vpop.f32.mrf.mxu1 }
 0x423   :  { %v3260_v21 = vadd.f32 %v8126_v40, %v3259_v17 }
 0x424   :  { %v8121_v59 = vpop.f32.mrf.mxu0  ;;  %v5395_v10 = vpop.f32.mrf.mxu1 }
 0x425   :  { %v3439_v22 = vadd.f32 %v5395_v10, %v8137_v47 }
 0x426   :  { %v3262_v56 = vpop.f32.mrf.mxu0  ;;  %v3430_v0 = vpop.f32.mrf.mxu1 }
 0x427   :  { %v3263_v28 = vadd.f32 %v8126_v40, %v3262_v56  ;;  %v3667_v3 = vpack.c.bf16 %v3439_v22, %v3436_v25  ;;  %v3431_v44 = vadd.f32 %v8137_v47, %v3430_v0 }
 0x428   :  { %v8130_v11 = vpop.f32.mrf.mxu0  ;;  %v5398_v12 = vpop.f32.mrf.mxu1 }
 0x429   :  { %v3658_v35 = vpack.c.bf16 %v3263_v28, %v3260_v21  ;;  %v3452_v30 = vadd.f32 %v5398_v12, %v8137_v47  ;;  %v3428_v21 = vadd.f32 %v8137_v47, %v3427_v23 }
 0x42a   :  { %v8132_v49 = vpop.f32.mrf.mxu0  ;;  %v3443_v55 = vpop.f32.mrf.mxu1 }
 0x42b   :  { %5448 = vmatprep.mubr.bf16.mxu1 %v3658_v35  ;;  %v3444_v36 = vadd.f32 %v8137_v47, %v3443_v55  ;;  %v3666_v55 = vpack.c.bf16 %v3431_v44, %v3428_v21 }
 0x42c   :  { %v8139_v31 = vpop.f32.mrf.mxu0  ;;  %v5399_v57 = vpop.f32.mrf.mxu1 }
 0x42d   :  { %v3455_v43 = vadd.f32 %v5399_v57, %v8137_v47 }
 0x42e   :  { %v3278_v9 = vpop.f32.mrf.mxu0  ;;  %v3446_v41 = vpop.f32.mrf.mxu1 }
 0x42f   :  { %v3669_v54 = vpack.c.bf16 %v3455_v43, %v3452_v30  ;;  %v3447_v26 = vadd.f32 %v8137_v47, %v3446_v41  ;;  %v3279_v22 = vadd.f32 %v8126_v40, %v3278_v9 }
 0x430   :  { %v8145_v45 = vpop.f32.mrf.mxu0  ;;  %v5402_v24 = vpop.f32.mrf.mxu1 }
 0x431   :  { %v3668_v37 = vpack.c.bf16 %v3447_v26, %v3444_v36  ;;  %5440 = vmatprep.subr.bf16.mxu1 %v3669_v54  ;;  %v3468_v36 = vadd.f32 %v5402_v24, %v8137_v47  ;;  %v4598_v24 = vld [vmem:[%s8565_s14] ss:$0 sm:$0xff] }
 0x432   :  { %v3291_v38 = vpop.f32.mrf.mxu0  ;;  %v3459_v19 = vpop.f32.mrf.mxu1  ;;  %5441 = vmatpush3.bf16.xpose.msra.mxu1 %v3669_v54 }
 0x433   :  { %5442 = vmatprep.subr.bf16.mxu1 %v3668_v37  ;;  %v3292_v5 = vadd.f32 %v8126_v40, %v3291_v38 }
 0x434   :  { %v8147_v14 = vpop.f32.mrf.mxu0  ;;  %v5403_v53 = vpop.f32.mrf.mxu1 }
 0x435   :  { %v3471_v43 = vadd.f32 %v5403_v53, %v8137_v47 }
 0x436   :  { %v3294_v48 = vpop.f32.mrf.mxu0  ;;  %v3462_v52 = vpop.f32.mrf.mxu1 }
 0x437   :  { %v3295_v20 = vadd.f32 %v8126_v40, %v3294_v48  ;;  %v3671_v54 = vpack.c.bf16 %v3471_v43, %v3468_v36  ;;  %v3268_v48 = vadd.f32 %v8119_v61, %v8126_v40  ;;  %v3463_v53 = vadd.f32 %v8137_v47, %v3462_v52 }
 0x438   :  { %v8153_v34 = vpop.f32.mrf.mxu0  ;;  %v5406_v51 = vpop.f32.mrf.mxu1 }
 0x439   :  { %v3662_v13 = vpack.c.bf16 %v3295_v20, %v3292_v5  ;;  %v3484_v58 = vadd.f32 %v5406_v51, %v8137_v47  ;;  %v3276_v5 = vadd.f32 %v8126_v40, %v8132_v49  ;;  %v3287_v49 = vadd.f32 %v8139_v31, %v8126_v40 }
 0x43a   :  { %v8155_v29 = vpop.f32.mrf.mxu0  ;;  %v3475_v42 = vpop.f32.mrf.mxu1  ;;  %5443 = vmatpush3.bf16.xpose.msra.mxu1 %v3668_v37  ;;  %v3271_v37 = vadd.f32 %v8121_v59, %v8126_v40 }
 0x43b   :  { %5444 = vmatprep.subr.bf16.mxu1 %v3667_v3  ;;  %5464 = vmatprep.mubr.bf16.mxu0 %v3662_v13  ;;  %v3476_v28 = vadd.f32 %v8137_v47, %v3475_v42  ;;  %v3660_v9 = vpack.c.bf16 %v3279_v22, %v3276_v5  ;;  %v3308_v5 = vadd.f32 %v8126_v40, %v8155_v29 }
 0x43c   :  { %v8157_v1 = vpop.f32.mrf.mxu0  ;;  %v5407_v16 = vpop.f32.mrf.mxu1  ;;  %v3659_v59 = vpack.c.bf16 %v3271_v37, %v3268_v48  ;;  %v3300_v48 = vadd.f32 %v8145_v45, %v8126_v40 }
 0x43d   :  { %v3487_v17 = vadd.f32 %v5407_v16, %v8137_v47  ;;  %v3319_v45 = vadd.f32 %v8157_v1, %v8126_v40 }
 0x43e   :  { %v8162_v10 = vpop.f32.mrf.mxu0  ;;  %v3478_v56 = vpop.f32.mrf.mxu1 }
 0x43f   :  { %v3673_v12 = vpack.c.bf16 %v3487_v17, %v3484_v58  ;;  %v3479_v35 = vadd.f32 %v8137_v47, %v3478_v56 }
 0x441   :  { %v3672_v57 = vpack.c.bf16 %v3479_v35, %v3476_v28  ;;  %v5426_v30 = vpop.f32.mrf.mxu0  ;;  %5456 = vmatprep.subr.bf16.mxu0 %v3673_v12  ;;  %v3284_v28 = vadd.f32 %v8130_v11, %v8126_v40  ;;  %v3303_v11 = vadd.f32 %v8147_v14, %v8126_v40 }
 0x442   :  { %5445 = vmatpush3.bf16.xpose.msra.mxu1 %v3667_v3  ;;  %5457 = vmatpush3.bf16.xpose.msra.mxu0 %v3673_v12  ;;  %v3460_v3 = vadd.f32 %v8137_v47, %v3459_v19  ;;  %v3604_v47 = vadd.f32 %v5426_v30, %v4598_v24 }
 0x443   :  { %v3595_v0 = vpop.f32.mrf.mxu0  ;;  %5446 = vmatprep.subr.bf16.mxu1 %v3666_v55  ;;  %5458 = vmatprep.subr.bf16.mxu0 %v3672_v57  ;;  %v3661_v43 = vpack.c.bf16 %v3287_v49, %v3284_v28 }
 0x444   :  { %v3670_v44 = vpack.c.bf16 %v3463_v53, %v3460_v3  ;;  %v3596_v36 = vadd.f32 %v4598_v24, %v3595_v0  ;;  %v3311_v0 = vadd.f32 %v8126_v40, %v8162_v10  ;;  %v3316_v10 = vadd.f32 %v8153_v34, %v8126_v40 }
 0x445   :  { %v5427_v41 = vpop.f32.mrf.mxu0 }
 0x446   :  { %v3607_v58 = vadd.f32 %v5427_v41, %v4598_v24  ;;  %v3664_v3 = vpack.c.bf16 %v3311_v0, %v3308_v5  ;;  %v3665_v29 = vpack.c.bf16 %v3319_v45, %v3316_v10 }
 0x447   :  { %v3598_v23 = vpop.f32.mrf.mxu0 }
 0x448   :  { %v3990_v35 = vpack.c.bf16 %v3607_v58, %v3604_v47 }
 0x449   :  { %v5430_v26 = vpop.f32.mrf.mxu0 }
 0x44a   :  { %5447 = vmatpush3.bf16.xpose.msra.mxu1 %v3666_v55  ;;  %5459 = vmatpush3.bf16.xpose.msra.mxu0 %v3672_v57  ;;  %v3620_v20 = vadd.f32 %v5430_v26, %v4598_v24  ;;  %v3599_v55 = vadd.f32 %v4598_v24, %v3598_v23 }
 0x44b   :  { %v3611_v38 = vpop.f32.mrf.mxu0  ;;  %5460 = vmatprep.subr.bf16.mxu0 %v3671_v54 }
 0x44c   :  { %v3612_v42 = vadd.f32 %v4598_v24, %v3611_v38  ;;  %v3989_v30 = vpack.c.bf16 %v3599_v55, %v3596_v36 }
 0x44d   :  { %v5431_v25 = vpop.f32.mrf.mxu0 }
 0x44e   :  { %v3623_v51 = vadd.f32 %v5431_v25, %v4598_v24 }
 0x44f   :  { %v3614_v13 = vpop.f32.mrf.mxu0 }
 0x450   :  { %v3992_v16 = vpack.c.bf16 %v3623_v51, %v3620_v20  ;;  %v3615_v61 = vadd.f32 %v4598_v24, %v3614_v13  ;;  %v3663_v51 = vpack.c.bf16 %v3303_v11, %v3300_v48  ;;  %v5722_v48 = vld [vmem:[%s8566_s15 + $0x30] sm:$0xff]  }
 0x451   :  { %v5434_v52 = vpop.f32.mrf.mxu0  ;;  %5449 = vmatmul.mubr.bf16.vlgmr.msra.gmra.mxu1 %v3659_v59 }
 0x452   :  { %v3991_v17 = vpack.c.bf16 %v3615_v61, %v3612_v42  ;;  %v3636_v56 = vadd.f32 %v5434_v52, %v4598_v24  ;;  %5472 = vmatprep.subr.bf16.mxu1 %v3992_v16  ;;  %5452 = vmatprep.mubr.bf16.mxu1 %v3660_v9 }
 0x453   :  { %v3627_v21 = vpop.f32.mrf.mxu0  ;;  %5461 = vmatpush3.bf16.xpose.msra.mxu0 %v3671_v54  ;;  %5473 = vmatpush3.bf16.msra.mxu1 %v3992_v16 }
 0x454   :  { %v3628_v19 = vadd.f32 %v4598_v24, %v3627_v21  ;;  %5462 = vmatprep.subr.bf16.mxu0 %v3670_v44  ;;  %5474 = vmatprep.subr.bf16.mxu1 %v3991_v17 }
 0x455   :  { %v5435_v12 = vpop.f32.mrf.mxu0 }
 0x456   :  { %v3639_v57 = vadd.f32 %v5435_v12, %v4598_v24 }
 0x457   :  { %v3630_v41 = vpop.f32.mrf.mxu0  ;;  %5475 = vmatpush3.bf16.msra.mxu1 %v3991_v17 }
 0x458   :  { %v8185_v26 = vpack.c.bf16 %v3639_v57, %v3636_v56  ;;  %v3631_v31 = vadd.f32 %v4598_v24, %v3630_v41  ;;  %5476 = vmatprep.subr.bf16.mxu1 %v3990_v35 }
 0x459   :  { %v5438_v54 = vpop.f32.mrf.mxu0  ;;  %5453 = vmatmul.mubr.bf16.gmra.mxu1 %v3661_v43 }
 0x45a   :  { %v8187_v37 = vpack.c.bf16 %v3631_v31, %v3628_v19  ;;  %v3652_v53 = vadd.f32 %v5438_v54, %v4598_v24 }
 0x45b   :  { %v3643_v38 = vpop.f32.mrf.mxu0  ;;  %5463 = vmatpush3.bf16.xpose.msra.mxu0 %v3670_v44  ;;  %5477 = vmatpush3.bf16.msra.mxu1 %v3990_v35 }
 0x45c   :  { %v3644_v23 = vadd.f32 %v4598_v24, %v3643_v38  ;;  %5478 = vmatprep.subr.bf16.mxu1 %v3989_v30 }
 0x45d   :  { %v5439_v22 = vpop.f32.mrf.mxu0 }
 0x45e   :  { %v3655_v25 = vadd.f32 %v5439_v22, %v4598_v24  ;;  %v5721_v22 = vld [vmem:[%s8566_s15 + $0x38] sm:$0xff]  }
 0x45f   :  { %v3646_v20 = vpop.f32.mrf.mxu0  ;;  %5479 = vmatpush3.bf16.msra.mxu1 %v3989_v30  ;;  %5504 = vmatprep.subr.bf16.mxu0 %v5721_v22 }
 0x460   :  { %v8197_v59 = vpack.c.bf16 %v3655_v25, %v3652_v53  ;;  %v3647_v14 = vadd.f32 %v4598_v24, %v3646_v20  ;;  %v5723_v53 = vld [vmem:[%s8566_s15 + $0x28] sm:$0xff]  }
 0x462   :  { %v8199_v13 = vpack.c.bf16 %v3647_v14, %v3644_v23  ;;  %5465 = vmatmul.mubr.bf16.vlgmr.msra.gmra.mxu0 %v3663_v51  ;;  %5488 = vmatprep.subr.bf16.mxu1 %v8197_v59 }
 0x463   :  { %5468 = vmatprep.mubr.bf16.mxu0 %v3664_v3  ;;  %5505 = vmatpush3.bf16.msra.mxu0 %v5721_v22 }
 0x464   :  { %5506 = vmatprep.subr.bf16.mxu0 %v5722_v48 }
 0x467   :  { %5507 = vmatpush3.bf16.msra.mxu0 %v5722_v48 }
 0x468   :  { %5508 = vmatprep.subr.bf16.mxu0 %v5723_v53 }
 0x46a   :  { %5469 = vmatmul.mubr.bf16.gmra.mxu0 %v3665_v29 }
 0x46b   :  { %5509 = vmatpush3.bf16.msra.mxu0 %v5723_v53 }
 0x511   :  { %v8206_v9 = vpop.f32.mrf.mxu1 }
 0x512   :  { %v3811_v24 = vsel %vm3804_vm2, %v8206_v9, -inf }
 0x513   :  { %3812 = vmax.xlane.f32.xlu1 %v3811_v24  ;;  %v3708_v42 = vpop.f32.mrf.mxu1 }
 0x514   :  { %v3805_v16 = vsel %vm3804_vm2, %v3708_v42, -inf }
 0x515   :  { %3806 = vmax.xlane.f32.xlu0 %v3805_v16  ;;  %v8211_v61 = vpop.f32.mrf.mxu1 }
 0x516   :  { %v3814_v1 = vsel %vm3804_vm2, %v8211_v61, -inf }
 0x517   :  { %3815 = vmax.xlane.f32.xlu1 %v3814_v1  ;;  %v3711_v40 = vpop.f32.mrf.mxu1 }
 0x518   :  { %v3808_v34 = vsel %vm3804_vm2, %v3711_v40, -inf }
 0x519   :  { %3809 = vmax.xlane.f32.xlu0 %v3808_v34  ;;  %v8216_v44 = vpop.f32.mrf.mxu1 }
 0x51a   :  { %v3823_v49 = vsel %vm3804_vm2, %v8216_v44, -inf }
 0x51b   :  { %v8218_v52 = vpop.f32.mrf.mxu1 }
 0x51c   :  { %v3817_v58 = vsel %vm3804_vm2, %v8218_v52, -inf }
 0x51d   :  { %3818 = vmax.xlane.f32.xlu0 %v3817_v58  ;;  %v8222_v17 = vpop.f32.mrf.mxu1 }
 0x51e   :  { %v3826_v28 = vsel %vm3804_vm2, %v8222_v17, -inf }
 0x51f   :  { %v8224_v56 = vpop.f32.mrf.mxu1 }
 0x520   :  { %v3820_v21 = vsel %vm3804_vm2, %v8224_v56, -inf }
 0x521   :  { %3824 = vmax.xlane.f32.xlu0 %v3823_v49  ;;  %3821 = vmax.xlane.f32.xlu1 %v3820_v21 }
 0x522   :  { %v8230_v47 = vpop.f32.mrf.mxu0 }
 0x523   :  { %v3835_v57 = vsel %vm3804_vm2, %v8230_v47, -inf }
 0x524   :  { %v8232_v19 = vpop.f32.mrf.mxu0 }
 0x525   :  { %v3829_v12 = vsel %vm3804_vm2, %v8232_v19, -inf  ;;  %3827 = vmax.xlane.f32.xlu1 %v3826_v28 }
 0x526   :  { %v8238_v35 = vpop.f32.mrf.mxu0  ;;  %3830 = vmax.xlane.f32.xlu0 %v3829_v12 }
 0x527   :  { %v3838_v54 = vsel %vm3804_vm2, %v8238_v35, -inf }
 0x528   :  { %v8240_v55 = vpop.f32.mrf.mxu0 }
 0x529   :  { %v3832_v43 = vsel %vm3804_vm2, %v8240_v55, -inf }
 0x52a   :  { %v8246_v41 = vpop.f32.mrf.mxu0  ;;  %3836 = vmax.xlane.f32.xlu0 %v3835_v57  ;;  %3833 = vmax.xlane.f32.xlu1 %v3832_v43 }
 0x52b   :  { %v3847_v11 = vsel %vm3804_vm2, %v8246_v41, -inf }
 0x52c   :  { %v8248_v36 = vpop.f32.mrf.mxu0 }
 0x52d   :  { %v3841_v31 = vsel %vm3804_vm2, %v8248_v36, -inf }
 0x52e   :  { %v8254_v30 = vpop.f32.mrf.mxu0  ;;  %3842 = vmax.xlane.f32.xlu0 %v3841_v31  ;;  %3839 = vmax.xlane.f32.xlu1 %v3838_v54 }
 0x52f   :  { %v3850_v0 = vsel %vm3804_vm2, %v8254_v30, -inf }
 0x530   :  { %v8256_v38 = vpop.f32.mrf.mxu0 }
 0x531   :  { %v3844_v23 = vsel %vm3804_vm2, %v8256_v38, -inf }
 0x532   :  { %3848 = vmax.xlane.f32.xlu0 %v3847_v11  ;;  %3845 = vmax.xlane.f32.xlu1 %v3844_v23 }
 0x536   :  { %3851 = vmax.xlane.f32.xlu1 %v3850_v0 }
 0x59c   :  { %v3813_v25 = vpop.xlane.xlu1 %3812 }
 0x59d   :  { %v3855_v5 = vsub.f32 %v8206_v9, %v3813_v25 }
 0x59e   :  { %v3807_v20 = vpop.xlane.xlu0 %3806 }
 0x59f   :  { %v3853_v51 = vsub.f32 %v3708_v42, %v3807_v20  ;;  %v3873_v3 = vmul.f32 1.442695, %v3855_v5 }
 0x5a0   :  { %v3816_v14 = vpop.xlane.xlu1 %3815 }
 0x5a1   :  { %v3869_v45 = vmul.f32 1.442695, %v3853_v51  ;;  %v3856_v10 = vsub.f32 %v8211_v61, %v3816_v14 }
 0x5a2   :  { %v3810_v29 = vpop.xlane.xlu0 %3809 }
 0x5a3   :  { %5733 = vpow2.f32 %v3869_v45  ;;  %v3854_v24 = vsub.f32 %v3711_v40, %v3810_v29  ;;  %v3875_v16 = vmul.f32 1.442695, %v3856_v10 }
 0x5a4   :  { %5735 = vpow2.f32 %v3873_v3 }
 0x5a5   :  { %v3871_v1 = vmul.f32 1.442695, %v3854_v24 }
 0x5a6   :  { %v3819_v34 = vpop.xlane.xlu0 %3818 }
 0x5a7   :  { %5737 = vpow2.f32 %v3871_v1  ;;  %v3857_v58 = vsub.f32 %v8218_v52, %v3819_v34 }
 0x5a8   :  { %5739 = vpow2.f32 %v3875_v16 }
 0x5a9   :  { %v3877_v49 = vmul.f32 1.442695, %v3857_v58  ;;  %v5724_v58 = vld [vmem:[%s8566_s15 + $0x20] sm:$0xff]  }
 0x5aa   :  { %v3825_v9 = vpop.xlane.xlu0 %3824  ;;  %v3822_v21 = vpop.xlane.xlu1 %3821  ;;  %5510 = vmatprep.subr.bf16.mxu0 %v5724_v58 }
 0x5ab   :  { %5741 = vpow2.f32 %v3877_v49  ;;  %v3859_v42 = vsub.f32 %v8216_v44, %v3825_v9  ;;  %v3858_v28 = vsub.f32 %v8224_v56, %v3822_v21  ;;  %5511 = vmatpush3.bf16.msra.mxu0 %v5724_v58  ;;  %v4620_v58 = vld [vmem:[%s8582_s23 + $0x61] sm:$0xff] }
 0x5ad   :  { %v3881_v61 = vmul.f32 1.442695, %v3859_v42  ;;  %v3879_v12 = vmul.f32 1.442695, %v3858_v28 }
 0x5ae   :  { %v3828_v57 = vpop.xlane.xlu1 %3827 }
 0x5af   :  { %5743 = vpow2.f32 %v3881_v61  ;;  %v3831_v40 = vpop.xlane.xlu0 %3830  ;;  %v3860_v43 = vsub.f32 %v8222_v17, %v3828_v57 }
 0x5b0   :  { %v8279_v31 = vpop.eup %5733  ;;  %5745 = vpow2.f32 %v3879_v12  ;;  %v3861_v52 = vsub.f32 %v8232_v19, %v3831_v40 }
 0x5b1   :  { %v3883_v54 = vmul.f32 1.442695, %v3860_v43  ;;  %v3901_v11 = vsel %vm3804_vm2, %v8279_v31, 0.0  ;;  %v8284_v23 = vpop.eup %5735 }
 0x5b2   :  { %v3885_v44 = vmul.f32 1.442695, %v3861_v52  ;;  %3902 = vadd.xlane.f32.xlu0 %v3901_v11  ;;  %v3907_v19 = vsel %vm3804_vm2, %v8284_v23, 0.0 }
 0x5b3   :  { %5747 = vpow2.f32 %v3883_v54  ;;  %v3837_v56 = vpop.xlane.xlu0 %3836  ;;  %v3834_v0 = vpop.xlane.xlu1 %3833 }
 0x5b4   :  { %v8286_v22 = vpop.eup %5737  ;;  %5749 = vpow2.f32 %v3885_v44  ;;  %v3863_v17 = vsub.f32 %v8230_v47, %v3837_v56  ;;  %v3862_v48 = vsub.f32 %v8240_v55, %v3834_v0 }
 0x5b5   :  { %v3904_v53 = vsel %vm3804_vm2, %v8286_v22, 0.0  ;;  %v8294_v25 = vpop.eup %5739 }
 0x5b6   :  { %v3889_v5 = vmul.f32 1.442695, %v3863_v17  ;;  %v3887_v20 = vmul.f32 1.442695, %v3862_v48  ;;  %3908 = vadd.xlane.f32.xlu0 %v3907_v19  ;;  %3905 = vadd.xlane.f32.xlu1 %v3904_v53  ;;  %v3910_v10 = vsel %vm3804_vm2, %v8294_v25, 0.0 }
 0x5b7   :  { %v3843_v51 = vpop.xlane.xlu0 %3842  ;;  %v3840_v14 = vpop.xlane.xlu1 %3839 }
 0x5b8   :  { %v8296_v3 = vpop.eup %5741  ;;  %5751 = vpow2.f32 %v3889_v5  ;;  %v3865_v47 = vsub.f32 %v8248_v36, %v3843_v51  ;;  %v3864_v55 = vsub.f32 %v8238_v35, %v3840_v14  ;;  %v5725_v5 = vld [vmem:[%s8566_s15 + $0x18] sm:$0xff]  }
 0x5b9   :  { %5753 = vpow2.f32 %v3887_v20  ;;  %v3913_v45 = vsel %vm3804_vm2, %v8296_v3, 0.0  ;;  %5512 = vmatprep.subr.bf16.mxu0 %v5725_v5 }
 0x5ba   :  { %v3893_v29 = vmul.f32 1.442695, %v3865_v47  ;;  %v3891_v24 = vmul.f32 1.442695, %v3864_v55  ;;  %3914 = vadd.xlane.f32.xlu0 %v3913_v45  ;;  %3911 = vadd.xlane.f32.xlu1 %v3910_v10  ;;  %v5726_v47 = vld [vmem:[%s8566_s15 + $0x10] sm:$0xff]   ;;  %v5727_v55 = vld [vmem:[%s8566_s15 + $0x8] sm:$0xff]  }
 0x5bb   :  { %v3849_v16 = vpop.xlane.xlu0 %3848  ;;  %v3846_v1 = vpop.xlane.xlu1 %3845  ;;  %5513 = vmatpush3.bf16.msra.mxu0 %v5725_v5  ;;  %v5728_v45 = vld [vmem:[%s8566_s15] sm:$0xff]   ;;  %v4615_v10 = vld [vmem:[%s8582_s23 + $0x11] sm:$0xff] }
 0x5bc   :  { %v8304_v34 = vpop.eup %5743  ;;  %5755 = vpow2.f32 %v3893_v29  ;;  %v3867_v36 = vsub.f32 %v8246_v41, %v3849_v16  ;;  %v3866_v35 = vsub.f32 %v8256_v38, %v3846_v1  ;;  %5514 = vmatprep.subr.bf16.mxu0 %v5726_v47  ;;  %v4616_v29 = vld [vmem:[%s8582_s23 + $0x21] sm:$0xff] }
 0x5bd   :  { %v8311_v49 = vpop.eup %5745  ;;  %5757 = vpow2.f32 %v3891_v24  ;;  %v3919_v9 = vsel %vm3804_vm2, %v8304_v34, 0.0  ;;  %v4617_v24 = vld [vmem:[%s8582_s23 + $0x31] sm:$0xff]  ;;  %v4202_v16 = vpack.c.bf16 %v4616_v29, %v4615_v10  ;;  %v4618_v1 = vld [vmem:[%s8582_s23 + $0x41] sm:$0xff] }
 0x5be   :  { %v3897_v21 = vmul.f32 1.442695, %v3867_v36  ;;  %v3895_v42 = vmul.f32 1.442695, %v3866_v35  ;;  %3920 = vadd.xlane.f32.xlu0 %v3919_v9  ;;  %v3916_v28 = vsel %vm3804_vm2, %v8311_v49, 0.0  ;;  %v4203_v36 = vpack.c.bf16 %v4618_v1, %v4617_v24  ;;  %v4619_v35 = vld [vmem:[%s8582_s23 + $0x51] sm:$0xff] }
 0x5bf   :  { %3917 = vadd.xlane.f32.xlu1 %v3916_v28  ;;  %v3852_v41 = vpop.xlane.xlu1 %3851  ;;  %5515 = vmatpush3.bf16.msra.mxu0 %v5726_v47  ;;  %v4621_v9 = vld [vmem:[%s8582_s23 + $0x71] sm:$0xff]  ;;  %v4630_v5 = vld [vmem:[%s8582_s23 + $0x121] sm:$0xff] }
 0x5c0   :  { %v8317_v38 = vpop.eup %5747  ;;  %5759 = vpow2.f32 %v3897_v21  ;;  %v3868_v61 = vsub.f32 %v8254_v30, %v3852_v41  ;;  %5516 = vmatprep.subr.bf16.mxu0 %v5727_v55  ;;  %5520 = vmatprep.mubr.bf16.mxu0 %v4202_v16  ;;  %v4204_v21 = vpack.c.bf16 %v4620_v58, %v4619_v35  ;;  %v4623_v41 = vld [vmem:[%s8582_s23 + $0xb1] sm:$0xff] }
 0x5c1   :  { %v8320_v12 = vpop.eup %5749  ;;  %5761 = vpow2.f32 %v3895_v42  ;;  %v3922_v57 = vsel %vm3804_vm2, %v8317_v38, 0.0  ;;  %v4622_v42 = vld [vmem:[%s8582_s23 + $0x81] sm:$0xff] }
 0x5c2   :  { %v3899_v40 = vmul.f32 1.442695, %v3868_v61  ;;  %v3925_v43 = vsel %vm3804_vm2, %v8320_v12, 0.0  ;;  %v4205_v28 = vpack.c.bf16 %v4622_v42, %v4621_v9  ;;  %v4624_v61 = vld [vmem:[%s8582_s23 + $0xc1] sm:$0xff] }
 0x5c3   :  { %3926 = vadd.xlane.f32.xlu0 %v3925_v43  ;;  %3923 = vadd.xlane.f32.xlu1 %v3922_v57  ;;  %v4625_v57 = vld [vmem:[%s8582_s23 + $0xd1] sm:$0xff]  ;;  %v4626_v43 = vld [vmem:[%s8582_s23 + $0xe1] sm:$0xff] }
 0x5c4   :  { %5763 = vpow2.f32 %v3899_v40  ;;  %5517 = vmatpush3.bf16.msra.mxu0 %v5727_v55  ;;  %v4206_v40 = vpack.c.bf16 %v4624_v61, %v4623_v41 }
 0x5c5   :  { %v8326_v52 = vpop.eup %5751  ;;  %5518 = vmatprep.subr.bf16.mxu0 %v5728_v45 }
 0x5c6   :  { %v8328_v54 = vpop.eup %5753  ;;  %v3931_v30 = vsel %vm3804_vm2, %v8326_v52, 0.0 }
 0x5c7   :  { %3932 = vadd.xlane.f32.xlu0 %v3931_v30  ;;  %v3928_v11 = vsel %vm3804_vm2, %v8328_v54, 0.0  ;;  %v4627_v30 = vld [vmem:[%s8582_s23 + $0xf1] sm:$0xff] }
 0x5c8   :  { %3929 = vadd.xlane.f32.xlu1 %v3928_v11  ;;  %5519 = vmatpush3.bf16.msra.mxu0 %v5728_v45  ;;  %v4628_v11 = vld [vmem:[%s8582_s23 + $0x101] sm:$0xff] }
 0x5c9   :  { %v8334_v44 = vpop.eup %5755 }
 0x5ca   :  { %v8336_v56 = vpop.eup %5757  ;;  %v3937_v0 = vsel %vm3804_vm2, %v8334_v44, 0.0 }
 0x5cb   :  { %3938 = vadd.xlane.f32.xlu0 %v3937_v0  ;;  %v3934_v17 = vsel %vm3804_vm2, %v8336_v56, 0.0  ;;  %5521 = vmatmul.mubr.bf16.vlgmr.msra.gmra.mxu0 %v4203_v36  ;;  %v4207_v0 = vpack.c.bf16 %v4626_v43, %v4625_v57 }
 0x5cc   :  { %3935 = vadd.xlane.f32.xlu1 %v3934_v17  ;;  %5524 = vmatprep.mubr.bf16.mxu0 %v4204_v21  ;;  %v4208_v17 = vpack.c.bf16 %v4628_v11, %v4627_v30 }
 0x5cd   :  { %v8342_v48 = vpop.eup %5759 }
 0x5ce   :  { %v8344_v19 = vpop.eup %5761  ;;  %v3943_v53 = vsel %vm3804_vm2, %v8342_v48, 0.0 }
 0x5cf   :  { %3944 = vadd.xlane.f32.xlu0 %v3943_v53  ;;  %v3940_v20 = vsel %vm3804_vm2, %v8344_v19, 0.0  ;;  %v4629_v53 = vld [vmem:[%s8582_s23 + $0x111] sm:$0xff] }
 0x5d0   :  { %3941 = vadd.xlane.f32.xlu1 %v3940_v20  ;;  %v4209_v20 = vpack.c.bf16 %v4630_v5, %v4629_v53 }
 0x5d1   :  { %v8353_v51 = vpop.eup %5763 }
 0x5d2   :  { %v3946_v14 = vsel %vm3804_vm2, %v8353_v51, 0.0 }
 0x5d3   :  { %5525 = vmatmul.mubr.bf16.gmra.mxu0 %v4205_v28 }
 0x5d4   :  { %3947 = vadd.xlane.f32.xlu1 %v3946_v14  ;;  %5528 = vmatprep.mubr.bf16.mxu0 %v4206_v40 }
 0x5db   :  { %5529 = vmatmul.mubr.bf16.gmra.mxu0 %v4207_v0 }
 0x5dc   :  { %5532 = vmatprep.mubr.bf16.mxu0 %v4208_v17 }
 0x5e3   :  { %5533 = vmatmul.mubr.bf16.gmra.mxu0 %v4209_v20 }
 0x63b   :  { %v3903_v14 = vpop.xlane.xlu0 %3902 }
 0x63c   :  { %5765 = vrcp.f32 %v3903_v14 }
 0x63f   :  { %v3909_v47 = vpop.xlane.xlu0 %3908  ;;  %v3906_v55 = vpop.xlane.xlu1 %3905 }
 0x640   :  { %5767 = vrcp.f32 %v3906_v55 }
 0x641   :  { %5769 = vrcp.f32 %v3909_v47 }
 0x643   :  { %v3915_v45 = vpop.xlane.xlu0 %3914  ;;  %v3912_v10 = vpop.xlane.xlu1 %3911 }
 0x644   :  { %5771 = vrcp.f32 %v3912_v10 }
 0x645   :  { %5773 = vrcp.f32 %v3915_v45 }
 0x647   :  { %v3921_v29 = vpop.xlane.xlu0 %3920 }
 0x648   :  { %v3918_v24 = vpop.xlane.xlu1 %3917 }
 0x649   :  { %5775 = vrcp.f32 %v3918_v24  ;;  %v5766_v16 = vpop.eup %5765 }
 0x64a   :  { %5777 = vrcp.f32 %v3921_v29  ;;  %v3965_v58 = vmul.f32 %v5766_v16, %v8279_v31 }
 0x64c   :  { %v3927_v1 = vpop.xlane.xlu0 %3926  ;;  %v3924_v36 = vpop.xlane.xlu1 %3923 }
 0x64d   :  { %v5768_v35 = vpop.eup %5767  ;;  %5779 = vrcp.f32 %v3924_v36 }
 0x64e   :  { %v3966_v9 = vmul.f32 %v5768_v35, %v8286_v22  ;;  %v5770_v21 = vpop.eup %5769  ;;  %5781 = vrcp.f32 %v3927_v1 }
 0x64f   :  { %v3967_v57 = vmul.f32 %v5770_v21, %v8284_v23 }
 0x650   :  { %v3933_v42 = vpop.xlane.xlu0 %3932  ;;  %v3981_v41 = vpack.c.bf16 %v3966_v9, %v3965_v58 }
 0x651   :  { %v3930_v28 = vpop.xlane.xlu1 %3929  ;;  %v5772_v61 = vpop.eup %5771 }
 0x652   :  { %5783 = vrcp.f32 %v3930_v28  ;;  %v3968_v40 = vmul.f32 %v5772_v61, %v8294_v25  ;;  %5480 = vmatprep.mubr.msk.bf16.mxu1 %vm3804_vm2, %v3981_v41  ;;  %v5774_v43 = vpop.eup %5773 }
 0x653   :  { %5785 = vrcp.f32 %v3933_v42  ;;  %v3969_v22 = vmul.f32 %v5774_v43, %v8296_v3 }
 0x654   :  { %v3939_v30 = vpop.xlane.xlu0 %3938  ;;  %v3982_v11 = vpack.c.bf16 %v3968_v40, %v3967_v57 }
 0x655   :  { %v3936_v31 = vpop.xlane.xlu1 %3935 }
 0x656   :  { %v5776_v0 = vpop.eup %5775  ;;  %5787 = vrcp.f32 %v3936_v31  ;;  %5481 = vmatmul.mubr.msk.bf16.vlgmr.msra.gmra.mxu1 %vm3804_vm2, %v3982_v11 }
 0x657   :  { %v3970_v17 = vmul.f32 %v5776_v0, %v8311_v49  ;;  %5789 = vrcp.f32 %v3939_v30  ;;  %5489 = vmatpush3.bf16.msra.mxu1 %v8197_v59  ;;  %v5778_v23 = vpop.eup %5777 }
 0x658   :  { %v3945_v25 = vpop.xlane.xlu0 %3944  ;;  %5490 = vmatprep.subr.bf16.mxu1 %v8199_v13  ;;  %v3971_v3 = vmul.f32 %v5778_v23, %v8304_v34 }
 0x659   :  { %v3942_v53 = vpop.xlane.xlu1 %3941  ;;  %v3983_v5 = vpack.c.bf16 %v3970_v17, %v3969_v22 }
 0x65a   :  { %5791 = vrcp.f32 %v3942_v53  ;;  %v5780_v20 = vpop.eup %5779 }
 0x65b   :  { %5484 = vmatprep.mubr.msk.bf16.mxu1 %vm3804_vm2, %v3983_v5  ;;  %5793 = vrcp.f32 %v3945_v25  ;;  %5491 = vmatpush3.bf16.msra.mxu1 %v8199_v13  ;;  %v3972_v49 = vmul.f32 %v5780_v20, %v8317_v38  ;;  %v5782_v14 = vpop.eup %5781 }
 0x65c   :  { %5492 = vmatprep.subr.bf16.mxu1 %v8185_v26  ;;  %v3973_v45 = vmul.f32 %v5782_v14, %v8320_v12 }
 0x65d   :  { %v3948_v59 = vpop.xlane.xlu1 %3947  ;;  %v3984_v47 = vpack.c.bf16 %v3972_v49, %v3971_v3 }
 0x65e   :  { %5795 = vrcp.f32 %v3948_v59 }
 0x65f   :  { %v5784_v55 = vpop.eup %5783  ;;  %5485 = vmatmul.mubr.msk.bf16.gmra.mxu1 %vm3804_vm2, %v3984_v47 }
 0x660   :  { %v3974_v10 = vmul.f32 %v5784_v55, %v8328_v54  ;;  %v5786_v29 = vpop.eup %5785  ;;  %5493 = vmatpush3.bf16.msra.mxu1 %v8185_v26 }
 0x661   :  { %5494 = vmatprep.subr.bf16.mxu1 %v8187_v37  ;;  %v3975_v38 = vmul.f32 %v5786_v29, %v8326_v52 }
 0x662   :  { %v3985_v13 = vpack.c.bf16 %v3974_v10, %v3973_v45 }
 0x663   :  { %v5788_v34 = vpop.eup %5787 }
 0x664   :  { %v3976_v24 = vmul.f32 %v5788_v34, %v8336_v56  ;;  %5496 = vmatprep.mubr.msk.bf16.mxu1 %vm3804_vm2, %v3985_v13  ;;  %v5790_v16 = vpop.eup %5789  ;;  %5495 = vmatpush3.bf16.msra.mxu1 %v8187_v37 }
 0x665   :  { %v3977_v54 = vmul.f32 %v5790_v16, %v8334_v44 }
 0x666   :  { %v3986_v1 = vpack.c.bf16 %v3976_v24, %v3975_v38 }
 0x667   :  { %v5792_v12 = vpop.eup %5791 }
 0x668   :  { %5497 = vmatmul.mubr.msk.bf16.vlgmr.msra.gmra.mxu1 %vm3804_vm2, %v3986_v1  ;;  %v3978_v26 = vmul.f32 %v5792_v12, %v8344_v19  ;;  %v5794_v36 = vpop.eup %5793  ;;  %v8448_v19 = vld [vmem:[%s8567_s16] ss:$0 sm:$0xff] }
 0x669   :  { %v3979_v52 = vmul.f32 %v5794_v36, %v8342_v48  ;;  %v8453_v48 = vstv %s8568_s17 }
 0x66a   :  { %v3987_v35 = vpack.c.bf16 %v3978_v26, %v3977_v54 }
 0x66b   :  { %v5796_v58 = vpop.eup %5795 }
 0x66c   :  { %v3980_v56 = vmul.f32 %v5796_v58, %v8353_v51  ;;  %5500 = vmatprep.mubr.msk.bf16.mxu1 %vm3804_vm2, %v3987_v35 }
 0x66e   :  { %v3988_v9 = vpack.c.bf16 %v3980_v56, %v3979_v52 }
 0x670   :  { %5501 = vmatmul.mubr.msk.bf16.gmra.mxu1 %vm3804_vm2, %v3988_v9 }
 0x68b   :  { %v5522_v37 = vpop.f32.mrf.mxu0 }
 0x68c   :  { %v4324_v40 = vadd.f32 %v5522_v37, %v8448_v19 }
 0x68d   :  { %v4315_v21 = vpop.f32.mrf.mxu0 }
 0x68e   :  { %v4316_v17 = vadd.f32 %v8448_v19, %v4315_v21 }
 0x68f   :  { %v5523_v42 = vpop.f32.mrf.mxu0 }
 0x690   :  { %v4327_v5 = vadd.f32 %v5523_v42, %v8448_v19 }
 0x691   :  { %v4318_v28 = vpop.f32.mrf.mxu0 }
 0x692   :  { %v4319_v55 = vadd.f32 %v8448_v19, %v4318_v28 }
 0x693   :  { %v5526_v41 = vpop.f32.mrf.mxu0 }
 0x694   :  { %v4340_v29 = vadd.f32 %v5526_v41, %v8448_v19 }
 0x695   :  { %v4331_v44 = vpop.f32.mrf.mxu0 }
 0x696   :  { %v4332_v54 = vadd.f32 %v8448_v19, %v4331_v44 }
 0x697   :  { %v5527_v61 = vpop.f32.mrf.mxu0 }
 0x699   :  { %v4334_v51 = vpop.f32.mrf.mxu0 }
 0x69a   :  { %v4335_v42 = vadd.f32 %v8448_v19, %v4334_v51 }
 0x69b   :  { %v5530_v0 = vpop.f32.mrf.mxu0 }
 0x69d   :  { %v4347_v59 = vpop.f32.mrf.mxu0 }
 0x69f   :  { %v5531_v24 = vpop.f32.mrf.mxu0 }
 0x6a1   :  { %v4350_v52 = vpop.f32.mrf.mxu0 }
 0x716   :  { %v5482_v57 = vpop.f32.mrf.mxu1 }
 0x717   :  { %v4155_v43 = vmul.f32 %v5482_v57, %v8453_v48 }
 0x718   :  { %v4043_v30 = vpop.f32.mrf.mxu1 }
 0x719   :  { %v4171_v11 = vadd.f32 %v4155_v43, %v8015_v60  ;;  %v4153_v31 = vmul.f32 %v8453_v48, %v4043_v30  ;;  %v5534_v43 = vpop.f32.mrf.mxu0 }
 0x71a   :  { %v5483_v22 = vpop.f32.mrf.mxu1 }
 0x71b   :  { %v4380_v23 = vadd.f32 %v4324_v40, %v4171_v11  ;;  %v4169_v25 = vadd.f32 %v4153_v31, %v8009_v39  ;;  %v4156_v53 = vmul.f32 %v5483_v22, %v8453_v48  ;;  %v4348_v31 = vadd.f32 %v8448_v19, %v4347_v59 }
 0x71c   :  { %v4046_v20 = vpop.f32.mrf.mxu1 }
 0x71d   :  { %v4396_v3 = vmax.f32 %v4380_v23, 0.0  ;;  %v4378_v49 = vadd.f32 %v4316_v17, %v4169_v25  ;;  %v4172_v14 = vadd.f32 %v4156_v53, %v8018_v7  ;;  %v4154_v60 = vmul.f32 %v8453_v48, %v4046_v20 }
 0x71e   :  { %v4359_v25 = vadd.f32 %v5531_v24, %v8448_v19 }
 0x71f   :  { %4412 = vst [vmem:[%s8569_s18 + $0x10] sm:$0xff] %v4396_v3  ;;  %v4394_v47 = vmax.f32 %v4378_v49, 0.0  ;;  %v4381_v39 = vadd.f32 %v4327_v5, %v4172_v14  ;;  %v4170_v45 = vadd.f32 %v4154_v60, %v8012_v62  ;;  %v5486_v10 = vpop.f32.mrf.mxu1  ;;  %v4363_v5 = vpop.f32.mrf.mxu0  ;;  %v4351_v14 = vadd.f32 %v8448_v19, %v4350_v52 }
 0x720   :  { %v4159_v13 = vmul.f32 %v5486_v10, %v8453_v48 }
 0x721   :  { %4410 = vst [vmem:[%s8569_s18] sm:$0xff] %v4394_v47  ;;  %v4397_v7 = vmax.f32 %v4381_v39, 0.0  ;;  %v4379_v34 = vadd.f32 %v4319_v55, %v4170_v45  ;;  %v4059_v38 = vpop.f32.mrf.mxu1  ;;  %v5535_v45 = vpop.f32.mrf.mxu0 }
 0x722   :  { %v4175_v16 = vadd.f32 %v4159_v13, %v8053_v6  ;;  %v4157_v1 = vmul.f32 %v8453_v48, %v4059_v38  ;;  %v4343_v6 = vadd.f32 %v5527_v61, %v8448_v19 }
 0x723   :  { %4413 = vst [vmem:[%s8569_s18 + $0x18] sm:$0xff] %v4397_v7  ;;  %v4395_v62 = vmax.f32 %v4379_v34, 0.0  ;;  %v5487_v12 = vpop.f32.mrf.mxu1  ;;  %v4364_v34 = vadd.f32 %v8448_v19, %v4363_v5 }
 0x724   :  { %v4384_v26 = vadd.f32 %v4340_v29, %v4175_v16  ;;  %v4173_v36 = vadd.f32 %v4157_v1, %v8021_v46  ;;  %v4160_v35 = vmul.f32 %v5487_v12, %v8453_v48  ;;  %v4356_v46 = vadd.f32 %v5530_v0, %v8448_v19  ;;  %v4366_v12 = vpop.f32.mrf.mxu0 }
 0x725   :  { %4411 = vst [vmem:[%s8569_s18 + $0x8] sm:$0xff] %v4395_v62  ;;  %v4062_v58 = vpop.f32.mrf.mxu1  ;;  %v4375_v62 = vadd.f32 %v5535_v45, %v8448_v19 }
 0x726   :  { %v4400_v56 = vmax.f32 %v4384_v26, 0.0  ;;  %v4382_v9 = vadd.f32 %v4332_v54, %v4173_v36  ;;  %v4176_v37 = vadd.f32 %v4160_v35, %v8056_v50  ;;  %v4158_v21 = vmul.f32 %v8453_v48, %v4062_v58 }
 0x728   :  { %v5498_v28 = vpop.f32.mrf.mxu1  ;;  %4416 = vst [vmem:[%s8569_s18 + $0x30] sm:$0xff] %v4400_v56  ;;  %v4398_v41 = vmax.f32 %v4382_v9, 0.0  ;;  %v4385_v44 = vadd.f32 %v4343_v6, %v4176_v37  ;;  %v4174_v61 = vadd.f32 %v4158_v21, %v8024_v8  ;;  %v4367_v6 = vadd.f32 %v8448_v19, %v4366_v12 }
 0x729   :  { %v4163_v57 = vmul.f32 %v5498_v28, %v8453_v48 }
 0x72a   :  { %v4120_v40 = vpop.f32.mrf.mxu1  ;;  %4414 = vst [vmem:[%s8569_s18 + $0x20] sm:$0xff] %v4398_v41  ;;  %v4401_v50 = vmax.f32 %v4385_v44, 0.0  ;;  %v4383_v51 = vadd.f32 %v4335_v42, %v4174_v61 }
 0x72b   :  { %v4179_v30 = vadd.f32 %v4163_v57, %v8079_v33  ;;  %v4161_v11 = vmul.f32 %v8453_v48, %v4120_v40 }
 0x72c   :  { %v5499_v0 = vpop.f32.mrf.mxu1  ;;  %4417 = vst [vmem:[%s8569_s18 + $0x38] sm:$0xff] %v4401_v50  ;;  %v4399_v8 = vmax.f32 %v4383_v51, 0.0 }
 0x72d   :  { %v4388_v22 = vadd.f32 %v4356_v46, %v4179_v30  ;;  %v4177_v17 = vadd.f32 %v4161_v11, %v8062_v4  ;;  %v4164_v23 = vmul.f32 %v5499_v0, %v8453_v48  ;;  %v4372_v4 = vadd.f32 %v5534_v43, %v8448_v19 }
 0x72e   :  { %v4123_v53 = vpop.f32.mrf.mxu1  ;;  %4415 = vst [vmem:[%s8569_s18 + $0x28] sm:$0xff] %v4399_v8 }
 0x72f   :  { %v4404_v33 = vmax.f32 %v4388_v22, 0.0  ;;  %v4386_v20 = vadd.f32 %v4348_v31, %v4177_v17  ;;  %v4180_v3 = vadd.f32 %v4164_v23, %v8082_v2  ;;  %v4162_v49 = vmul.f32 %v8453_v48, %v4123_v53 }
 0x730   :  { %v5502_v60 = vpop.f32.mrf.mxu1 }
 0x731   :  { %4420 = vst [vmem:[%s8569_s18 + $0x50] sm:$0xff] %v4404_v33  ;;  %v4402_v59 = vmax.f32 %v4386_v20, 0.0  ;;  %v4389_v47 = vadd.f32 %v4359_v25, %v4180_v3  ;;  %v4178_v55 = vadd.f32 %v4162_v49, %v8065_v63  ;;  %v4167_v39 = vmul.f32 %v5502_v60, %v8453_v48 }
 0x732   :  { %v4136_v10 = vpop.f32.mrf.mxu1 }
 0x733   :  { %4418 = vst [vmem:[%s8569_s18 + $0x40] sm:$0xff] %v4402_v59  ;;  %v4405_v2 = vmax.f32 %v4389_v47, 0.0  ;;  %v4387_v29 = vadd.f32 %v4351_v14, %v4178_v55  ;;  %v4183_v13 = vadd.f32 %v4167_v39, %v8103_v18  ;;  %v4165_v7 = vmul.f32 %v8453_v48, %v4136_v10 }
 0x734   :  { %v5503_v38 = vpop.f32.mrf.mxu1 }
 0x735   :  { %4421 = vst [vmem:[%s8569_s18 + $0x58] sm:$0xff] %v4405_v2  ;;  %v4403_v63 = vmax.f32 %v4387_v29, 0.0  ;;  %v4392_v24 = vadd.f32 %v4372_v4, %v4183_v13  ;;  %v4181_v16 = vadd.f32 %v4165_v7, %v8088_v27  ;;  %v4168_v1 = vmul.f32 %v5503_v38, %v8453_v48 }
 0x736   :  { %v4139_v54 = vpop.f32.mrf.mxu1 }
 0x737   :  { %4419 = vst [vmem:[%s8569_s18 + $0x48] sm:$0xff] %v4403_v63  ;;  %v4408_v18 = vmax.f32 %v4392_v24, 0.0  ;;  %v4390_v26 = vadd.f32 %v4364_v34, %v4181_v16  ;;  %v4184_v36 = vadd.f32 %v4168_v1, %v8106_v32  ;;  %v4166_v35 = vmul.f32 %v8453_v48, %v4139_v54 }
 0x739   :  { %4424 = vst [vmem:[%s8569_s18 + $0x70] sm:$0xff] %v4408_v18  ;;  %v4406_v27 = vmax.f32 %v4390_v26, 0.0  ;;  %v4393_v58 = vadd.f32 %v4375_v62, %v4184_v36  ;;  %v4182_v52 = vadd.f32 %v4166_v35, %v8091_v15 }
 0x73b   :  { %4422 = vst [vmem:[%s8569_s18 + $0x60] sm:$0xff] %v4406_v27  ;;  %v4409_v56 = vmax.f32 %v4393_v58, 0.0  ;;  %v4391_v9 = vadd.f32 %v4367_v6, %v4182_v52 }
 0x73d   :  { %4425 = vst [vmem:[%s8569_s18 + $0x78] sm:$0xff] %v4409_v56  ;;  %v4407_v32 = vmax.f32 %v4391_v9, 0.0 }
 0x73f   :  { %4423 = vst [vmem:[%s8569_s18 + $0x68] sm:$0xff] %v4407_v32 }

</bundles_post_ra>
